<compile_context>
chip_gen: v7x
topology: tpu7x:2x2x1
jax: 0.10.0
libtpu: 0.0.40
codegen_flags: <defaults>
</compile_context>

<pallas_src>
import jax
import jax.numpy as jnp
from jax import lax
from jax.experimental import pallas as pl
from jax.experimental.pallas import tpu as pltpu

EPS = 1e-5  # nn.InstanceNorm2d default eps


# ----------------------------------------------------------------------------
# Kernel
# ----------------------------------------------------------------------------
def _netup_kernel(x_ref, skip_ref, u2_ref, dw_ref, pw_ref, o_ref):
    """Fused NetUp forward for one batch sample.

    x_ref   : (1, H,  W,  Cin)          input (pre-upsample)
    skip_ref: (1, 2H, 2W, Cskip)        skip_input (goes to output channels [Cout:])
    u2_ref  : ((2H+8)*(2W+8), H*W)      kron(pad(Uh), pad(Uw)) bilinear-x2 matrix;
                                        its zero rows ARE the conv's zero padding
    dw_ref  : (3, 3, Cin)               depthwise 3x3 weights
    pw_ref  : (Cin, Cout+Cskip) bf16    pointwise weights, zero-extended over the
                                        skip channels
    o_ref   : (1, 2H, 2W, Cout+Cskip)
    """
    H, W, cin = x_ref.shape[1], x_ref.shape[2], x_ref.shape[3]
    cskip = skip_ref.shape[3]
    ctot = o_ref.shape[3]
    cout = ctot - cskip
    H2, W2 = 2 * H, 2 * W
    Hp, Wp = H2 + 8, W2 + 8  # padded extent baked into u2 (1 zero row/col before, 7 after)

    # 1) Bilinear x2 upsample (align_corners=True) + zero padding for the 3x3
    #    conv, all as a single f32 MXU matmul with the precomputed interpolation
    #    matrix. The image lives at xp[1:H2+1, 1:W2+1, :]; the border is exact 0.
    x_flat = x_ref[0].reshape(H * W, cin)
    xp = jnp.dot(u2_ref[...], x_flat, preferred_element_type=jnp.float32)
    xp = xp.reshape(Hp, Wp, cin)

    # 2) Depthwise 3x3, stride 1: nine shifted-window taps with per-channel weights.
    dwk = dw_ref[...]
    acc = jnp.zeros((H2, W2, cin), jnp.float32)
    for di in range(3):
        for dj in range(3):
            acc = acc + xp[di:di + H2, dj:dj + W2, :] * dwk[di, dj].reshape(1, 1, cin)

    # 3) Pointwise 1x1 conv == channel matmul: bf16 MXU operands, f32 accumulate.
    #    pw was zero-extended to ctot columns in the wrapper, so the conv result
    #    already occupies output channels [0, cout) with exact zeros elsewhere.
    y = jnp.dot(acc.reshape(H2 * W2, cin).astype(jnp.bfloat16), pw_ref[...],
                preferred_element_type=jnp.float32)              # (H2*W2, ctot)

    # 4) InstanceNorm2d (affine=False) with one-pass stats, then ReLU.
    #    The all-zero skip columns stay exactly zero: (0 - 0) * rsqrt(0 + eps) = 0.
    inv_hw = 1.0 / float(H2 * W2)
    s = jnp.sum(y, axis=0, keepdims=True)
    ss = jnp.sum(y * y, axis=0, keepdims=True)
    mean = s * inv_hw
    var = ss * inv_hw - mean * mean
    yn = jnp.maximum((y - mean) * lax.rsqrt(var + EPS), 0.0)

    # 5) Channel concat with skip_input as an exact 0/1 lane-placement matmul:
    #    place[r, t] = 1 iff t == cout + r, so skip lands in channels [cout, ctot).
    r_idx = lax.broadcasted_iota(jnp.int32, (cskip, ctot), 0)
    t_idx = lax.broadcasted_iota(jnp.int32, (cskip, ctot), 1)
    place = (t_idx == r_idx + cout).astype(jnp.float32)
    skip_flat = skip_ref[0].reshape(H2 * W2, cskip)
    placed = jnp.dot(skip_flat, place, preferred_element_type=jnp.float32)

    o_ref[0] = (yn + placed).reshape(H2, W2, ctot)


# ----------------------------------------------------------------------------
# Wrapper (padding folded into the interpolation matrix, pallas_call plumbing)
# ----------------------------------------------------------------------------
def _upsample_matrix(n_in, n_out):
    """1-D linear interpolation matrix for align_corners=True upsampling."""
    if n_in == 1:
        return jnp.ones((n_out, 1), jnp.float32)
    src = jnp.arange(n_out, dtype=jnp.float32) * (n_in - 1) / (n_out - 1)
    i0 = jnp.clip(jnp.floor(src), 0, n_in - 2).astype(jnp.int32)
    frac = src - i0.astype(jnp.float32)
    rows = jnp.arange(n_out)
    m = jnp.zeros((n_out, n_in), jnp.float32)
    m = m.at[rows, i0].add(1.0 - frac)
    m = m.at[rows, i0 + 1].add(frac)
    return m


def init_params(key, in_size, out_size):
    """SeparableConv2d(in_size, out_size, 3, 1, 1) weights (bias=False)."""
    k1, k2 = jax.random.split(key)
    dw = 0.1 * jax.random.normal(k1, (3, 3, in_size), jnp.float32)      # depthwise (kh, kw, c)
    pw = 0.1 * jax.random.normal(k2, (in_size, out_size), jnp.float32)  # pointwise (cin, cout)
    return {"dw": dw, "pw": pw}


def netup(x_nchw, skip_nchw, params):
    """NetUp.forward: cat([relu(instnorm(sepconv(upsample_x2(x)))), skip_input], dim=1)."""
    # TODO(synk): nn.Dropout(dropout) for dropout > 0 is not implemented
    # (the default dropout=0.0 adds no layer, so forward semantics are unchanged).
    dw, pw = params["dw"], params["pw"]
    N, cin, H, W = x_nchw.shape
    cskip = skip_nchw.shape[1]
    cout = pw.shape[1]
    ctot = cout + cskip
    H2, W2 = 2 * H, 2 * W
    assert skip_nchw.shape == (N, cskip, H2, W2)

    x = jnp.transpose(x_nchw, (0, 2, 3, 1)).astype(jnp.float32)      # NCHW -> NHWC
    skip = jnp.transpose(skip_nchw, (0, 2, 3, 1)).astype(jnp.float32)

    # Bilinear-x2 interpolation matrices with the conv's zero padding folded in
    # as zero border rows (1 before the image, 7 after -> 8-aligned extents).
    uh_p = jnp.pad(_upsample_matrix(H, H2), ((1, 7), (0, 0)))        # (H2+8, H)
    uw_p = jnp.pad(_upsample_matrix(W, W2), ((1, 7), (0, 0)))        # (W2+8, W)
    u2 = jnp.kron(uh_p, uw_p)                                        # ((H2+8)*(W2+8), H*W)
    # NOTE: for large spatial sizes, switch to separable (two-matmul) upsampling
    # instead of the dense kron matrix.

    # Zero-extend the pointwise weights over the skip channels and ship as bf16.
    pw_ext = jnp.pad(pw, ((0, 0), (0, cskip))).astype(jnp.bfloat16)  # (cin, ctot)

    out = pl.pallas_call(
        _netup_kernel,
        out_shape=jax.ShapeDtypeStruct((N, H2, W2, ctot), jnp.float32),
        grid=(N,),
        in_specs=[
            pl.BlockSpec((1, H, W, cin), lambda n: (n, 0, 0, 0)),
            pl.BlockSpec((1, H2, W2, cskip), lambda n: (n, 0, 0, 0)),
            pl.BlockSpec(((H2 + 8) * (W2 + 8), H * W), lambda n: (0, 0)),
            pl.BlockSpec((3, 3, cin), lambda n: (0, 0, 0)),
            pl.BlockSpec((cin, ctot), lambda n: (0, 0)),
        ],
        out_specs=pl.BlockSpec((1, H2, W2, ctot), lambda n: (n, 0, 0, 0)),
        compiler_params=pltpu.CompilerParams(dimension_semantics=("parallel",)),
    )(x, skip, u2, dw, pw_ext)
    return jnp.transpose(out, (0, 3, 1, 2))                          # NHWC -> NCHW


# ----------------------------------------------------------------------------
# Pure-JAX reference (for correctness check only)
# ----------------------------------------------------------------------------
def netup_ref(x_nchw, skip_nchw, params):
    dw, pw = params["dw"], params["pw"]
    x = jnp.transpose(x_nchw, (0, 2, 3, 1)).astype(jnp.float32)
    skip = jnp.transpose(skip_nchw, (0, 2, 3, 1)).astype(jnp.float32)
    N, H, W, cin = x.shape
    uh = _upsample_matrix(H, 2 * H)
    uw = _upsample_matrix(W, 2 * W)
    up = jnp.einsum("ph,nhwc->npwc", uh, x)
    up = jnp.einsum("qw,npwc->npqc", uw, up)
    upp = jnp.pad(up, ((0, 0), (1, 1), (1, 1), (0, 0)))
    depth = lax.conv_general_dilated(
        upp, dw.reshape(3, 3, 1, cin), window_strides=(1, 1), padding="VALID",
        dimension_numbers=("NHWC", "HWIO", "NHWC"), feature_group_count=cin)
    y = jnp.einsum("nhwc,co->nhwo", depth, pw)
    mean = jnp.mean(y, axis=(1, 2), keepdims=True)
    var = jnp.mean((y - mean) ** 2, axis=(1, 2), keepdims=True)
    yn = jnp.maximum((y - mean) * lax.rsqrt(var + EPS), 0.0)
    out = jnp.concatenate([yn, skip], axis=-1)
    return jnp.transpose(out, (0, 3, 1, 2))


# ----------------------------------------------------------------------------
if __name__ == "__main__":
    # Small shapes consistent with NetUp.forward:
    #   x: (N, in_size, H, W) -> upsampled to (2H, 2W); skip_input: (N, Cskip, 2H, 2W)
    N, Cin, H, W = 2, 4, 8, 8
    Cout, Cskip = 8, 4

    key = jax.random.PRNGKey(0)
    kx, ks, kp = jax.random.split(key, 3)
    x = jax.random.normal(kx, (N, Cin, H, W), jnp.float32)
    skip = jax.random.normal(ks, (N, Cskip, 2 * H, 2 * W), jnp.float32)
    params = init_params(kp, Cin, Cout)

    out = jax.block_until_ready(netup(x, skip, params))
    assert out.shape == (N, Cout + Cskip, 2 * H, 2 * W), out.shape

    ref = netup_ref(x, skip, params)
    max_err = float(jnp.max(jnp.abs(out - ref)))
    # bf16 MXU operands (with f32 accumulation) in the pointwise conv bound the
    # post-InstanceNorm error to roughly 1e-2; 5e-2 gives comfortable margin.
    assert max_err < 5e-2, f"mismatch vs reference: {max_err}"

    print("KERNEL_OK")
</pallas_src>

<mosaic_0001>
module attributes {stable_mosaic.version = 11 : i64} {
  func.func @_netup_kernel(%arg0: i32, %arg1: memref<1x8x8x4xf32, #tpu.memory_space<vmem>>, %arg2: memref<1x16x16x4xf32, #tpu.memory_space<vmem>>, %arg3: memref<576x64xf32, #tpu.memory_space<vmem>>, %arg4: memref<3x3x4xf32, #tpu.memory_space<vmem>>, %arg5: memref<4x12xbf16, #tpu.memory_space<vmem>>, %arg6: memref<1x16x16x12xf32, #tpu.memory_space<vmem>>) attributes {dimension_semantics = [#tpu.dimension_semantics<parallel>], iteration_bounds = array<i64: 2>, scalar_prefetch = 0 : i64, scratch_operands = 0 : i64, tpu.core_type = #tpu.core_type<tc>, window_params = [{transform_indices = @transform_0, window_bounds = array<i64: 1, 8, 8, 4>}, {transform_indices = @transform_1, window_bounds = array<i64: 1, 16, 16, 4>}, {pipeline_mode = #tpu.pipeline_mode<synchronous>, transform_indices = @transform_2, window_bounds = array<i64: 576, 64>}, {pipeline_mode = #tpu.pipeline_mode<synchronous>, transform_indices = @transform_3, window_bounds = array<i64: 3, 3, 4>}, {pipeline_mode = #tpu.pipeline_mode<synchronous>, transform_indices = @transform_4, window_bounds = array<i64: 4, 12>}, {transform_indices = @transform_5, window_bounds = array<i64: 1, 16, 16, 12>}]} {
    %c0 = arith.constant 0 : index
    %c0_0 = arith.constant 0 : index
    %c0_1 = arith.constant 0 : index
    %c0_2 = arith.constant 0 : index
    %0 = vector.load %arg1[%c0, %c0_0, %c0_1, %c0_2] : memref<1x8x8x4xf32, #tpu.memory_space<vmem>>, vector<1x8x8x4xf32>
    %1 = vector.shape_cast %0 : vector<1x8x8x4xf32> to vector<8x8x4xf32>
    %2 = vector.shape_cast %1 : vector<8x8x4xf32> to vector<64x4xf32>
    %c0_3 = arith.constant 0 : index
    %c0_4 = arith.constant 0 : index
    %3 = vector.load %arg3[%c0_3, %c0_4] : memref<576x64xf32, #tpu.memory_space<vmem>>, vector<576x64xf32>
    %cst = arith.constant dense<0.000000e+00> : vector<576x4xf32>
    %4 = tpu.matmul %3, %2, %cst {dimension_numbers = #tpu.dot_dimension_numbers<[1], [0], [0], [1], [0, 0, 1, 1], [], []>} : vector<576x64xf32>, vector<64x4xf32>, vector<576x4xf32> -> vector<576x4xf32>
    %5 = vector.shape_cast %4 : vector<576x4xf32> to vector<24x24x4xf32>
    %c0_5 = arith.constant 0 : index
    %c0_6 = arith.constant 0 : index
    %c0_7 = arith.constant 0 : index
    %6 = vector.load %arg4[%c0_5, %c0_6, %c0_7] : memref<3x3x4xf32, #tpu.memory_space<vmem>>, vector<3x3x4xf32>
    %cst_8 = arith.constant 0.000000e+00 : f32
    %7 = vector.broadcast %cst_8 : f32 to vector<16x16x4xf32>
    %8 = vector.extract_strided_slice %5 {offsets = [0, 0, 0], sizes = [16, 16, 4], strides = [1, 1, 1]} : vector<24x24x4xf32> to vector<16x16x4xf32>
    %9 = vector.extract_strided_slice %6 {offsets = [0, 0, 0], sizes = [1, 1, 4], strides = [1, 1, 1]} : vector<3x3x4xf32> to vector<1x1x4xf32>
    %10 = vector.shape_cast %9 : vector<1x1x4xf32> to vector<4xf32>
    %11 = vector.shape_cast %10 : vector<4xf32> to vector<1x1x4xf32>
    %12 = vector.broadcast %11 : vector<1x1x4xf32> to vector<16x16x4xf32>
    %13 = arith.mulf %8, %12 : vector<16x16x4xf32>
    %14 = arith.addf %7, %13 : vector<16x16x4xf32>
    %15 = vector.extract_strided_slice %5 {offsets = [0, 1, 0], sizes = [16, 16, 4], strides = [1, 1, 1]} : vector<24x24x4xf32> to vector<16x16x4xf32>
    %16 = vector.extract_strided_slice %6 {offsets = [0, 1, 0], sizes = [1, 1, 4], strides = [1, 1, 1]} : vector<3x3x4xf32> to vector<1x1x4xf32>
    %17 = vector.shape_cast %16 : vector<1x1x4xf32> to vector<4xf32>
    %18 = vector.shape_cast %17 : vector<4xf32> to vector<1x1x4xf32>
    %19 = vector.broadcast %18 : vector<1x1x4xf32> to vector<16x16x4xf32>
    %20 = arith.mulf %15, %19 : vector<16x16x4xf32>
    %21 = arith.addf %14, %20 : vector<16x16x4xf32>
    %22 = vector.extract_strided_slice %5 {offsets = [0, 2, 0], sizes = [16, 16, 4], strides = [1, 1, 1]} : vector<24x24x4xf32> to vector<16x16x4xf32>
    %23 = vector.extract_strided_slice %6 {offsets = [0, 2, 0], sizes = [1, 1, 4], strides = [1, 1, 1]} : vector<3x3x4xf32> to vector<1x1x4xf32>
    %24 = vector.shape_cast %23 : vector<1x1x4xf32> to vector<4xf32>
    %25 = vector.shape_cast %24 : vector<4xf32> to vector<1x1x4xf32>
    %26 = vector.broadcast %25 : vector<1x1x4xf32> to vector<16x16x4xf32>
    %27 = arith.mulf %22, %26 : vector<16x16x4xf32>
    %28 = arith.addf %21, %27 : vector<16x16x4xf32>
    %29 = vector.extract_strided_slice %5 {offsets = [1, 0, 0], sizes = [16, 16, 4], strides = [1, 1, 1]} : vector<24x24x4xf32> to vector<16x16x4xf32>
    %30 = vector.extract_strided_slice %6 {offsets = [1, 0, 0], sizes = [1, 1, 4], strides = [1, 1, 1]} : vector<3x3x4xf32> to vector<1x1x4xf32>
    %31 = vector.shape_cast %30 : vector<1x1x4xf32> to vector<4xf32>
    %32 = vector.shape_cast %31 : vector<4xf32> to vector<1x1x4xf32>
    %33 = vector.broadcast %32 : vector<1x1x4xf32> to vector<16x16x4xf32>
    %34 = arith.mulf %29, %33 : vector<16x16x4xf32>
    %35 = arith.addf %28, %34 : vector<16x16x4xf32>
    %36 = vector.extract_strided_slice %5 {offsets = [1, 1, 0], sizes = [16, 16, 4], strides = [1, 1, 1]} : vector<24x24x4xf32> to vector<16x16x4xf32>
    %37 = vector.extract_strided_slice %6 {offsets = [1, 1, 0], sizes = [1, 1, 4], strides = [1, 1, 1]} : vector<3x3x4xf32> to vector<1x1x4xf32>
    %38 = vector.shape_cast %37 : vector<1x1x4xf32> to vector<4xf32>
    %39 = vector.shape_cast %38 : vector<4xf32> to vector<1x1x4xf32>
    %40 = vector.broadcast %39 : vector<1x1x4xf32> to vector<16x16x4xf32>
    %41 = arith.mulf %36, %40 : vector<16x16x4xf32>
    %42 = arith.addf %35, %41 : vector<16x16x4xf32>
    %43 = vector.extract_strided_slice %5 {offsets = [1, 2, 0], sizes = [16, 16, 4], strides = [1, 1, 1]} : vector<24x24x4xf32> to vector<16x16x4xf32>
    %44 = vector.extract_strided_slice %6 {offsets = [1, 2, 0], sizes = [1, 1, 4], strides = [1, 1, 1]} : vector<3x3x4xf32> to vector<1x1x4xf32>
    %45 = vector.shape_cast %44 : vector<1x1x4xf32> to vector<4xf32>
    %46 = vector.shape_cast %45 : vector<4xf32> to vector<1x1x4xf32>
    %47 = vector.broadcast %46 : vector<1x1x4xf32> to vector<16x16x4xf32>
    %48 = arith.mulf %43, %47 : vector<16x16x4xf32>
    %49 = arith.addf %42, %48 : vector<16x16x4xf32>
    %50 = vector.extract_strided_slice %5 {offsets = [2, 0, 0], sizes = [16, 16, 4], strides = [1, 1, 1]} : vector<24x24x4xf32> to vector<16x16x4xf32>
    %51 = vector.extract_strided_slice %6 {offsets = [2, 0, 0], sizes = [1, 1, 4], strides = [1, 1, 1]} : vector<3x3x4xf32> to vector<1x1x4xf32>
    %52 = vector.shape_cast %51 : vector<1x1x4xf32> to vector<4xf32>
    %53 = vector.shape_cast %52 : vector<4xf32> to vector<1x1x4xf32>
    %54 = vector.broadcast %53 : vector<1x1x4xf32> to vector<16x16x4xf32>
    %55 = arith.mulf %50, %54 : vector<16x16x4xf32>
    %56 = arith.addf %49, %55 : vector<16x16x4xf32>
    %57 = vector.extract_strided_slice %5 {offsets = [2, 1, 0], sizes = [16, 16, 4], strides = [1, 1, 1]} : vector<24x24x4xf32> to vector<16x16x4xf32>
    %58 = vector.extract_strided_slice %6 {offsets = [2, 1, 0], sizes = [1, 1, 4], strides = [1, 1, 1]} : vector<3x3x4xf32> to vector<1x1x4xf32>
    %59 = vector.shape_cast %58 : vector<1x1x4xf32> to vector<4xf32>
    %60 = vector.shape_cast %59 : vector<4xf32> to vector<1x1x4xf32>
    %61 = vector.broadcast %60 : vector<1x1x4xf32> to vector<16x16x4xf32>
    %62 = arith.mulf %57, %61 : vector<16x16x4xf32>
    %63 = arith.addf %56, %62 : vector<16x16x4xf32>
    %64 = vector.extract_strided_slice %5 {offsets = [2, 2, 0], sizes = [16, 16, 4], strides = [1, 1, 1]} : vector<24x24x4xf32> to vector<16x16x4xf32>
    %65 = vector.extract_strided_slice %6 {offsets = [2, 2, 0], sizes = [1, 1, 4], strides = [1, 1, 1]} : vector<3x3x4xf32> to vector<1x1x4xf32>
    %66 = vector.shape_cast %65 : vector<1x1x4xf32> to vector<4xf32>
    %67 = vector.shape_cast %66 : vector<4xf32> to vector<1x1x4xf32>
    %68 = vector.broadcast %67 : vector<1x1x4xf32> to vector<16x16x4xf32>
    %69 = arith.mulf %64, %68 : vector<16x16x4xf32>
    %70 = arith.addf %63, %69 : vector<16x16x4xf32>
    %71 = vector.shape_cast %70 : vector<16x16x4xf32> to vector<256x4xf32>
    %72 = arith.truncf %71 : vector<256x4xf32> to vector<256x4xbf16>
    %c0_9 = arith.constant 0 : index
    %c0_10 = arith.constant 0 : index
    %73 = vector.load %arg5[%c0_9, %c0_10] : memref<4x12xbf16, #tpu.memory_space<vmem>>, vector<4x12xbf16>
    %cst_11 = arith.constant dense<0.000000e+00> : vector<256x12xf32>
    %74 = tpu.matmul %72, %73, %cst_11 {dimension_numbers = #tpu.dot_dimension_numbers<[1], [0], [0], [1], [0, 0, 1, 1], [], []>} : vector<256x4xbf16>, vector<4x12xbf16>, vector<256x12xf32> -> vector<256x12xf32>
    %cst_12 = arith.constant dense<0.000000e+00> : vector<12xf32>
    %75 = vector.multi_reduction <add>, %74, %cst_12 [0] : vector<256x12xf32> to vector<12xf32>
    %76 = vector.shape_cast %75 : vector<12xf32> to vector<1x12xf32>
    %77 = arith.mulf %74, %74 : vector<256x12xf32>
    %cst_13 = arith.constant dense<0.000000e+00> : vector<12xf32>
    %78 = vector.multi_reduction <add>, %77, %cst_13 [0] : vector<256x12xf32> to vector<12xf32>
    %79 = vector.shape_cast %78 : vector<12xf32> to vector<1x12xf32>
    %cst_14 = arith.constant 3.906250e-03 : f32
    %80 = vector.broadcast %cst_14 : f32 to vector<1x12xf32>
    %81 = arith.mulf %76, %80 : vector<1x12xf32>
    %cst_15 = arith.constant 3.906250e-03 : f32
    %82 = vector.broadcast %cst_15 : f32 to vector<1x12xf32>
    %83 = arith.mulf %79, %82 : vector<1x12xf32>
    %84 = arith.mulf %81, %81 : vector<1x12xf32>
    %85 = arith.subf %83, %84 : vector<1x12xf32>
    %86 = vector.broadcast %81 : vector<1x12xf32> to vector<256x12xf32>
    %87 = arith.subf %74, %86 : vector<256x12xf32>
    %cst_16 = arith.constant 9.99999974E-6 : f32
    %88 = vector.broadcast %cst_16 : f32 to vector<1x12xf32>
    %89 = arith.addf %85, %88 : vector<1x12xf32>
    %90 = math.rsqrt %89 : vector<1x12xf32>
    %91 = vector.broadcast %90 : vector<1x12xf32> to vector<256x12xf32>
    %92 = arith.mulf %87, %91 : vector<256x12xf32>
    %cst_17 = arith.constant 0.000000e+00 : f32
    %93 = vector.broadcast %cst_17 : f32 to vector<256x12xf32>
    %94 = arith.maximumf %92, %93 : vector<256x12xf32>
    %95 = tpu.iota {dimensions = array<i32: 0>} : vector<4x12xi32>
    %96 = tpu.iota {dimensions = array<i32: 1>} : vector<4x12xi32>
    %c8_i32 = arith.constant 8 : i32
    %97 = vector.broadcast %c8_i32 : i32 to vector<4x12xi32>
    %98 = arith.addi %95, %97 : vector<4x12xi32>
    %99 = arith.cmpi eq, %96, %98 : vector<4x12xi32>
    %100 = arith.extui %99 : vector<4x12xi1> to vector<4x12xi32>
    %101 = arith.sitofp %100 : vector<4x12xi32> to vector<4x12xf32>
    %c0_18 = arith.constant 0 : index
    %c0_19 = arith.constant 0 : index
    %c0_20 = arith.constant 0 : index
    %c0_21 = arith.constant 0 : index
    %102 = vector.load %arg2[%c0_18, %c0_19, %c0_20, %c0_21] : memref<1x16x16x4xf32, #tpu.memory_space<vmem>>, vector<1x16x16x4xf32>
    %103 = vector.shape_cast %102 : vector<1x16x16x4xf32> to vector<16x16x4xf32>
    %104 = vector.shape_cast %103 : vector<16x16x4xf32> to vector<256x4xf32>
    %cst_22 = arith.constant dense<0.000000e+00> : vector<256x12xf32>
    %105 = tpu.matmul %104, %101, %cst_22 {dimension_numbers = #tpu.dot_dimension_numbers<[1], [0], [0], [1], [0, 0, 1, 1], [], []>} : vector<256x4xf32>, vector<4x12xf32>, vector<256x12xf32> -> vector<256x12xf32>
    %106 = arith.addf %94, %105 : vector<256x12xf32>
    %107 = vector.shape_cast %106 : vector<256x12xf32> to vector<16x16x12xf32>
    %c0_23 = arith.constant 0 : index
    %c0_24 = arith.constant 0 : index
    %c0_25 = arith.constant 0 : index
    %c0_26 = arith.constant 0 : index
    %108 = vector.load %arg6[%c0_23, %c0_24, %c0_25, %c0_26] : memref<1x16x16x12xf32, #tpu.memory_space<vmem>>, vector<1x16x16x12xf32>
    %109 = vector.shape_cast %108 : vector<1x16x16x12xf32> to vector<16x16x12xf32>
    %110 = vector.shape_cast %107 : vector<16x16x12xf32> to vector<1x16x16x12xf32>
    tpu.vector_store %arg6[%c0_23, %c0_24, %c0_25, %c0_26], %110 {strides = array<i32>} : memref<1x16x16x12xf32, #tpu.memory_space<vmem>>, vector<1x16x16x12xf32>,
    return
  }
  func.func @transform_0(%arg0: i32) -> (i32, i32, i32, i32) {
    %c0_i32 = arith.constant 0 : i32
    %c0_i32_0 = arith.constant 0 : i32
    %c0_i32_1 = arith.constant 0 : i32
    %c0_i32_2 = arith.constant 0 : i32
    return %arg0, %c0_i32, %c0_i32_0, %c0_i32_1 : i32, i32, i32, i32
  }
  func.func @transform_1(%arg0: i32) -> (i32, i32, i32, i32) {
    %c0_i32 = arith.constant 0 : i32
    %c0_i32_0 = arith.constant 0 : i32
    %c0_i32_1 = arith.constant 0 : i32
    %c0_i32_2 = arith.constant 0 : i32
    return %arg0, %c0_i32, %c0_i32_0, %c0_i32_1 : i32, i32, i32, i32
  }
  func.func @transform_2(%arg0: i32) -> (i32, i32) {
    %c0_i32 = arith.constant 0 : i32
    %c0_i32_0 = arith.constant 0 : i32
    %c0_i32_1 = arith.constant 0 : i32
    return %c0_i32, %c0_i32_0 : i32, i32
  }
  func.func @transform_3(%arg0: i32) -> (i32, i32, i32) {
    %c0_i32 = arith.constant 0 : i32
    %c0_i32_0 = arith.constant 0 : i32
    %c0_i32_1 = arith.constant 0 : i32
    %c0_i32_2 = arith.constant 0 : i32
    return %c0_i32, %c0_i32_0, %c0_i32_1 : i32, i32, i32
  }
  func.func @transform_4(%arg0: i32) -> (i32, i32) {
    %c0_i32 = arith.constant 0 : i32
    %c0_i32_0 = arith.constant 0 : i32
    %c0_i32_1 = arith.constant 0 : i32
    return %c0_i32, %c0_i32_0 : i32, i32
  }
  func.func @transform_5(%arg0: i32) -> (i32, i32, i32, i32) {
    %c0_i32 = arith.constant 0 : i32
    %c0_i32_0 = arith.constant 0 : i32
    %c0_i32_1 = arith.constant 0 : i32
    %c0_i32_2 = arith.constant 0 : i32
    return %arg0, %c0_i32, %c0_i32_0, %c0_i32_1 : i32, i32, i32, i32
  }
}

</mosaic_0001>

<bundles_post_ra>
// kernel: tpu_custom_call.1
= control target key start
LH: loop header
LB: loop body
LE: loop exit
PB: predicated region body
PF: predicated region fallthrough
CT: control target
= control target key end

     0   :  { %s4174_s18 = smov 0   ;;  %s7059_s0 = inlined_call_operand.vmem [shape: f32[2,8,8,4], index: 0, kind: input, shape index: {}]   ;;  %s7060_s1 = inlined_call_operand.vmem [shape: f32[2,16,16,4], index: 1, kind: input, shape index: {}]   ;;  %s7061_s2 = inlined_call_operand.vmem [shape: f32[576,64], index: 2, kind: input, shape index: {}]   ;;  %s7062_s3 = inlined_call_operand.vmem [shape: f32[3,3,4], index: 3, kind: input, shape index: {}]   ;;  %s7063_s4 = inlined_call_operand.vmem [shape: bf16[4,12], index: 4, kind: input, shape index: {}]   ;;  %s7064_s5 = inlined_call_operand.vmem [shape: f32[2,16,16,12], index: 5, kind: output, shape index: {}]  }
   0x1 LB: > { %s3623_s19 = sadd.s32 4294967295, %s4141_s18   ;;  %p3627_p0 = scmp.ge.s32.totalorder %s4141_s18, 1  ;;  %s4141_s18 = sphi %s4174_s18, %s15_s18  }
   0x2   : > { %p197_p1 = scmp.lt.s32.totalorder %s4141_s18, 3 }
   0x4   : > { %p198_p2 = pnand %p3627_p0, %p197_p1 }
   0x6   : > { %201 = sbr.rel (%p198_p2) target bundleno = 854 (0x356), region = 40 }
   0xd   : > { %p230_p3 = scmp.lt.s32.totalorder %s3623_s19, 1  ;;  %v254_v0 = vld [vmem:[%s7061_s2] sm:$0xff]  ;;  %vm326_vm0 = vcmask 523264   ;;  %v255_v13 = vld [vmem:[%s7061_s2 + $0x8] sm:$0xff]  ;;  %v256_v14 = vld [vmem:[%s7061_s2 + $0x10] sm:$0xff]  ;;  %vm2689_vm1 = vcmask 1041408  }
   0xe   : > { %3907 = vmatprep.mubr.msk.f32.mxu0 %vm326_vm0, %v254_v0  ;;  %v257_v15 = vld [vmem:[%s7061_s2 + $0x18] sm:$0xff]  ;;  %v258_v16 = vld [vmem:[%s7061_s2 + $0x20] sm:$0xff]  ;;  %v259_v17 = vld [vmem:[%s7061_s2 + $0x28] sm:$0xff]  ;;  %vm1121_vm2 = vcmask 1046528   ;;  %vm1366_vm3 = vcmask 1045504   ;;  %vm2640_vm4 = vcmask 31744  }
   0xf   : > { %s7568_s19 = smov (!%p230_p3, %s3623_s19), 1  ;;  %v260_v18 = vld [vmem:[%s7061_s2 + $0x30] sm:$0xff]  ;;  %v261_v19 = vld [vmem:[%s7061_s2 + $0x38] sm:$0xff]  ;;  %v262_v20 = vld [vmem:[%s7061_s2 + $0x40] sm:$0xff]  ;;  %vm3263_vm5 = vcmask 1043456   ;;  %vm2854_vm7 = vcmask 97280  }
  0x10   : > { %s3758_s22 = sshll.u32 %s7568_s19, 6  ;;  %v263_v21 = vld [vmem:[%s7061_s2 + $0x48] sm:$0xff]  ;;  %v264_v22 = vld [vmem:[%s7061_s2 + $0x50] sm:$0xff]  ;;  %v265_v23 = vld [vmem:[%s7061_s2 + $0x58] sm:$0xff]  ;;  %s3759_s13 = sshll.u32 %s7568_s19, 8 }
  0x11   : > { %s234_s25 = scalar_lea.vmem %s7059_s0, %s3758_s22  ;;  %v266_v24 = vld [vmem:[%s7061_s2 + $0x60] sm:$0xff]  ;;  %v267_v25 = vld [vmem:[%s7061_s2 + $0x68] sm:$0xff]  ;;  %v268_v26 = vld [vmem:[%s7061_s2 + $0x70] sm:$0xff]  ;;  %s6483_s16 = scalar_lea.vmem %s7060_s1, %s3759_s13 }
  0x12   : > { %v246_v1 = vld [vmem:[%s234_s25] sm:$0xff]  ;;  %v247_v2 = vld [vmem:[%s234_s25 + $0x8] sm:$0xff]  ;;  %v248_v3 = vld [vmem:[%s234_s25 + $0x10] sm:$0xff]  ;;  %s6872_s21 = scalar_lea.vmem %s7064_s5, %s3759_s13 }
  0x13   : > { %v4099_v4 = vpack.c.bf16 %v247_v2, %v246_v1  ;;  %v249_v5 = vld [vmem:[%s234_s25 + $0x18] sm:$0xff]  ;;  %v250_v7 = vld [vmem:[%s234_s25 + $0x20] sm:$0xff]  ;;  %v251_v8 = vld [vmem:[%s234_s25 + $0x28] sm:$0xff] }
  0x14   : > { %v4103_v6 = vpack.c.bf16 %v249_v5, %v248_v3  ;;  %v4107_v9 = vpack.c.bf16 %v251_v8, %v250_v7  ;;  %v252_v10 = vld [vmem:[%s234_s25 + $0x30] sm:$0xff]  ;;  %v253_v11 = vld [vmem:[%s234_s25 + $0x38] sm:$0xff]  ;;  %v270_v28 = vld [vmem:[%s7061_s2 + $0x80] sm:$0xff]  ;;  %v7065_v8 = vlaneseq }
  0x15   : > { %4100 = vmatprep.subr.bf16.mxu0 %v4099_v4  ;;  %4115 = vmatprep.subr.bf16.mxu1 %v4099_v4  ;;  %v4111_v12 = vpack.c.bf16 %v253_v11, %v252_v10  ;;  %v269_v27 = vld [vmem:[%s7061_s2 + $0x78] sm:$0xff]  ;;  %v271_v29 = vld [vmem:[%s7061_s2 + $0x88] sm:$0xff]  ;;  %v272_v30 = vld [vmem:[%s7061_s2 + $0x90] sm:$0xff] }
  0x16   : > { %4102 = vmatpush3.bf16.msra.mxu0 %v4099_v4  ;;  %4119 = vmatpush3.bf16.msra.mxu1 %v4099_v4  ;;  %v273_v31 = vld [vmem:[%s7061_s2 + $0x98] sm:$0xff]  ;;  %v274_v32 = vld [vmem:[%s7061_s2 + $0xa0] sm:$0xff]  ;;  %v275_v33 = vld [vmem:[%s7061_s2 + $0xa8] sm:$0xff] }
  0x17   : > { %4104 = vmatprep.subr.bf16.mxu0 %v4103_v6  ;;  %4116 = vmatprep.subr.bf16.mxu1 %v4103_v6  ;;  %v276_v34 = vld [vmem:[%s7061_s2 + $0xb0] sm:$0xff]  ;;  %v277_v35 = vld [vmem:[%s7061_s2 + $0xb8] sm:$0xff]  ;;  %v278_v36 = vld [vmem:[%s7061_s2 + $0xc0] sm:$0xff] }
  0x18   : > { %v279_v37 = vld [vmem:[%s7061_s2 + $0xc8] sm:$0xff]  ;;  %v280_v38 = vld [vmem:[%s7061_s2 + $0xd0] sm:$0xff]  ;;  %v281_v39 = vld [vmem:[%s7061_s2 + $0xd8] sm:$0xff] }
  0x19   : > { %v282_v40 = vld [vmem:[%s7061_s2 + $0xe0] sm:$0xff]  ;;  %v283_v41 = vld [vmem:[%s7061_s2 + $0xe8] sm:$0xff]  ;;  %v284_v42 = vld [vmem:[%s7061_s2 + $0xf0] sm:$0xff] }
  0x1a   : > { %4106 = vmatpush3.bf16.msra.mxu0 %v4103_v6  ;;  %4120 = vmatpush3.bf16.msra.mxu1 %v4103_v6  ;;  %v285_v43 = vld [vmem:[%s7061_s2 + $0xf8] sm:$0xff]  ;;  %v286_v44 = vld [vmem:[%s7061_s2 + $0x100] sm:$0xff]  ;;  %v287_v45 = vld [vmem:[%s7061_s2 + $0x108] sm:$0xff] }
  0x1b   : > { %4108 = vmatprep.subr.bf16.mxu0 %v4107_v9  ;;  %4117 = vmatprep.subr.bf16.mxu1 %v4107_v9  ;;  %v288_v46 = vld [vmem:[%s7061_s2 + $0x110] sm:$0xff]  ;;  %v289_v47 = vld [vmem:[%s7061_s2 + $0x118] sm:$0xff]  ;;  %v290_v48 = vld [vmem:[%s7061_s2 + $0x120] sm:$0xff] }
  0x1c   : > { %v291_v49 = vld [vmem:[%s7061_s2 + $0x128] sm:$0xff]  ;;  %v292_v50 = vld [vmem:[%s7061_s2 + $0x130] sm:$0xff]  ;;  %v293_v51 = vld [vmem:[%s7061_s2 + $0x138] sm:$0xff] }
  0x1d   : > { %v294_v52 = vld [vmem:[%s7061_s2 + $0x140] sm:$0xff]  ;;  %v295_v53 = vld [vmem:[%s7061_s2 + $0x148] sm:$0xff]  ;;  %v296_v54 = vld [vmem:[%s7061_s2 + $0x150] sm:$0xff] }
  0x1e   : > { %4110 = vmatpush3.bf16.msra.mxu0 %v4107_v9  ;;  %4121 = vmatpush3.bf16.msra.mxu1 %v4107_v9  ;;  %v297_v55 = vld [vmem:[%s7061_s2 + $0x158] sm:$0xff]  ;;  %v298_v56 = vld [vmem:[%s7061_s2 + $0x160] sm:$0xff]  ;;  %v299_v57 = vld [vmem:[%s7061_s2 + $0x168] sm:$0xff]  ;;  %v4424_v9 = vshrl.u32 %v7065_v8, 7 }
  0x1f   : > { %4112 = vmatprep.subr.bf16.mxu0 %v4111_v12  ;;  %4118 = vmatprep.subr.bf16.mxu1 %v4111_v12  ;;  %v300_v58 = vld [vmem:[%s7061_s2 + $0x170] sm:$0xff]  ;;  %v301_v59 = vld [vmem:[%s7061_s2 + $0x178] sm:$0xff]  ;;  %v302_v60 = vld [vmem:[%s7061_s2 + $0x180] sm:$0xff] }
  0x20   : > { %v303_v61 = vld [vmem:[%s7061_s2 + $0x188] sm:$0xff]  ;;  %v304_v62 = vld [vmem:[%s7061_s2 + $0x190] sm:$0xff]  ;;  %v305_v63 = vld [vmem:[%s7061_s2 + $0x198] sm:$0xff]  ;;  %7176 = vst [vmem:[#allocation2_spill] sm:$0xff] %v4424_v9  ;;  %v1023_v10 = vsub.s32 1, %v4424_v9  ;;  %v1268_v11 = vsub.s32 2, %v4424_v9 }
  0x21   : > { %v306_v0 = vld [vmem:[%s7061_s2 + $0x1a0] sm:$0xff]  ;;  %v307_v1 = vld [vmem:[%s7061_s2 + $0x1a8] sm:$0xff]  ;;  %v324_v4 = vld [vmem:[%s7061_s2 + $0x230] sm:$0xff] }
  0x22   : > { %4114 = vmatpush3.bf16.msra.mxu0 %v4111_v12  ;;  %4122 = vmatpush3.bf16.msra.mxu1 %v4111_v12  ;;  %v322_v2 = vld [vmem:[%s7061_s2 + $0x220] sm:$0xff]  ;;  %v323_v3 = vld [vmem:[%s7061_s2 + $0x228] sm:$0xff]  ;;  %v325_v5 = vld [vmem:[%s7061_s2 + $0x238] sm:$0xff] }
  0x23   : > { %4009 = vmatprep.mubr.msk.f32.mxu1 %vm326_vm0, %v322_v2  ;;  %v2639_v6 = vld [vmem:[%s7063_s4] sm:$0x3] }
  0x24   : > { %4123 = vmatprep.subr.msk.bf16.mxu1 %vm2689_vm1, %v2639_v6  ;;  %v2691_v7 = vsel %vm2689_vm1, %v2639_v6, 0  ;;  %v950_v12 = vld [vmem:[%s7062_s3] sm:$0x7] }
  0x25   : > { %3908 = vmatmul.mubr.msk.f32.vlgmr.msra.gmra.mrb[0].mxu0 %vm326_vm0, %v255_v13  ;;  %4010 = vmatmul.mubr.msk.f32.vlgmr.msra.gmra.mrb[0].mxu1 %vm326_vm0, %v323_v3  ;;  %v955_v13 = vsub.s32 0, %v4424_v9 }
  0x26   : > { %3910 = vmatprep.mubr.msk.f32.mxu0 %vm326_vm0, %v256_v14  ;;  %4012 = vmatprep.mubr.msk.f32.mxu1 %vm326_vm0, %v324_v4  ;;  %v4432_v14 = vrot.slane %v950_v12, %v1023_v10 }
  0x27   : > { %4016 = vmatpush3.bf16.msra.mxu1 %v2691_v7 }
  0x29   : > { %3911 = vmatmul.mubr.msk.f32.gmra.mrb[2].mxu0 %vm326_vm0, %v257_v15  ;;  %4013 = vmatmul.mubr.msk.f32.gmra.mrb[2].mxu1 %vm326_vm0, %v325_v5  ;;  %v4434_v15 = vrot.slane %v950_v12, %v1268_v11 }
  0x2a   : > { %3913 = vmatprep.mubr.msk.f32.mxu0 %vm326_vm0, %v258_v16  ;;  %v951_v16 = vld [vmem:[%s7062_s3 + $0x4] sm:$0x7] }
  0x2d   : > { %3914 = vmatmul.mubr.msk.f32.gmra.mrb[4].mxu0 %vm326_vm0, %v259_v17 }
  0x2e   : > { %3916 = vmatprep.mubr.msk.f32.mxu0 %vm326_vm0, %v260_v18  ;;  %v4439_v18 = vrot.slane %v950_v12, %v955_v13 }
  0x31   : > { %3917 = vmatmul.mubr.msk.f32.gmra.mrb[6].mxu0 %vm326_vm0, %v261_v19 }
  0x32   : > { %3919 = vmatprep.mubr.msk.f32.mxu0 %vm326_vm0, %v262_v20 }
  0x35   : > { %3920 = vmatmul.mubr.msk.f32.gmra.mrb[8].mxu0 %vm326_vm0, %v263_v21 }
  0x36   : > { %3922 = vmatprep.mubr.msk.f32.mxu0 %vm326_vm0, %v264_v22  ;;  %v952_v22 = vld [vmem:[%s7062_s3 + $0x8] sm:$0x7] }
  0x39   : > { %3923 = vmatmul.mubr.msk.f32.gmra.mrb[10].mxu0 %vm326_vm0, %v265_v23 }
  0x3a   : > { %3925 = vmatprep.mubr.msk.f32.mxu0 %vm326_vm0, %v266_v24 }
  0x3d   : > { %3926 = vmatmul.mubr.msk.f32.gmra.mrb[12].mxu0 %vm326_vm0, %v267_v25  ;;  %v4448_v25 = vrot.slane %v951_v16, %v955_v13 }
  0x3e   : > { %3928 = vmatprep.mubr.msk.f32.mxu0 %vm326_vm0, %v268_v26  ;;  %v4450_v26 = vrot.slane %v951_v16, %v1023_v10 }
  0x41   : > { %3929 = vmatmul.mubr.msk.f32.gmra.mrb[14].mxu0 %vm326_vm0, %v269_v27 }
  0x42   : > { %3931 = vmatprep.mubr.msk.f32.mxu0 %vm326_vm0, %v270_v28 }
  0x45   : > { %3932 = vmatmul.mubr.msk.f32.gmra.mrb[16].mxu0 %vm326_vm0, %v271_v29  ;;  %v4452_v29 = vrot.slane %v951_v16, %v1268_v11 }
  0x46   : > { %3934 = vmatprep.mubr.msk.f32.mxu0 %vm326_vm0, %v272_v30 }
  0x49   : > { %3935 = vmatmul.mubr.msk.f32.gmra.mrb[18].mxu0 %vm326_vm0, %v273_v31 }
  0x4a   : > { %3937 = vmatprep.mubr.msk.f32.mxu0 %vm326_vm0, %v274_v32 }
  0x4d   : > { %3938 = vmatmul.mubr.msk.f32.gmra.mrb[20].mxu0 %vm326_vm0, %v275_v33  ;;  %v4454_v33 = vrot.slane %v952_v22, %v955_v13 }
  0x4e   : > { %3940 = vmatprep.mubr.msk.f32.mxu0 %vm326_vm0, %v276_v34  ;;  %v4456_v34 = vrot.slane %v952_v22, %v1023_v10 }
  0x51   : > { %3941 = vmatmul.mubr.msk.f32.gmra.mrb[22].mxu0 %vm326_vm0, %v277_v35 }
  0x52   : > { %3943 = vmatprep.mubr.msk.f32.mxu0 %vm326_vm0, %v278_v36 }
  0x55   : > { %3944 = vmatmul.mubr.msk.f32.gmra.mrb[24].mxu0 %vm326_vm0, %v279_v37 }
  0x56   : > { %3946 = vmatprep.mubr.msk.f32.mxu0 %vm326_vm0, %v280_v38 }
  0x59   : > { %3947 = vmatmul.mubr.msk.f32.gmra.mrb[26].mxu0 %vm326_vm0, %v281_v39  ;;  %v4461_v39 = vrot.slane %v952_v22, %v1268_v11 }
  0x5a   : > { %3949 = vmatprep.mubr.msk.f32.mxu0 %vm326_vm0, %v282_v40 }
  0x5d   : > { %3950 = vmatmul.mubr.msk.f32.gmra.mrb[28].mxu0 %vm326_vm0, %v283_v41 }
  0x5e   : > { %3952 = vmatprep.mubr.msk.f32.mxu0 %vm326_vm0, %v284_v42 }
  0x61   : > { %3953 = vmatmul.mubr.msk.f32.gmra.mrb[30].mxu0 %vm326_vm0, %v285_v43 }
  0x62   : > { %3955 = vmatprep.mubr.msk.f32.mxu0 %vm326_vm0, %v286_v44 }
  0x65   : > { %3956 = vmatmul.mubr.msk.f32.gmra.mrb[32].mxu0 %vm326_vm0, %v287_v45 }
  0x66   : > { %3958 = vmatprep.mubr.msk.f32.mxu0 %vm326_vm0, %v288_v46 }
  0x69   : > { %3959 = vmatmul.mubr.msk.f32.gmra.mrb[34].mxu0 %vm326_vm0, %v289_v47 }
  0x6a   : > { %3961 = vmatprep.mubr.msk.f32.mxu0 %vm326_vm0, %v290_v48 }
  0x6d   : > { %3962 = vmatmul.mubr.msk.f32.gmra.mrb[36].mxu0 %vm326_vm0, %v291_v49 }
  0x6e   : > { %3964 = vmatprep.mubr.msk.f32.mxu0 %vm326_vm0, %v292_v50 }
  0x71   : > { %3965 = vmatmul.mubr.msk.f32.gmra.mrb[38].mxu0 %vm326_vm0, %v293_v51 }
  0x72   : > { %3967 = vmatprep.mubr.msk.f32.mxu0 %vm326_vm0, %v294_v52 }
  0x75   : > { %3968 = vmatmul.mubr.msk.f32.gmra.mrb[40].mxu0 %vm326_vm0, %v295_v53 }
  0x76   : > { %3970 = vmatprep.mubr.msk.f32.mxu0 %vm326_vm0, %v296_v54 }
  0x79   : > { %3971 = vmatmul.mubr.msk.f32.gmra.mrb[42].mxu0 %vm326_vm0, %v297_v55 }
  0x7a   : > { %3973 = vmatprep.mubr.msk.f32.mxu0 %vm326_vm0, %v298_v56 }
  0x7d   : > { %3974 = vmatmul.mubr.msk.f32.gmra.mrb[44].mxu0 %vm326_vm0, %v299_v57 }
  0x7e   : > { %3976 = vmatprep.mubr.msk.f32.mxu0 %vm326_vm0, %v300_v58 }
  0x81   : > { %3977 = vmatmul.mubr.msk.f32.gmra.mrb[46].mxu0 %vm326_vm0, %v301_v59 }
  0x82   : > { %3979 = vmatprep.mubr.msk.f32.mxu0 %vm326_vm0, %v302_v60 }
  0x85   : > { %3980 = vmatmul.mubr.msk.f32.gmra.mrb[48].mxu0 %vm326_vm0, %v303_v61 }
  0x86   : > { %3982 = vmatprep.mubr.msk.f32.mxu0 %vm326_vm0, %v304_v62 }
  0x89   : > { %3983 = vmatmul.mubr.msk.f32.gmra.mrb[50].mxu0 %vm326_vm0, %v305_v63 }
  0x8a   : > { %3985 = vmatprep.mubr.msk.f32.mxu0 %vm326_vm0, %v306_v0 }
  0x8d   : > { %3986 = vmatmul.mubr.msk.f32.gmra.mrb[52].mxu0 %vm326_vm0, %v307_v1 }
  0xf8   : > { %v3909_v17 = vpop.f32.mrb[0].mxu0 }
  0xf9   : > { %v1026_v19 = vmul.f32 %v3909_v17, %v4432_v14  ;;  %v1271_v20 = vmul.f32 %v3909_v17, %v4434_v15  ;;  %v609_v21 = vpop.f32.mrb[1].mxu0  ;;  %v958_v40 = vmul.f32 %v3909_v17, %v4439_v18 }
  0xfa   : > { %v1025_v23 = vmul.f32 %v4432_v14, %v609_v21  ;;  %v1270_v24 = vmul.f32 %v4434_v15, %v609_v21  ;;  %v957_v35 = vmul.f32 %v4439_v18, %v609_v21 }
  0xfb   : > { %v1123_v27 = vrot.slane %v1026_v19, 1  ;;  %v1368_v28 = vrot.slane %v1271_v20, 2 }
  0xfc   : > { %v1122_v30 = vrot.slane %v1025_v23, 1  ;;  %v1367_v31 = vrot.slane %v1270_v24, 2  ;;  %v3912_v32 = vpop.f32.mrb[2].mxu0 }
  0xfd   : > { %v1028_v36 = vmul.f32 %v3912_v32, %v4432_v14  ;;  %v1273_v37 = vmul.f32 %v3912_v32, %v4434_v15  ;;  %v619_v38 = vpop.f32.mrb[3].mxu0  ;;  %v1583_v43 = vmul.f32 %v3912_v32, %v4450_v26  ;;  %v959_v45 = vmul.f32 %v3912_v32, %v4439_v18 }
  0xfe   : > { %v1124_v41 = vsel %vm1121_vm2, %v1122_v30, %v1123_v27  ;;  %v1369_v42 = vsel %vm1366_vm3, %v1367_v31, %v1368_v28  ;;  %v4469_v46 = vmul.f32 %v3912_v32, %v4452_v29  ;;  %v1027_v47 = vmul.f32 %v4432_v14, %v619_v38 }
  0xff   : > { %v1234_v44 = vadd.f32 %v1124_v41, %v957_v35  ;;  %v1127_v48 = vrot.slane %v1028_v36, 1  ;;  %v1372_v49 = vrot.slane %v1273_v37, 2  ;;  %v1515_v50 = vmul.f32 %v3912_v32, %v4448_v25 }
 0x100   : > { %v1272_v51 = vmul.f32 %v4434_v15, %v619_v38  ;;  %v3915_v52 = vpop.f32.mrb[4].mxu0  ;;  %v1125_v54 = vrot.slane %v1027_v47, 1  ;;  %v1679_v58 = vrot.slane %v1583_v43, 1 }
 0x101   : > { %v1479_v53 = vadd.f32 %v1369_v42, %v1234_v44  ;;  %v1030_v55 = vmul.f32 %v3915_v52, %v4432_v14  ;;  %v1275_v56 = vmul.f32 %v3915_v52, %v4434_v15  ;;  %v629_v57 = vpop.f32.mrb[5].mxu0  ;;  %v1585_v60 = vmul.f32 %v3915_v52, %v4450_v26 }
 0x102   : > { %v1370_v59 = vrot.slane %v1272_v51, 2  ;;  %v4478_v61 = vmul.f32 %v3915_v52, %v4452_v29  ;;  %v1126_v0 = vsel %vm1121_vm2, %v1123_v27, %v1125_v54  ;;  %v960_v1 = vmul.f32 %v4439_v18, %v629_v57 }
 0x103   : > { %v4480_v62 = vadd.f32 %v1515_v50, %v1479_v53  ;;  %v1235_v2 = vadd.f32 %v1126_v0, %v958_v40  ;;  %v1130_v4 = vrot.slane %v1030_v55, 1  ;;  %v1375_v5 = vrot.slane %v1275_v56, 2 }
 0x104   : > { %v1371_v3 = vsel %vm1366_vm3, %v1368_v28, %v1370_v59  ;;  %v4486_v6 = vpop.f32.mrb[6].mxu0  ;;  %v1682_v7 = vrot.slane %v1585_v60, 1  ;;  %v1029_v10 = vmul.f32 %v4432_v14, %v629_v57  ;;  %v1274_v11 = vmul.f32 %v4434_v15, %v629_v57 }
 0x105   : > { %v1584_v12 = vmul.f32 %v4450_v26, %v629_v57  ;;  %v4491_v13 = vpop.f32.mrb[7].mxu0  ;;  %v1480_v16 = vadd.f32 %v1371_v3, %v1235_v2  ;;  %v1516_v19 = vmul.f32 %v4448_v25, %v629_v57  ;;  %v4496_v20 = vmul.f32 %v4452_v29, %v629_v57 }
 0x106   : > { %v1128_v21 = vrot.slane %v1029_v10, 1  ;;  %v1373_v22 = vrot.slane %v1274_v11, 2  ;;  %v4500_v24 = vmul.f32 %v4432_v14, %v4491_v13  ;;  %v4505_v30 = vmul.f32 %v4439_v18, %v4491_v13 }
 0x107   : > { %v1680_v23 = vrot.slane %v1584_v12, 1  ;;  %v1548_v27 = vadd.f32 %v1516_v19, %v1480_v16  ;;  %v4509_v31 = vmul.f32 %v4434_v15, %v4491_v13  ;;  %v962_v10 = vmul.f32 %v4486_v6, %v4439_v18 }
 0x108   : > { %v4511_v32 = vpop.f32.mrb[8].mxu0  ;;  %v1129_v35 = vsel %vm1121_vm2, %v1127_v48, %v1128_v21  ;;  %v1131_v36 = vsel %vm1121_vm2, %v1128_v21, %v1130_v4  ;;  %v1374_v37 = vsel %vm1366_vm3, %v1372_v49, %v1373_v22  ;;  %v1376_v38 = vsel %vm1366_vm3, %v1373_v22, %v1375_v5 }
 0x109   : > { %v649_v40 = vpop.f32.mrb[9].mxu0  ;;  %v1236_v41 = vadd.f32 %v1129_v35, %v959_v45  ;;  %v1237_v42 = vadd.f32 %v1131_v36, %v960_v1  ;;  %v4518_v43 = vsel %vm1121_vm2, %v1679_v58, %v1680_v23  ;;  %v1683_v44 = vsel %vm1121_vm2, %v1680_v23, %v1682_v7 }
 0x10a   : > { %v4521_v47 = vadd.f32 %v1683_v44, %v1548_v27  ;;  %v1586_v48 = vmul.f32 %v4450_v26, %v4491_v13  ;;  %v1830_v49 = vmul.f32 %v4452_v29, %v4491_v13  ;;  %v1517_v45 = vmul.f32 %v4448_v25, %v4491_v13 }
 0x10b   : > { %v1481_v51 = vadd.f32 %v1374_v37, %v1236_v41  ;;  %v1482_v52 = vadd.f32 %v1376_v38, %v1237_v42  ;;  %v4532_v53 = vmul.f32 %v4511_v32, %v4432_v14  ;;  %v4537_v58 = vmul.f32 %v4511_v32, %v4439_v18 }
 0x10c   : > { %v3924_v54 = vpop.f32.mrb[10].mxu0  ;;  %v1684_v56 = vrot.slane %v1586_v48, 1  ;;  %v1928_v57 = vrot.slane %v1830_v49, 2  ;;  %v4544_v1 = vmul.f32 %v4511_v32, %v4434_v15  ;;  %v4548_v2 = vmul.f32 %v4511_v32, %v4454_v33 }
 0x10d   : > { %7177 = vst [vmem:[#allocation3_spill] sm:$0xff] %v4532_v53  ;;  %7178 = vst [vmem:[#allocation4_spill] sm:$0xff] %v4537_v58  ;;  %v4539_v59 = vpop.f32.mrb[11].mxu0  ;;  %v1549_v60 = vadd.f32 %v1517_v45, %v1481_v51  ;;  %v4552_v3 = vmul.f32 %v4511_v32, %v4456_v34  ;;  %v4556_v4 = vmul.f32 %v4511_v32, %v4461_v39 }
 0x10e   : > { %7179 = vst [vmem:[#allocation5_spill] sm:$0xff] %v4544_v1  ;;  %v4560_v5 = vmul.f32 %v4486_v6, %v4432_v14  ;;  %v1033_v7 = vmul.f32 %v4432_v14, %v649_v40  ;;  %v4567_v11 = vmul.f32 %v4486_v6, %v4434_v15  ;;  %v1278_v12 = vmul.f32 %v4434_v15, %v649_v40 }
 0x10f   : > { %v1518_v16 = vmul.f32 %v4486_v6, %v4448_v25  ;;  %v1587_v23 = vmul.f32 %v4486_v6, %v4450_v26  ;;  %v1588_v27 = vmul.f32 %v4450_v26, %v649_v40  ;;  %v1831_v41 = vmul.f32 %v4486_v6, %v4452_v29 }
 0x110   : > { %v4572_v19 = vpop.f32.mrb[12].mxu0  ;;  %v7067_v21 = vrot.slane %v4560_v5, 1  ;;  %v1135_v22 = vrot.slane %v1033_v7, 1  ;;  %v7066_v36 = vrot.slane %v4567_v11, 2  ;;  %v1380_v37 = vrot.slane %v1278_v12, 2 }
 0x111   : > { %7180 = vst [vmem:[#allocation6_spill] sm:$0xff] %v4572_v19  ;;  %v4578_v35 = vpop.f32.mrb[13].mxu0  ;;  %v1550_v38 = vadd.f32 %v1518_v16, %v1482_v52  ;;  %v1685_v44 = vrot.slane %v1587_v23, 1  ;;  %v1687_v48 = vrot.slane %v1588_v27, 1  ;;  %v1832_v49 = vmul.f32 %v4452_v29, %v649_v40 }
 0x112   : > { %7181 = vst [vmem:[#allocation7_spill] sm:$0xff] %v4578_v35  ;;  %v1136_v42 = vsel %vm1121_vm2, %v7067_v21, %v1135_v22  ;;  %v1381_v45 = vsel %vm1366_vm3, %v7066_v36, %v1380_v37  ;;  %v1929_v7 = vrot.slane %v1831_v41, 2  ;;  %v4591_v12 = vmul.f32 %v4456_v34, %v649_v40 }
 0x113   : > { %v1239_v51 = vadd.f32 %v1136_v42, %v962_v10  ;;  %v1686_v16 = vsel %vm1121_vm2, %v1684_v56, %v1685_v44  ;;  %v1688_v8 = vsel %vm1121_vm2, %v1685_v44, %v1687_v48  ;;  %v1931_v22 = vrot.slane %v1832_v49, 2 }
 0x114   : > { %v4593_v52 = vpop.f32.mrb[14].mxu0  ;;  %v4598_v23 = vmul.f32 %v4461_v39, %v649_v40  ;;  %v4604_v42 = vadd.f32 %v1686_v16, %v1549_v60  ;;  %v1794_v37 = vadd.f32 %v1688_v8, %v1550_v38  ;;  %v4607_v41 = vsel %vm1366_vm3, %v1928_v57, %v1929_v7 }
 0x115   : > { %7182 = vst [vmem:[#allocation8_spill] sm:$0xff] %v4593_v52  ;;  %v4600_v27 = vpop.f32.mrb[15].mxu0  ;;  %v4602_v10 = vadd.f32 %v1381_v45, %v1239_v51  ;;  %v1932_v44 = vsel %vm1366_vm3, %v1929_v7, %v1931_v22  ;;  %v4613_v48 = vmul.f32 %v3924_v54, %v4432_v14  ;;  %v4618_v49 = vmul.f32 %v3924_v54, %v4434_v15 }
 0x116   : > { %v4615_v40 = vadd.f32 %v1932_v44, %v1794_v37  ;;  %v4621_v60 = vmul.f32 %v3924_v54, %v4450_v26  ;;  %v4624_v8 = vmul.f32 %v3924_v54, %v4452_v29  ;;  %v4631_v45 = vmul.f32 %v3924_v54, %v4456_v34 }
 0x117   : > { %7183 = vst [vmem:[#allocation9_spill] sm:$0xff] %v4613_v48  ;;  %7184 = vst [vmem:[#allocation10_spill] sm:$0xff] %v4618_v49  ;;  %v4634_v7 = vmul.f32 %v3924_v54, %v4461_v39  ;;  %v4642_v44 = vmul.f32 %v4439_v18, %v4539_v59  ;;  %v4646_v0 = vmul.f32 %v4432_v14, %v4539_v59 }
 0x118   : > { %7185 = vst [vmem:[#allocation11_spill] sm:$0xff] %v4621_v60  ;;  %7186 = vst [vmem:[#allocation12_spill] sm:$0xff] %v4624_v8  ;;  %v4626_v57 = vpop.f32.mrb[16].mxu0  ;;  %v4653_v50 = vmul.f32 %v4434_v15, %v4539_v59  ;;  %v4659_v21 = vmul.f32 %v4454_v33, %v4539_v59  ;;  %v4663_v56 = vmul.f32 %v4456_v34, %v4539_v59 }
 0x119   : > { %v4636_v16 = vpop.f32.mrb[17].mxu0  ;;  %7187 = vst [vmem:[#allocation13_spill] sm:$0xff] %v4642_v44  ;;  %7188 = vst [vmem:[#allocation14_spill] sm:$0xff] %v4646_v0  ;;  %v4669_v36 = vmul.f32 %v4461_v39, %v4539_v59  ;;  %v4673_v54 = vmul.f32 %v4439_v18, %v4578_v35  ;;  %v4677_v22 = vmul.f32 %v4432_v14, %v4578_v35 }
 0x11a   : > { %7189 = vst [vmem:[#allocation15_spill] sm:$0xff] %v4653_v50  ;;  %v4681_v37 = vmul.f32 %v4434_v15, %v4578_v35  ;;  %v4689_v63 = vmul.f32 %v4593_v52, %v4439_v18  ;;  %v4693_v28 = vmul.f32 %v4593_v52, %v4432_v14  ;;  %v4697_v9 = vmul.f32 %v4593_v52, %v4434_v15 }
 0x11b   : > { %7190 = vst [vmem:[#allocation16_spill] sm:$0xff] %v4673_v54  ;;  %7191 = vst [vmem:[#allocation17_spill] sm:$0xff] %v4677_v22  ;;  %v966_v54 = vmul.f32 %v4572_v19, %v4439_v18  ;;  %v4703_v38 = vmul.f32 %v4572_v19, %v4432_v14  ;;  %v1039_v17 = vmul.f32 %v4432_v14, %v4600_v27 }
 0x11c   : > { %v4665_v55 = vpop.f32.mrb[18].mxu0  ;;  %7192 = vst [vmem:[#allocation18_spill] sm:$0xff] %v4681_v37  ;;  %7193 = vst [vmem:[#allocation19_spill] sm:$0xff] %v4689_v63  ;;  %v4711_v1 = vmul.f32 %v4572_v19, %v4434_v15  ;;  %v1284_v52 = vmul.f32 %v4434_v15, %v4600_v27  ;;  %v4720_v48 = vmul.f32 %v4572_v19, %v4450_v26 }
 0x11d   : > { %v4683_v51 = vpop.f32.mrb[19].mxu0  ;;  %7194 = vst [vmem:[#allocation20_spill] sm:$0xff] %v4693_v28  ;;  %7195 = vst [vmem:[#allocation21_spill] sm:$0xff] %v4697_v9  ;;  %v7089_v44 = vrot.slane %v4703_v38, 1  ;;  %v1145_v58 = vrot.slane %v1039_v17, 1  ;;  %v1594_v63 = vmul.f32 %v4450_v26, %v4600_v27  ;;  %v4730_v0 = vmul.f32 %v4452_v29, %v4600_v27 }
 0x11e   : > { %7196 = vst [vmem:[#allocation22_spill] sm:$0xff] %v4703_v38  ;;  %7197 = vst [vmem:[#allocation23_spill] sm:$0xff] %v4711_v1  ;;  %v7088_v22 = vrot.slane %v4711_v1, 2  ;;  %v1390_v53 = vrot.slane %v1284_v52, 2  ;;  %v7091_v60 = vrot.slane %v4720_v48, 1  ;;  %v4742_v52 = vmul.f32 %v4456_v34, %v4600_v27 }
 0x11f   : > { %7198 = vst [vmem:[#allocation24_spill] sm:$0xff] %v4730_v0  ;;  %v1146_v8 = vsel %vm1121_vm2, %v7089_v44, %v1145_v58  ;;  %v1697_v19 = vrot.slane %v1594_v63, 1  ;;  %v4746_v28 = vmul.f32 %v4461_v39, %v4600_v27  ;;  %v7203_v9 = vrot.slane %v4478_v61, 2 }
 0x120   : > { %v4715_v50 = vpop.f32.mrb[20].mxu0  ;;  %v1243_v35 = vadd.f32 %v1146_v8, %v966_v54  ;;  %v1391_v37 = vsel %vm1366_vm3, %v7088_v22, %v1390_v53  ;;  %v1791_v53 = vadd.f32 %v4518_v43, %v4480_v62  ;;  %v7200_v8 = vrot.slane %v4496_v20, 2 }
 0x121   : > { %v4724_v49 = vpop.f32.mrb[21].mxu0  ;;  %v4753_v58 = vsel %vm1121_vm2, %v7091_v60, %v1697_v19  ;;  %v7201_v54 = vrot.slane %v4469_v46, 2  ;;  %v2071_v63 = vmul.f32 %v4454_v33, %v4491_v13  ;;  %v2072_v62 = vmul.f32 %v4486_v6, %v4454_v33 }
 0x122   : > { %7199 = vst [vmem:[#allocation25_spill] sm:$0xff] %v4753_v58  ;;  %v4765_v44 = vadd.f32 %v1391_v37, %v1243_v35  ;;  %v7204_v19 = vmov %v7200_v8  ;;  %v2140_v35 = vmul.f32 %v4486_v6, %v4456_v34  ;;  %v2383_v61 = vmul.f32 %v4461_v39, %v4491_v13 }
 0x123   : > { %v1925_v22 = vsel %vm1366_vm3, %v7201_v54, %v7200_v8  ;;  %v1927_v60 = vsel %vm1366_vm3, %v7204_v19, %v7203_v9  ;;  %v2139_v8 = vmul.f32 %v4456_v34, %v4491_v13  ;;  %v2384_v9 = vmul.f32 %v4486_v6, %v4461_v39 }
 0x124   : > { %v4748_v17 = vpop.f32.mrb[22].mxu0  ;;  %7202 = vst [vmem:[#allocation26_spill] sm:$0xff] %v4765_v44  ;;  %v2035_v43 = vadd.f32 %v1925_v22, %v1791_v53  ;;  %v2036_v46 = vadd.f32 %v1927_v60, %v4521_v47  ;;  %v4787_v20 = vmul.f32 %v4626_v57, %v4432_v14  ;;  %v4791_v47 = vmul.f32 %v4626_v57, %v4434_v15 }
 0x125   : > { %v4763_v27 = vpop.f32.mrb[23].mxu0  ;;  %v2235_v53 = vrot.slane %v2139_v8, 1  ;;  %v2236_v54 = vrot.slane %v2140_v35, 1  ;;  %v2479_v44 = vrot.slane %v2383_v61, 2  ;;  %v2480_v1 = vrot.slane %v2384_v9, 2 }
 0x126   : > { %v2103_v22 = vadd.f32 %v2071_v63, %v2035_v43  ;;  %v2104_v37 = vadd.f32 %v2072_v62, %v2036_v46  ;;  %v7205_v0 = vrot.slane %v4591_v12, 1  ;;  %v4805_v63 = vmul.f32 %v4626_v57, %v4450_v26 }
 0x127   : > { %v2237_v38 = vsel %vm1121_vm2, %v2235_v53, %v2236_v54  ;;  %v4809_v62 = vmul.f32 %v4626_v57, %v4452_v29  ;;  %v2481_v8 = vsel %vm1366_vm3, %v2479_v44, %v2480_v1  ;;  %v7206_v35 = vrot.slane %v4598_v23, 2 }
 0x128   : > { %v4793_v60 = vpop.f32.mrb[24].mxu0  ;;  %v2239_v58 = vsel %vm1121_vm2, %v2236_v54, %v7205_v0  ;;  %v2347_v43 = vadd.f32 %v2237_v38, %v2103_v22  ;;  %v4821_v53 = vmul.f32 %v4626_v57, %v4456_v34  ;;  %v4825_v38 = vmul.f32 %v4626_v57, %v4461_v39 }
 0x129   : > { %v4795_v19 = vpop.f32.mrb[25].mxu0  ;;  %v2348_v46 = vadd.f32 %v2239_v58, %v2104_v37  ;;  %v2483_v61 = vsel %vm1366_vm3, %v2480_v1, %v7206_v35  ;;  %v4832_v22 = vmul.f32 %v4432_v14, %v4636_v16  ;;  %v4837_v54 = vmul.f32 %v4439_v18, %v4636_v16 }
 0x12a   : > { %v2591_v44 = vadd.f32 %v2481_v8, %v2347_v43  ;;  %v4841_v57 = vmul.f32 %v4434_v15, %v4636_v16  ;;  %v2037_v43 = vadd.f32 %v4607_v41, %v4604_v42  ;;  %v2106_v35 = vadd.f32 %v4659_v21, %v4615_v40 }
 0x12b   : > { %v2592_v23 = vadd.f32 %v2483_v61, %v2348_v46  ;;  %v7207_v61 = vrot.slane %v4663_v56, 1  ;;  %v7208_v12 = vrot.slane %v4552_v3, 1  ;;  %v7209_v41 = vrot.slane %v4631_v45, 1 }
 0x12c   : > { %v4815_v9 = vpop.f32.mrb[26].mxu0  ;;  %v2105_v42 = vadd.f32 %v4548_v2, %v2037_v43  ;;  %v4875_v56 = vmul.f32 %v4434_v15, %v4683_v51  ;;  %v4879_v43 = vmul.f32 %v4715_v50, %v4432_v14  ;;  %v4906_v2 = vmul.f32 %v4665_v55, %v4432_v14 }
 0x12d   : > { %v4827_v58 = vpop.f32.mrb[27].mxu0  ;;  %v2623_v46 = vpack.c.bf16 %v2592_v23, %v2591_v44  ;;  %v2242_v0 = vsel %vm1121_vm2, %v7208_v12, %v7207_v61  ;;  %v7210_v44 = vmov %v7207_v61  ;;  %v2484_v12 = vrot.slane %v4556_v4, 2 }
 0x12e   : > { %v2244_v21 = vsel %vm1121_vm2, %v7210_v44, %v7209_v41  ;;  %v2485_v23 = vrot.slane %v4669_v36, 2  ;;  %v4870_v61 = vmul.f32 %v4432_v14, %v4683_v51  ;;  %v2349_v45 = vadd.f32 %v2242_v0, %v2105_v42  ;;  %7212 = vst [vmem:[#allocation28_spill] sm:$0xff] %v4875_v56  ;;  %7213 = vst [vmem:[#allocation29_spill] sm:$0xff] %v4879_v43 }
 0x12f   : > { %4017 = vmatprep.mubr.msk.bf16.mxu1 %vm2640_vm4, %v2623_v46  ;;  %v2350_v3 = vadd.f32 %v2244_v21, %v2106_v35  ;;  %v7214_v4 = vrot.slane %v4634_v7, 2  ;;  %v4887_v35 = vmul.f32 %v4439_v18, %v4683_v51  ;;  %v4891_v0 = vmul.f32 %v4715_v50, %v4439_v18  ;;  %7220 = vst [vmem:[#allocation35_spill] sm:$0xff] %v4906_v2 }
 0x130   : > { %v4853_v37 = vpop.f32.mrb[28].mxu0  ;;  %7211 = vst [vmem:[#allocation27_spill] sm:$0xff] %v4870_v61  ;;  %v2486_v46 = vsel %vm1366_vm3, %v2484_v12, %v2485_v23  ;;  %v4898_v12 = vmul.f32 %v4715_v50, %v4434_v15  ;;  %v1600_v6 = vmul.f32 %v4450_v26, %v4724_v49  ;;  %v970_v8 = vmul.f32 %v4665_v55, %v4439_v18 }
 0x131   : > { %v4863_v40 = vpop.f32.mrb[29].mxu0  ;;  %v2488_v36 = vsel %vm1366_vm3, %v2485_v23, %v7214_v4  ;;  %7215 = vst [vmem:[#allocation30_spill] sm:$0xff] %v4887_v35  ;;  %7216 = vst [vmem:[#allocation31_spill] sm:$0xff] %v4891_v0  ;;  %v2593_v41 = vadd.f32 %v2486_v46, %v2349_v45  ;;  %v1045_v45 = vmul.f32 %v4432_v14, %v4724_v49  ;;  %v7226_v0 = vrot.slane %v4906_v2, 1 }
 0x132   : > { %v2594_v44 = vadd.f32 %v2488_v36, %v2350_v3  ;;  %7218 = vst [vmem:[#allocation33_spill] sm:$0xff] %v4898_v12  ;;  %v4912_v46 = vmul.f32 %v4665_v55, %v4434_v15  ;;  %v1290_v36 = vmul.f32 %v4434_v15, %v4724_v49  ;;  %v4918_v23 = vmul.f32 %v4665_v55, %v4450_v26 }
 0x133   : > { %v1155_v21 = vrot.slane %v1045_v45, 1  ;;  %v1707_v35 = vrot.slane %v1600_v6, 1  ;;  %v7227_v61 = vrot.slane %v4560_v5, 1  ;;  %v7228_v2 = vrot.slane %v4500_v24, 1 }
 0x134   : > { %v4893_v42 = vpop.f32.mrb[30].mxu0  ;;  %v2624_v3 = vpack.c.bf16 %v2594_v44, %v2593_v41  ;;  %7221 = vst [vmem:[#allocation36_spill] sm:$0xff] %v4912_v46  ;;  %7222 = vst [vmem:[#allocation37_spill] sm:$0xff] %v4918_v23  ;;  %v4925_v41 = vmul.f32 %v4452_v29, %v4724_v49  ;;  %v7100_v13 = vrot.slane %v4912_v46, 2  ;;  %v1400_v4 = vrot.slane %v1290_v36, 2  ;;  %v7236_v36 = vld [vmem:[#allocation6_spill] sm:$0xff] }
 0x135   : > { %7217 = vst [vmem:[#allocation32_spill] sm:$0xff] %v4893_v42  ;;  %v4900_v7 = vpop.f32.mrb[31].mxu0  ;;  %v1156_v43 = vsel %vm1121_vm2, %v7226_v0, %v1155_v21  ;;  %v7101_v56 = vrot.slane %v4918_v23, 1  ;;  %v1134_v0 = vsel %vm1121_vm2, %v7228_v2, %v7227_v61  ;;  %v7230_v21 = vrot.slane %v4567_v11, 2 }
 0x136   : > { %7219 = vst [vmem:[#allocation34_spill] sm:$0xff] %v4900_v7  ;;  %7223 = vst [vmem:[#allocation38_spill] sm:$0xff] %v4925_v41  ;;  %4018 = vmatmul.mubr.msk.bf16.vlgmr.msra.gmra.mrb[4].mxu1 %vm2640_vm4, %v2624_v3  ;;  %v4942_v3 = vmul.f32 %v4456_v34, %v4724_v49  ;;  %v1247_v1 = vadd.f32 %v1156_v43, %v970_v8  ;;  %v1401_v12 = vsel %vm1366_vm3, %v7100_v13, %v1400_v4 }
 0x137   : > { %v4956_v6 = vsel %vm1121_vm2, %v7101_v56, %v1707_v35  ;;  %v4960_v8 = vmul.f32 %v4461_v39, %v4724_v49  ;;  %v1238_v43 = vadd.f32 %v1134_v0, %v4505_v30  ;;  %v7231_v4 = vrot.slane %v4509_v31, 2 }
 0x138   : > { %v4927_v44 = vpop.f32.mrb[32].mxu0  ;;  %7229 = vst [vmem:[#allocation41_spill] sm:$0xff] %v4956_v6  ;;  %v4970_v61 = vadd.f32 %v1401_v12, %v1247_v1  ;;  %v1519_v2 = vmul.f32 %v4511_v32, %v4448_v25  ;;  %v1520_v35 = vmul.f32 %v4448_v25, %v4539_v59  ;;  %v1589_v49 = vmul.f32 %v4511_v32, %v4450_v26 }
 0x139   : > { %7224 = vst [vmem:[#allocation39_spill] sm:$0xff] %v4927_v44  ;;  %v4934_v45 = vpop.f32.mrb[33].mxu0  ;;  %v1379_v5 = vsel %vm1366_vm3, %v7231_v4, %v7230_v21  ;;  %v1590_v31 = vmul.f32 %v4450_v26, %v4539_v59  ;;  %v1833_v0 = vmul.f32 %v4511_v32, %v4452_v29  ;;  %v1834_v1 = vmul.f32 %v4452_v29, %v4539_v59  ;;  %v7235_v4 = vld [vmem:[#allocation7_spill] sm:$0xff] }
 0x13a   : > { %7225 = vst [vmem:[#allocation40_spill] sm:$0xff] %v4934_v45  ;;  %7233 = vst [vmem:[#allocation43_spill] sm:$0xff] %v4970_v61  ;;  %v1483_v11 = vadd.f32 %v1379_v5, %v1238_v43  ;;  %v1552_v12 = vadd.f32 %v1520_v35, %v4602_v10  ;;  %v1689_v21 = vrot.slane %v1589_v49, 1  ;;  %v2075_v13 = vmul.f32 %v4454_v33, %v7235_v4 }
 0x13b   : > { %v2076_v56 = vmul.f32 %v7236_v36, %v4454_v33  ;;  %v1690_v43 = vrot.slane %v1590_v31, 1  ;;  %v1933_v5 = vrot.slane %v1833_v0, 2  ;;  %v2145_v32 = vmul.f32 %v4456_v34, %v7235_v4 }
 0x13c   : > { %v4968_v24 = vpop.f32.mrb[34].mxu0  ;;  %v2146_v59 = vmul.f32 %v7236_v36, %v4456_v34  ;;  %v2389_v10 = vmul.f32 %v4461_v39, %v7235_v4  ;;  %v2390_v35 = vmul.f32 %v7236_v36, %v4461_v39 }
 0x13d   : > { %7232 = vst [vmem:[#allocation42_spill] sm:$0xff] %v4968_v24  ;;  %v4978_v30 = vpop.f32.mrb[35].mxu0  ;;  %v1934_v24 = vrot.slane %v1834_v1, 2  ;;  %v2245_v7 = vrot.slane %v2145_v32, 1 }
 0x13e   : > { %7234 = vst [vmem:[#allocation44_spill] sm:$0xff] %v4978_v30  ;;  %v1551_v30 = vadd.f32 %v1519_v2, %v1483_v11  ;;  %v1691_v2 = vsel %vm1121_vm2, %v1689_v21, %v1690_v43  ;;  %v7239_v11 = vld [vmem:[#allocation11_spill] sm:$0xff]  ;;  %v2246_v41 = vrot.slane %v2146_v59, 1  ;;  %v2489_v6 = vrot.slane %v2389_v10, 2 }
 0x13f   : > { %v7240_v31 = vrot.slane %v7239_v11, 1  ;;  %v1935_v1 = vsel %vm1366_vm3, %v1933_v5, %v1934_v24  ;;  %v2490_v23 = vrot.slane %v2390_v35, 2  ;;  %v5017_v21 = vmul.f32 %v4748_v17, %v4434_v15 }
 0x140   : > { %v4991_v61 = vpop.f32.mrb[36].mxu0  ;;  %v1795_v42 = vadd.f32 %v1691_v2, %v1551_v30  ;;  %v7248_v35 = vrot.slane %v4746_v28, 2  ;;  %v5048_v28 = vmul.f32 %v4748_v17, %v4461_v39 }
 0x141   : > { %7237 = vst [vmem:[#allocation7_spill] sm:$0xff] %v4991_v61  ;;  %v5001_v49 = vpop.f32.mrb[37].mxu0  ;;  %v1693_v0 = vsel %vm1121_vm2, %v1690_v43, %v7240_v31  ;;  %v7241_v61 = vld [vmem:[#allocation12_spill] sm:$0xff]  ;;  %v2491_v10 = vsel %vm1366_vm3, %v2489_v6, %v2490_v23  ;;  %v5059_v31 = vmul.f32 %v4439_v18, %v4763_v27 }
 0x142   : > { %7238 = vst [vmem:[#allocation6_spill] sm:$0xff] %v5001_v49  ;;  %v7242_v46 = vrot.slane %v7241_v61, 2  ;;  %v1796_v44 = vadd.f32 %v1693_v0, %v1552_v12  ;;  %v5013_v49 = vmul.f32 %v4748_v17, %v4432_v14  ;;  %7244 = vst [vmem:[#allocation12_spill] sm:$0xff] %v5017_v21  ;;  %v2039_v5 = vadd.f32 %v1935_v1, %v1795_v42 }
 0x143   : > { %v2493_v2 = vsel %vm1366_vm3, %v2490_v23, %v7248_v35  ;;  %7250 = vst [vmem:[#allocation48_spill] sm:$0xff] %v5059_v31 }
 0x144   : > { %v1937_v45 = vsel %vm1366_vm3, %v1934_v24, %v7242_v46  ;;  %7243 = vst [vmem:[#allocation11_spill] sm:$0xff] %v5013_v49  ;;  %v5019_v43 = vpop.f32.mrb[38].mxu0  ;;  %v2247_v46 = vsel %vm1121_vm2, %v2245_v7, %v2246_v41  ;;  %v7246_v24 = vrot.slane %v4742_v52, 1  ;;  %v2107_v42 = vadd.f32 %v2075_v13, %v2039_v5 }
 0x145   : > { %7245 = vst [vmem:[#allocation45_spill] sm:$0xff] %v5019_v43  ;;  %v2040_v61 = vadd.f32 %v1937_v45, %v1796_v44  ;;  %v5025_v12 = vpop.f32.mrb[39].mxu0  ;;  %v5035_v7 = vmul.f32 %v4748_v17, %v4450_v26  ;;  %v5039_v52 = vmul.f32 %v4748_v17, %v4452_v29  ;;  %v5044_v45 = vmul.f32 %v4748_v17, %v4456_v34 }
 0x146   : > { %v2249_v30 = vsel %vm1121_vm2, %v2246_v41, %v7246_v24  ;;  %7247 = vst [vmem:[#allocation46_spill] sm:$0xff] %v5025_v12  ;;  %v5052_v13 = vmul.f32 %v4432_v14, %v4763_v27  ;;  %v2351_v23 = vadd.f32 %v2247_v46, %v2107_v42  ;;  %v7252_v46 = vld [vmem:[#allocation14_spill] sm:$0xff]  ;;  %v7254_v42 = vld [vmem:[#allocation3_spill] sm:$0xff]  ;;  %v7256_v41 = vld [vmem:[#allocation9_spill] sm:$0xff] }
 0x147   : > { %v2108_v44 = vadd.f32 %v2076_v56, %v2040_v61  ;;  %v7257_v59 = vrot.slane %v7256_v41, 1  ;;  %v7266_v41 = vld [vmem:[#allocation10_spill] sm:$0xff] }
 0x148   : > { %v5054_v56 = vpop.f32.mrb[40].mxu0  ;;  %v2595_v24 = vadd.f32 %v2491_v10, %v2351_v23  ;;  %v7261_v10 = vld [vmem:[#allocation15_spill] sm:$0xff]  ;;  %v7263_v23 = vld [vmem:[#allocation5_spill] sm:$0xff] }
 0x149   : > { %7249 = vst [vmem:[#allocation47_spill] sm:$0xff] %v5054_v56  ;;  %v2352_v6 = vadd.f32 %v2249_v30, %v2108_v44  ;;  %v5061_v0 = vpop.f32.mrb[41].mxu0  ;;  %v7253_v30 = vrot.slane %v7252_v46, 1  ;;  %v7255_v44 = vrot.slane %v7254_v42, 1  ;;  %v7260_v56 = vld [vmem:[#allocation13_spill] sm:$0xff] }
 0x14a   : > { %7251 = vst [vmem:[#allocation49_spill] sm:$0xff] %v5061_v0  ;;  %v7259_v0 = vld [vmem:[#allocation4_spill] sm:$0xff] }
 0x14b   : > { %v2596_v35 = vadd.f32 %v2493_v2, %v2352_v6  ;;  %v1139_v11 = vsel %vm1121_vm2, %v7255_v44, %v7253_v30  ;;  %v7258_v32 = vmov %v7253_v30  ;;  %v7262_v2 = vrot.slane %v7261_v10, 2 }
 0x14c   : > { %v1141_v1 = vsel %vm1121_vm2, %v7258_v32, %v7257_v59  ;;  %v1240_v5 = vadd.f32 %v1139_v11, %v7259_v0  ;;  %v7264_v6 = vrot.slane %v7263_v23, 2  ;;  %v5085_v12 = vpop.f32.mrb[42].mxu0  ;;  %v7267_v44 = vrot.slane %v7266_v41, 2  ;;  %v7270_v23 = vld [vmem:[#allocation8_spill] sm:$0xff] }
 0x14d   : > { %v1241_v61 = vadd.f32 %v1141_v1, %v7260_v56  ;;  %7265 = vst [vmem:[#allocation14_spill] sm:$0xff] %v5085_v12  ;;  %v2625_v30 = vpack.c.bf16 %v2596_v35, %v2595_v24  ;;  %v7268_v46 = vmov %v7262_v2  ;;  %v1521_v59 = vmul.f32 %v4448_v25, %v7235_v4  ;;  %v5096_v11 = vpop.f32.mrb[43].mxu0 }
 0x14e   : > { %v1384_v42 = vsel %vm1366_vm3, %v7264_v6, %v7262_v2  ;;  %v1386_v32 = vsel %vm1366_vm3, %v7268_v46, %v7267_v44  ;;  %v1522_v56 = vmul.f32 %v7236_v36, %v4448_v25  ;;  %7269 = vst [vmem:[#allocation3_spill] sm:$0xff] %v5096_v11  ;;  %v1592_v2 = vmul.f32 %v4450_v26, %v7235_v4 }
 0x14f   : > { %v1485_v0 = vadd.f32 %v1384_v42, %v1240_v5  ;;  %v1486_v1 = vadd.f32 %v1386_v32, %v1241_v61  ;;  %v1836_v24 = vmul.f32 %v4452_v29, %v7235_v4  ;;  %4021 = vmatprep.mubr.msk.bf16.mxu1 %vm2640_vm4, %v2625_v30  ;;  %v5105_v35 = vmul.f32 %v4434_v15, %v4763_v27 }
 0x150   : > { %v1837_v10 = vmul.f32 %v7236_v36, %v4452_v29  ;;  %v2077_v6 = vmul.f32 %v7270_v23, %v4454_v33  ;;  %v2148_v5 = vmul.f32 %v7270_v23, %v4456_v34  ;;  %v1694_v41 = vrot.slane %v1592_v2, 1  ;;  %v5113_v4 = vpop.f32.mrb[44].mxu0 }
 0x151   : > { %v1553_v61 = vadd.f32 %v1521_v59, %v1485_v0  ;;  %v1554_v42 = vadd.f32 %v1522_v56, %v1486_v1  ;;  %v1938_v44 = vrot.slane %v1836_v24, 2  ;;  %7271 = vst [vmem:[#allocation9_spill] sm:$0xff] %v5113_v4  ;;  %v2078_v46 = vmul.f32 %v4454_v33, %v4636_v16  ;;  %v5121_v17 = vpop.f32.mrb[45].mxu0  ;;  %v7274_v56 = vld [vmem:[#allocation25_spill] sm:$0xff]  ;;  %v7275_v4 = vld [vmem:[#allocation24_spill] sm:$0xff] }
 0x152   : > { %v1939_v30 = vrot.slane %v1837_v10, 2  ;;  %v2149_v32 = vmul.f32 %v4456_v34, %v4636_v16  ;;  %v2392_v36 = vmul.f32 %v7270_v23, %v4461_v39  ;;  %7272 = vst [vmem:[#allocation4_spill] sm:$0xff] %v5121_v17  ;;  %v7273_v12 = vrot.slane %v4720_v48, 1 }
 0x153   : > { %v1798_v0 = vadd.f32 %v7274_v56, %v1554_v42  ;;  %v2250_v1 = vrot.slane %v2148_v5, 1  ;;  %v2393_v2 = vmul.f32 %v4461_v39, %v4636_v16  ;;  %v7276_v11 = vrot.slane %v7275_v4, 2 }
 0x154   : > { %v1696_v59 = vsel %vm1121_vm2, %v1694_v41, %v7273_v12  ;;  %v1940_v10 = vsel %vm1366_vm3, %v1938_v44, %v1939_v30  ;;  %v2251_v31 = vrot.slane %v2149_v32, 1  ;;  %v2494_v17 = vrot.slane %v2392_v36, 2 }
 0x155   : > { %v1797_v24 = vadd.f32 %v1696_v59, %v1553_v61  ;;  %v1942_v43 = vsel %vm1366_vm3, %v1939_v30, %v7276_v11  ;;  %v2495_v49 = vrot.slane %v2393_v2, 2  ;;  %v5135_v48 = vmul.f32 %v4432_v14, %v4795_v19 }
 0x156   : > { %v2042_v21 = vadd.f32 %v1942_v43, %v1798_v0  ;;  %v2252_v5 = vsel %vm1121_vm2, %v2250_v1, %v2251_v31  ;;  %v7277_v42 = vrot.slane %v4821_v53, 1  ;;  %v5143_v41 = vmul.f32 %v4434_v15, %v4795_v19  ;;  %v7286_v53 = vld [vmem:[#allocation22_spill] sm:$0xff] }
 0x157   : > { %v2041_v12 = vadd.f32 %v1940_v10, %v1797_v24  ;;  %v2496_v44 = vsel %vm1366_vm3, %v2494_v17, %v2495_v49  ;;  %v7279_v4 = vrot.slane %v4825_v38, 2  ;;  %v5152_v36 = vmul.f32 %v4439_v18, %v4795_v19 }
 0x158   : > { %v2254_v61 = vsel %vm1121_vm2, %v2251_v31, %v7277_v42  ;;  %7278 = vst [vmem:[#allocation13_spill] sm:$0xff] %v5143_v41  ;;  %v2110_v43 = vadd.f32 %v2078_v46, %v2042_v21  ;;  %v5157_v31 = vmul.f32 %v4815_v9, %v4432_v14  ;;  %v5162_v17 = vmul.f32 %v4815_v9, %v4439_v18  ;;  %v7292_v21 = vld [vmem:[#allocation18_spill] sm:$0xff] }
 0x159   : > { %v2498_v30 = vsel %vm1366_vm3, %v2495_v49, %v7279_v4  ;;  %v2109_v32 = vadd.f32 %v2077_v6, %v2041_v12  ;;  %v5166_v38 = vmul.f32 %v4793_v60, %v4432_v14  ;;  %v5170_v6 = vmul.f32 %v4815_v9, %v4434_v15 }
 0x15a   : > { %7280 = vst [vmem:[#allocation15_spill] sm:$0xff] %v5157_v31  ;;  %v2354_v59 = vadd.f32 %v2254_v61, %v2110_v43  ;;  %7281 = vst [vmem:[#allocation5_spill] sm:$0xff] %v5162_v17  ;;  %v1051_v46 = vmul.f32 %v4432_v14, %v4827_v58  ;;  %v5176_v56 = vmul.f32 %v4793_v60, %v4434_v15 }
 0x15b   : > { %v2353_v49 = vadd.f32 %v2252_v5, %v2109_v32  ;;  %7282 = vst [vmem:[#allocation10_spill] sm:$0xff] %v5170_v6  ;;  %v974_v2 = vmul.f32 %v4793_v60, %v4439_v18  ;;  %v1296_v24 = vmul.f32 %v4434_v15, %v4827_v58  ;;  %v7123_v12 = vrot.slane %v5166_v38, 1 }
 0x15c   : > { %7283 = vst [vmem:[#allocation8_spill] sm:$0xff] %v5176_v56  ;;  %v2598_v0 = vadd.f32 %v2498_v30, %v2354_v59  ;;  %v1165_v5 = vrot.slane %v1051_v46, 1  ;;  %v5186_v42 = vmul.f32 %v4793_v60, %v4450_v26  ;;  %v7124_v61 = vrot.slane %v5176_v56, 2  ;;  %v5203_v46 = vpop.f32.mrb[46].mxu0 }
 0x15d   : > { %v2597_v10 = vadd.f32 %v2496_v44, %v2353_v49  ;;  %v1410_v43 = vrot.slane %v1296_v24, 2  ;;  %v1606_v4 = vmul.f32 %v4450_v26, %v4827_v58  ;;  %v5193_v30 = vmul.f32 %v4452_v29, %v4827_v58  ;;  %7284 = vst [vmem:[#allocation25_spill] sm:$0xff] %v5203_v46 }
 0x15e   : > { %v1166_v59 = vsel %vm1121_vm2, %v7123_v12, %v1165_v5  ;;  %v5201_v49 = vmul.f32 %v4456_v34, %v4827_v58  ;;  %v5215_v44 = vmul.f32 %v4461_v39, %v4827_v58  ;;  %v7287_v12 = vrot.slane %v7286_v53, 1  ;;  %v7296_v58 = vld [vmem:[#allocation16_spill] sm:$0xff] }
 0x15f   : > { %v2626_v32 = vpack.c.bf16 %v2598_v0, %v2597_v10  ;;  %v1251_v24 = vadd.f32 %v1166_v59, %v974_v2  ;;  %v1411_v1 = vsel %vm1366_vm3, %v7124_v61, %v1410_v43  ;;  %v1717_v0 = vrot.slane %v1606_v4, 1  ;;  %v5209_v10 = vpop.f32.mrb[47].mxu0  ;;  %v7288_v2 = vld [vmem:[#allocation17_spill] sm:$0xff]  ;;  %v7290_v43 = vld [vmem:[#allocation23_spill] sm:$0xff] }
 0x160   : > { %7285 = vst [vmem:[#allocation24_spill] sm:$0xff] %v5209_v10  ;;  %v7289_v59 = vrot.slane %v7288_v2, 1  ;;  %v7291_v61 = vrot.slane %v7290_v43, 2  ;;  %v7293_v4 = vrot.slane %v7292_v21, 2  ;;  %v1523_v53 = vmul.f32 %v7270_v23, %v4448_v25 }
 0x161   : > { %4022 = vmatmul.mubr.msk.bf16.gmra.mrb[8].mxu1 %vm2640_vm4, %v2626_v32  ;;  %v5227_v46 = vadd.f32 %v1411_v1, %v1251_v24  ;;  %v7295_v32 = vrot.slane %v5186_v42, 1  ;;  %v1595_v21 = vmul.f32 %v7270_v23, %v4450_v26  ;;  %v1596_v1 = vmul.f32 %v4450_v26, %v4636_v16 }
 0x162   : > { %v1144_v11 = vsel %vm1121_vm2, %v7289_v59, %v7287_v12  ;;  %v1389_v10 = vsel %vm1366_vm3, %v7293_v4, %v7291_v61  ;;  %v1524_v12 = vmul.f32 %v4448_v25, %v4636_v16  ;;  %v1839_v61 = vmul.f32 %v7270_v23, %v4452_v29  ;;  %v7297_v59 = vld [vmem:[#allocation26_spill] sm:$0xff] }
 0x163   : > { %7294 = vst [vmem:[#allocation22_spill] sm:$0xff] %v5227_v46  ;;  %v5232_v5 = vsel %vm1121_vm2, %v7295_v32, %v1717_v0  ;;  %v1242_v6 = vadd.f32 %v1144_v11, %v7296_v58  ;;  %v1840_v0 = vmul.f32 %v4452_v29, %v4636_v16  ;;  %v2079_v11 = vmul.f32 %v4454_v33, %v4683_v51 }
 0x164   : > { %v2080_v2 = vmul.f32 %v4665_v55, %v4454_v33  ;;  %v1556_v43 = vadd.f32 %v1524_v12, %v7297_v59  ;;  %v1699_v4 = vrot.slane %v1595_v21, 1  ;;  %v1700_v32 = vrot.slane %v1596_v1, 1 }
 0x165   : > { %v1487_v24 = vadd.f32 %v1389_v10, %v1242_v6  ;;  %v1943_v58 = vrot.slane %v1839_v61, 2  ;;  %v1944_v31 = vrot.slane %v1840_v0, 2  ;;  %v2151_v23 = vmul.f32 %v4456_v34, %v4683_v51 }
 0x166   : > { %v2152_v6 = vmul.f32 %v4665_v55, %v4456_v34  ;;  %v1701_v16 = vsel %vm1121_vm2, %v1699_v4, %v1700_v32  ;;  %v7298_v10 = vrot.slane %v4805_v63, 1  ;;  %v2395_v12 = vmul.f32 %v4461_v39, %v4683_v51 }
 0x167   : > { %v1555_v17 = vadd.f32 %v1523_v53, %v1487_v24  ;;  %v2396_v21 = vmul.f32 %v4665_v55, %v4461_v39  ;;  %v1945_v61 = vsel %vm1366_vm3, %v1943_v58, %v1944_v31  ;;  %v7299_v24 = vrot.slane %v4809_v62, 2 }
 0x168   : > { %v1703_v46 = vsel %vm1121_vm2, %v1700_v32, %v7298_v10  ;;  %v2255_v59 = vrot.slane %v2151_v23, 1  ;;  %v2256_v4 = vrot.slane %v2152_v6, 1  ;;  %v2499_v41 = vrot.slane %v2395_v12, 2 }
 0x169   : > { %v1799_v53 = vadd.f32 %v1701_v16, %v1555_v17  ;;  %v1800_v1 = vadd.f32 %v1703_v46, %v1556_v43  ;;  %v1947_v0 = vsel %vm1366_vm3, %v1944_v31, %v7299_v24  ;;  %v2500_v63 = vrot.slane %v2396_v21, 2 }
 0x16a   : > { %v5270_v10 = vmul.f32 %v4853_v37, %v4432_v14  ;;  %v5274_v17 = vmul.f32 %v4853_v37, %v4434_v15  ;;  %v2257_v46 = vsel %vm1121_vm2, %v2255_v59, %v2256_v4  ;;  %v7301_v62 = vrot.slane %v4942_v3, 1 }
 0x16b   : > { %v2043_v56 = vadd.f32 %v1945_v61, %v1799_v53  ;;  %v2044_v32 = vadd.f32 %v1947_v0, %v1800_v1  ;;  %v2501_v43 = vsel %vm1366_vm3, %v2499_v41, %v2500_v63  ;;  %v7302_v58 = vrot.slane %v4960_v8, 2  ;;  %v5302_v1 = vpop.f32.mrb[48].mxu0 }
 0x16c   : > { %7300 = vst [vmem:[#allocation17_spill] sm:$0xff] %v5274_v17  ;;  %v2259_v31 = vsel %vm1121_vm2, %v2256_v4, %v7301_v62  ;;  %v5288_v53 = vmul.f32 %v4853_v37, %v4450_v26  ;;  %v5292_v3 = vmul.f32 %v4853_v37, %v4452_v29  ;;  %v5296_v41 = vmul.f32 %v4853_v37, %v4456_v34  ;;  %v5309_v24 = vpop.f32.mrb[49].mxu0  ;;  %v7323_v17 = vld [vmem:[#allocation34_spill] sm:$0xff] }
 0x16d   : > { %v2503_v23 = vsel %vm1366_vm3, %v2500_v63, %v7302_v58  ;;  %v2111_v12 = vadd.f32 %v2079_v11, %v2043_v56  ;;  %v2112_v21 = vadd.f32 %v2080_v2, %v2044_v32  ;;  %v5300_v8 = vmul.f32 %v4853_v37, %v4461_v39  ;;  %7303 = vst [vmem:[#allocation23_spill] sm:$0xff] %v5302_v1  ;;  %v5318_v63 = vpop.f32.mrb[50].mxu0 }
 0x16e   : > { %v5307_v61 = vmul.f32 %v4432_v14, %v4863_v40  ;;  %7304 = vst [vmem:[#allocation18_spill] sm:$0xff] %v5309_v24  ;;  %v5316_v37 = vmul.f32 %v4439_v18, %v4863_v40  ;;  %7306 = vst [vmem:[#allocation26_spill] sm:$0xff] %v5318_v63  ;;  %v7307_v58 = vrot.slane %v4832_v22, 1  ;;  %v7310_v2 = vrot.slane %v4787_v20, 1  ;;  %v7317_v20 = vld [vmem:[#allocation19_spill] sm:$0xff] }
 0x16f   : > { %v2355_v56 = vadd.f32 %v2257_v46, %v2111_v12  ;;  %v2356_v11 = vadd.f32 %v2259_v31, %v2112_v21  ;;  %v7308_v12 = vld [vmem:[#allocation20_spill] sm:$0xff]  ;;  %v7312_v16 = vrot.slane %v4841_v57, 2  ;;  %v1842_v57 = vmul.f32 %v4452_v29, %v4683_v51 }
 0x170   : > { %7305 = vst [vmem:[#allocation16_spill] sm:$0xff] %v5316_v37  ;;  %v7309_v21 = vrot.slane %v7308_v12, 1  ;;  %v7311_v4 = vmov %v7307_v58  ;;  %v5382_v37 = vmul.f32 %v4432_v14, %v7323_v17 }
 0x171   : > { %v2599_v32 = vadd.f32 %v2501_v43, %v2355_v56  ;;  %v2600_v46 = vadd.f32 %v2503_v23, %v2356_v11  ;;  %v1151_v59 = vsel %vm1121_vm2, %v7311_v4, %v7310_v2  ;;  %v7313_v43 = vld [vmem:[#allocation21_spill] sm:$0xff]  ;;  %v7315_v11 = vrot.slane %v4791_v47, 2  ;;  %v4011_v4 = vpop.f32.mrb[0].mxu1 }
 0x172   : > { %v1149_v0 = vsel %vm1121_vm2, %v7309_v21, %v7307_v58  ;;  %v7314_v23 = vrot.slane %v7313_v43, 2  ;;  %v7316_v31 = vmov %v7312_v16  ;;  %v1245_v22 = vadd.f32 %v1151_v59, %v4837_v54  ;;  %7324 = vst [vmem:[#allocation20_spill] sm:$0xff] %v5382_v37 }
 0x173   : > { %v1396_v12 = vsel %vm1366_vm3, %v7316_v31, %v7315_v11  ;;  %v2627_v62 = vpack.c.bf16 %v2600_v46, %v2599_v32  ;;  %v1244_v21 = vadd.f32 %v1149_v0, %v7317_v20  ;;  %v5347_v2 = vmul.f32 %v4434_v15, %v4863_v40  ;;  %v935_v46 = vpop.f32.mrb[1].mxu1 }
 0x174   : > { %v1394_v56 = vsel %vm1366_vm3, %v7314_v23, %v7312_v16  ;;  %v1525_v16 = vmul.f32 %v4448_v25, %v4683_v51  ;;  %v1598_v47 = vmul.f32 %v4450_v26, %v4683_v51  ;;  %v1490_v0 = vadd.f32 %v1396_v12, %v1245_v22  ;;  %v7318_v12 = vld [vmem:[#allocation37_spill] sm:$0xff]  ;;  %v4014_v4 = vpop.f32.mrb[2].mxu1 }
 0x175   : > { %4025 = vmatprep.mubr.msk.bf16.mxu1 %vm2640_vm4, %v2627_v62  ;;  %v1489_v32 = vadd.f32 %v1394_v56, %v1244_v21  ;;  %v1526_v54 = vmul.f32 %v4665_v55, %v4448_v25  ;;  %v1843_v59 = vmul.f32 %v4665_v55, %v4452_v29  ;;  %v1948_v43 = vrot.slane %v1842_v57, 2 }
 0x176   : > { %v1704_v31 = vrot.slane %v1598_v47, 1  ;;  %v2081_v23 = vmul.f32 %v4715_v50, %v4454_v33  ;;  %v2154_v51 = vmul.f32 %v4715_v50, %v4456_v34  ;;  %v2155_v56 = vmul.f32 %v4456_v34, %v4763_v27 }
 0x177   : > { %v1557_v11 = vadd.f32 %v1525_v16, %v1489_v32  ;;  %v1558_v20 = vadd.f32 %v1526_v54, %v1490_v0  ;;  %v1949_v62 = vrot.slane %v1843_v59, 2  ;;  %v7319_v21 = vrot.slane %v7318_v12, 1  ;;  %v7320_v32 = vld [vmem:[#allocation41_spill] sm:$0xff]  ;;  %v7321_v59 = vld [vmem:[#allocation38_spill] sm:$0xff] }
 0x178   : > { %v2082_v55 = vmul.f32 %v4454_v33, %v4763_v27  ;;  %v2398_v47 = vmul.f32 %v4715_v50, %v4461_v39  ;;  %v2399_v57 = vmul.f32 %v4461_v39, %v4763_v27  ;;  %v7322_v46 = vrot.slane %v7321_v59, 2  ;;  %v7331_v59 = vld [vmem:[#allocation2_spill] sm:$0xff] }
 0x179   : > { %v1706_v22 = vsel %vm1121_vm2, %v1704_v31, %v7319_v21  ;;  %v1802_v0 = vadd.f32 %v7320_v32, %v1558_v20  ;;  %v1950_v54 = vsel %vm1366_vm3, %v1948_v43, %v1949_v62  ;;  %v943_v31 = vpop.f32.mrb[3].mxu1  ;;  %v2260_v21 = vrot.slane %v2154_v51, 1  ;;  %v5388_v43 = vpop.f32.mrb[51].mxu0 }
 0x17a   : > { %v1801_v16 = vadd.f32 %v1706_v22, %v1557_v11  ;;  %v1952_v12 = vsel %vm1366_vm3, %v1949_v62, %v7322_v46  ;;  %v2261_v58 = vrot.slane %v2155_v56, 1  ;;  %v2504_v6 = vrot.slane %v2398_v47, 2  ;;  %7326 = vst [vmem:[#allocation19_spill] sm:$0xff] %v5388_v43 }
 0x17b   : > { %v2505_v63 = vrot.slane %v2399_v57, 2  ;;  %v2046_v1 = vadd.f32 %v1952_v12, %v1802_v0  ;;  %v5386_v11 = vmul.f32 %v4434_v15, %v7323_v17  ;;  %v7327_v62 = vrot.slane %v5044_v45, 1  ;;  %v7340_v0 = vld [vmem:[#allocation35_spill] sm:$0xff] }
 0x17c   : > { %v2045_v24 = vadd.f32 %v1950_v54, %v1801_v16  ;;  %v2262_v20 = vsel %vm1121_vm2, %v2260_v21, %v2261_v58  ;;  %v7328_v22 = vrot.slane %v5048_v28, 2  ;;  %v5401_v32 = vmul.f32 %v4439_v18, %v7323_v17  ;;  %v7332_v28 = vld [vmem:[#allocation39_spill] sm:$0xff] }
 0x17d   : > { %7325 = vst [vmem:[#allocation21_spill] sm:$0xff] %v5386_v11  ;;  %v2264_v51 = vsel %vm1121_vm2, %v2261_v58, %v7327_v62  ;;  %v2506_v56 = vsel %vm1366_vm3, %v2504_v6, %v2505_v63  ;;  %v2114_v16 = vadd.f32 %v2082_v55, %v2046_v1  ;;  %v7330_v54 = vlaneseq  ;;  %v7342_v57 = vld [vmem:[#allocation27_spill] sm:$0xff] }
 0x17e   : > { %v2508_v47 = vsel %vm1366_vm3, %v2505_v63, %v7328_v22  ;;  %v2113_v4 = vadd.f32 %v2081_v23, %v2045_v24  ;;  %7329 = vst [vmem:[#allocation37_spill] sm:$0xff] %v5401_v32  ;;  %v3131_v58 = vadd.s32 8, %v7331_v59  ;;  %v5408_v63 = vmul.f32 %v7332_v28, %v4432_v14  ;;  %v7335_v23 = vld [vmem:[#allocation32_spill] sm:$0xff] }
 0x17f   : > { %v3130_v45 = vand.u32 127, %v7330_v54  ;;  %v2358_v6 = vadd.f32 %v2264_v51, %v2114_v16  ;;  %v5413_v1 = vmul.f32 %v7332_v28, %v4434_v15  ;;  %v5417_v55 = vmul.f32 %v7335_v23, %v4432_v14 }
 0x180   : > { %v2357_v46 = vadd.f32 %v2262_v20, %v2113_v4  ;;  %7333 = vst [vmem:[#allocation41_spill] sm:$0xff] %v5408_v63  ;;  %v4143_v21 = vmov 0.0   ;;  %v5421_v62 = vmul.f32 %v7332_v28, %v4439_v18  ;;  %v978_v22 = vmul.f32 %v7335_v23, %v4439_v18  ;;  %v7338_v4 = vld [vmem:[#allocation40_spill] sm:$0xff] }
 0x181   : > { %vm3132_vm6 = vcmp.eq.s32.totalorder %v3130_v45, %v3131_v58  ;;  %7334 = vst [vmem:[#allocation38_spill] sm:$0xff] %v5413_v1  ;;  %7336 = vst [vmem:[#allocation34_spill] sm:$0xff] %v5417_v55  ;;  %v2602_v31 = vadd.f32 %v2508_v47, %v2358_v6  ;;  %v1057_v16 = vmul.f32 %v4432_v14, %v7338_v4  ;;  %v7349_v63 = vld [vmem:[#allocation36_spill] sm:$0xff] }
 0x182   : > { %v2601_v12 = vadd.f32 %v2506_v56, %v2357_v46  ;;  %v3722_v20 = vsel %vm3132_vm6, 1.0, %v4143_v21  ;;  %7337 = vst [vmem:[#allocation2_spill] sm:$0xff] %v5421_v62  ;;  %v5431_v56 = vmul.f32 %v7335_v23, %v4434_v15  ;;  %v1302_v54 = vmul.f32 %v4434_v15, %v7338_v4 }
 0x183   : > { %4049 = vmatprep.subr.msk.mxu1 %vm3263_vm5, %v3722_v20  ;;  %v5438_v45 = vmul.f32 %v7335_v23, %v4450_v26  ;;  %v1612_v59 = vmul.f32 %v4450_v26, %v7338_v4  ;;  %v7136_v46 = vrot.slane %v5417_v55, 1  ;;  %v1175_v6 = vrot.slane %v1057_v16, 1 }
 0x184   : > { %7339 = vst [vmem:[#allocation39_spill] sm:$0xff] %v5431_v56  ;;  %v2628_v47 = vpack.c.bf16 %v2602_v31, %v2601_v12  ;;  %4050 = vmatpush3.msk.msra.mxu1 %vm3263_vm5, %v3722_v20  ;;  %v5446_v12 = vmul.f32 %v4452_v29, %v7338_v4  ;;  %v1420_v21 = vrot.slane %v1302_v54, 2  ;;  %v5456_v58 = vmul.f32 %v4456_v34, %v7338_v4  ;;  %v5467_v20 = vpop.f32.mrb[52].mxu0 }
 0x185   : > { %v1727_v51 = vrot.slane %v1612_v59, 1  ;;  %v1176_v24 = vsel %vm1121_vm2, %v7136_v46, %v1175_v6  ;;  %v5460_v16 = vmul.f32 %v4461_v39, %v7338_v4  ;;  %v7343_v31 = vrot.slane %v7342_v57, 1  ;;  %7344 = vst [vmem:[#allocation32_spill] sm:$0xff] %v5467_v20  ;;  %v5478_v1 = vpop.f32.mrb[53].mxu0 }
 0x186   : > { %4026 = vmatmul.mubr.msk.bf16.gmra.mrb[12].mxu1 %vm2640_vm4, %v2628_v47  ;;  %v7341_v47 = vrot.slane %v7340_v0, 1  ;;  %v1255_v59 = vadd.f32 %v1176_v24, %v978_v22  ;;  %v7345_v43 = vrot.slane %v5431_v56, 2  ;;  %v7346_v46 = vrot.slane %v5438_v45, 1  ;;  %7347 = vst [vmem:[#allocation40_spill] sm:$0xff] %v5478_v1  ;;  %v7348_v0 = vld [vmem:[#allocation30_spill] sm:$0xff] }
 0x187   : > { %v1528_v22 = vmul.f32 %v4448_v25, %v4763_v27  ;;  %v2084_v1 = vmul.f32 %v4793_v60, %v4454_v33 }
 0x188   : > { %v1154_v54 = vsel %vm1121_vm2, %v7343_v31, %v7341_v47  ;;  %v1421_v6 = vsel %vm1366_vm3, %v7345_v43, %v1420_v21  ;;  %v5475_v62 = vsel %vm1121_vm2, %v7346_v46, %v1727_v51  ;;  %v7350_v31 = vrot.slane %v7349_v63, 2  ;;  %v7351_v47 = vld [vmem:[#allocation28_spill] sm:$0xff] }
 0x189   : > { %v1246_v57 = vadd.f32 %v1154_v54, %v7348_v0  ;;  %v7352_v20 = vrot.slane %v7351_v47, 2  ;;  %v1527_v43 = vmul.f32 %v4715_v50, %v4448_v25  ;;  %v5490_v51 = vadd.f32 %v1421_v6, %v1255_v59  ;;  %v7354_v0 = vld [vmem:[#allocation43_spill] sm:$0xff] }
 0x18a   : > { %v1601_v46 = vmul.f32 %v4715_v50, %v4450_v26  ;;  %v1602_v21 = vmul.f32 %v4450_v26, %v4763_v27  ;;  %v1845_v63 = vmul.f32 %v4715_v50, %v4452_v29  ;;  %v2083_v47 = vmul.f32 %v4454_v33, %v4795_v19 }
 0x18b   : > { %v1399_v24 = vsel %vm1366_vm3, %v7352_v20, %v7350_v31  ;;  %7353 = vst [vmem:[#allocation35_spill] sm:$0xff] %v5490_v51  ;;  %v1560_v20 = vadd.f32 %v1528_v22, %v7354_v0  ;;  %v1846_v31 = vmul.f32 %v4452_v29, %v4763_v27  ;;  %v2157_v50 = vmul.f32 %v4456_v34, %v4795_v19 }
 0x18c   : > { %v1491_v54 = vadd.f32 %v1399_v24, %v1246_v57  ;;  %v1709_v59 = vrot.slane %v1601_v46, 1  ;;  %v1710_v6 = vrot.slane %v1602_v21, 1  ;;  %v1953_v4 = vrot.slane %v1845_v63, 2 }
 0x18d   : > { %v1954_v32 = vrot.slane %v1846_v31, 2  ;;  %v2158_v57 = vmul.f32 %v4793_v60, %v4456_v34  ;;  %v7355_v27 = vrot.slane %v5035_v7, 1  ;;  %v2401_v46 = vmul.f32 %v4461_v39, %v4795_v19 }
 0x18e   : > { %v1559_v51 = vadd.f32 %v1527_v43, %v1491_v54  ;;  %v1711_v24 = vsel %vm1121_vm2, %v1709_v59, %v1710_v6  ;;  %v2402_v21 = vmul.f32 %v4793_v60, %v4461_v39  ;;  %v7356_v0 = vrot.slane %v5039_v52, 2 }
 0x18f   : > { %v1713_v22 = vsel %vm1121_vm2, %v1710_v6, %v7355_v27  ;;  %v1955_v54 = vsel %vm1366_vm3, %v1953_v4, %v1954_v32  ;;  %v2265_v11 = vrot.slane %v2157_v50, 1  ;;  %v2266_v59 = vrot.slane %v2158_v57, 1  ;;  %v7357_v27 = vld [vmem:[#allocation42_spill] sm:$0xff] }
 0x190   : > { %v1803_v43 = vadd.f32 %v1711_v24, %v1559_v51  ;;  %v1804_v63 = vadd.f32 %v1713_v22, %v1560_v20  ;;  %v1957_v31 = vsel %vm1366_vm3, %v1954_v32, %v7356_v0  ;;  %v2509_v56 = vrot.slane %v2401_v46, 2 }
 0x191   : > { %v2510_v7 = vrot.slane %v2402_v21, 2  ;;  %v5523_v55 = vmul.f32 %v7357_v27, %v4432_v14  ;;  %v5527_v51 = vmul.f32 %v7357_v27, %v4434_v15  ;;  %v2267_v4 = vsel %vm1121_vm2, %v2265_v11, %v2266_v59 }
 0x192   : > { %v2047_v37 = vadd.f32 %v1955_v54, %v1803_v43  ;;  %v2048_v6 = vadd.f32 %v1957_v31, %v1804_v63  ;;  %v7359_v52 = vrot.slane %v5201_v49, 1  ;;  %v7360_v50 = vrot.slane %v5215_v44, 2 }
 0x193   : > { %7358 = vst [vmem:[#allocation27_spill] sm:$0xff] %v5527_v51  ;;  %v2511_v20 = vsel %vm1366_vm3, %v2509_v56, %v2510_v7  ;;  %v5541_v43 = vmul.f32 %v7357_v27, %v4450_v26  ;;  %v5545_v49 = vmul.f32 %v7357_v27, %v4452_v29  ;;  %v5549_v11 = vmul.f32 %v7357_v27, %v4456_v34 }
 0x194   : > { %v2269_v32 = vsel %vm1121_vm2, %v2266_v59, %v7359_v52  ;;  %v2513_v57 = vsel %vm1366_vm3, %v2510_v7, %v7360_v50  ;;  %v2115_v46 = vadd.f32 %v2083_v47, %v2047_v37  ;;  %v2116_v21 = vadd.f32 %v2084_v1, %v2048_v6  ;;  %v7361_v1 = vld [vmem:[#allocation44_spill] sm:$0xff] }
 0x195   : > { %v5553_v44 = vmul.f32 %v7357_v27, %v4461_v39  ;;  %v5558_v47 = vmul.f32 %v4432_v14, %v7361_v1  ;;  %v5565_v59 = vmul.f32 %v4439_v18, %v7361_v1  ;;  %v7362_v52 = vrot.slane %v5052_v13, 1  ;;  %v7375_v13 = vld [vmem:[#allocation48_spill] sm:$0xff] }
 0x196   : > { %v2359_v56 = vadd.f32 %v2267_v4, %v2115_v46  ;;  %v2360_v63 = vadd.f32 %v2269_v32, %v2116_v21  ;;  %v7363_v32 = vld [vmem:[#allocation29_spill] sm:$0xff]  ;;  %v7365_v21 = vld [vmem:[#allocation11_spill] sm:$0xff]  ;;  %v7368_v0 = vrot.slane %v5105_v35, 2  ;;  %v1848_v35 = vmul.f32 %v4452_v29, %v4795_v19 }
 0x197   : > { %v7364_v50 = vrot.slane %v7363_v32, 1  ;;  %v7366_v54 = vrot.slane %v7365_v21, 1  ;;  %v7367_v37 = vmov %v7362_v52 }
 0x198   : > { %v2603_v7 = vadd.f32 %v2511_v20, %v2359_v56  ;;  %v2604_v6 = vadd.f32 %v2513_v57, %v2360_v63  ;;  %v7369_v20 = vld [vmem:[#allocation33_spill] sm:$0xff]  ;;  %v7371_v63 = vld [vmem:[#allocation12_spill] sm:$0xff]  ;;  %v7373_v27 = vmov %v7368_v0 }
 0x199   : > { %v1159_v46 = vsel %vm1121_vm2, %v7364_v50, %v7362_v52  ;;  %v1161_v31 = vsel %vm1121_vm2, %v7367_v37, %v7366_v54  ;;  %v7370_v57 = vrot.slane %v7369_v20, 2  ;;  %v7372_v4 = vrot.slane %v7371_v63, 2  ;;  %v7374_v50 = vld [vmem:[#allocation31_spill] sm:$0xff]  ;;  %v7378_v52 = vld [vmem:[#allocation6_spill] sm:$0xff] }
 0x19a   : > { %v2629_v22 = vpack.c.bf16 %v2604_v6, %v2603_v7  ;;  %v1248_v21 = vadd.f32 %v1159_v46, %v7374_v50  ;;  %v1249_v24 = vadd.f32 %v1161_v31, %v7375_v13  ;;  %v5594_v37 = vmul.f32 %v4434_v15, %v7361_v1 }
 0x19b   : > { %v1404_v56 = vsel %vm1366_vm3, %v7370_v57, %v7368_v0  ;;  %v1406_v32 = vsel %vm1366_vm3, %v7373_v27, %v7372_v4  ;;  %v1529_v54 = vmul.f32 %v4448_v25, %v4795_v19  ;;  %v1604_v0 = vmul.f32 %v4450_v26, %v4795_v19 }
 0x19c   : > { %4029 = vmatprep.mubr.msk.bf16.mxu1 %vm2640_vm4, %v2629_v22  ;;  %v1493_v7 = vadd.f32 %v1404_v56, %v1248_v21  ;;  %v1494_v6 = vadd.f32 %v1406_v32, %v1249_v24  ;;  %v1530_v31 = vmul.f32 %v4793_v60, %v4448_v25  ;;  %v1849_v27 = vmul.f32 %v4793_v60, %v4452_v29 }
 0x19d   : > { %v1714_v4 = vrot.slane %v1604_v0, 1  ;;  %v1958_v46 = vrot.slane %v1848_v35, 2  ;;  %v2085_v20 = vmul.f32 %v4815_v9, %v4454_v33  ;;  %v2160_v57 = vmul.f32 %v4815_v9, %v4456_v34 }
 0x19e   : > { %v1561_v63 = vadd.f32 %v1529_v54, %v1493_v7  ;;  %v1562_v19 = vadd.f32 %v1530_v31, %v1494_v6  ;;  %v1959_v50 = vrot.slane %v1849_v27, 2  ;;  %v2161_v24 = vmul.f32 %v4456_v34, %v4863_v40 }
 0x19f   : > { %v7376_v22 = vrot.slane %v5186_v42, 1  ;;  %v2086_v60 = vmul.f32 %v4454_v33, %v4863_v40  ;;  %v2404_v32 = vmul.f32 %v4815_v9, %v4461_v39  ;;  %v2405_v21 = vmul.f32 %v4461_v39, %v4863_v40 }
 0x1a0   : > { %v1806_v54 = vadd.f32 %v5232_v5, %v1562_v19  ;;  %v1960_v0 = vsel %vm1366_vm3, %v1958_v46, %v1959_v50  ;;  %v7377_v35 = vrot.slane %v5193_v30, 2  ;;  %v2270_v7 = vrot.slane %v2160_v57, 1 }
 0x1a1   : > { %v1716_v56 = vsel %vm1121_vm2, %v1714_v4, %v7376_v22  ;;  %v2271_v6 = vrot.slane %v2161_v24, 1  ;;  %v2514_v31 = vrot.slane %v2404_v32, 2  ;;  %v2515_v27 = vrot.slane %v2405_v21, 2 }
 0x1a2   : > { %v1805_v13 = vadd.f32 %v1716_v56, %v1561_v63  ;;  %v1962_v42 = vsel %vm1366_vm3, %v1959_v50, %v7377_v35  ;;  %v5629_v51 = vmul.f32 %v4432_v14, %v7378_v52  ;;  %v5633_v63 = vmul.f32 %v4434_v15, %v7378_v52 }
 0x1a3   : > { %v2050_v22 = vadd.f32 %v1962_v42, %v1806_v54  ;;  %v2272_v5 = vsel %vm1121_vm2, %v2270_v7, %v2271_v6  ;;  %v7381_v30 = vrot.slane %v5296_v41, 1  ;;  %v2516_v57 = vsel %vm1366_vm3, %v2514_v31, %v2515_v27  ;;  %v7384_v54 = vld [vmem:[#allocation45_spill] sm:$0xff]  ;;  %v7389_v7 = vld [vmem:[#allocation46_spill] sm:$0xff] }
 0x1a4   : > { %v2049_v4 = vadd.f32 %v1960_v0, %v1805_v13  ;;  %7379 = vst [vmem:[#allocation30_spill] sm:$0xff] %v5629_v51  ;;  %7380 = vst [vmem:[#allocation36_spill] sm:$0xff] %v5633_v63  ;;  %v7382_v19 = vrot.slane %v5300_v8, 2  ;;  %v5646_v21 = vmul.f32 %v4439_v18, %v7378_v52  ;;  %v5652_v0 = vmul.f32 %v7384_v54, %v4439_v18 }
 0x1a5   : > { %v2274_v46 = vsel %vm1121_vm2, %v2271_v6, %v7381_v30  ;;  %v2118_v32 = vadd.f32 %v2086_v60, %v2050_v22  ;;  %v5656_v8 = vmul.f32 %v7384_v54, %v4432_v14  ;;  %v1063_v6 = vmul.f32 %v4432_v14, %v7389_v7 }
 0x1a6   : > { %v2518_v50 = vsel %vm1366_vm3, %v2515_v27, %v7382_v19  ;;  %v2117_v56 = vadd.f32 %v2085_v20, %v2049_v4  ;;  %7383 = vst [vmem:[#allocation28_spill] sm:$0xff] %v5646_v21  ;;  %7385 = vst [vmem:[#allocation43_spill] sm:$0xff] %v5652_v0  ;;  %v7387_v20 = vld [vmem:[#allocation7_spill] sm:$0xff]  ;;  %v5666_v31 = vmul.f32 %v7384_v54, %v4434_v15  ;;  %v7393_v0 = vrot.slane %v5166_v38, 1 }
 0x1a7   : > { %7386 = vst [vmem:[#allocation42_spill] sm:$0xff] %v5656_v8  ;;  %v2362_v42 = vadd.f32 %v2274_v46, %v2118_v32  ;;  %v5660_v60 = vmul.f32 %v7387_v20, %v4432_v14  ;;  %v982_v27 = vmul.f32 %v7387_v20, %v4439_v18  ;;  %v5672_v4 = vmul.f32 %v7387_v20, %v4434_v15 }
 0x1a8   : > { %v2361_v35 = vadd.f32 %v2272_v5, %v2117_v56  ;;  %7390 = vst [vmem:[#allocation29_spill] sm:$0xff] %v5666_v31  ;;  %v1308_v22 = vmul.f32 %v4434_v15, %v7389_v7  ;;  %v1185_v19 = vrot.slane %v1063_v6, 1  ;;  %v5680_v41 = vmul.f32 %v7387_v20, %v4450_v26 }
 0x1a9   : > { %7388 = vst [vmem:[#allocation44_spill] sm:$0xff] %v5660_v60  ;;  %7391 = vst [vmem:[#allocation11_spill] sm:$0xff] %v5672_v4  ;;  %v2606_v30 = vadd.f32 %v2518_v50, %v2362_v42  ;;  %v7147_v46 = vrot.slane %v5660_v60, 1  ;;  %v7146_v56 = vrot.slane %v5672_v4, 2  ;;  %v1618_v13 = vmul.f32 %v4450_v26, %v7389_v7  ;;  %v7403_v60 = vld [vmem:[#allocation47_spill] sm:$0xff] }
 0x1aa   : > { %v2605_v5 = vadd.f32 %v2516_v57, %v2361_v35  ;;  %v1430_v32 = vrot.slane %v1308_v22, 2  ;;  %v5690_v50 = vmul.f32 %v4452_v29, %v7389_v7  ;;  %v7149_v6 = vrot.slane %v5680_v41, 1 }
 0x1ab   : > { %v1186_v57 = vsel %vm1121_vm2, %v7147_v46, %v1185_v19  ;;  %v1737_v22 = vrot.slane %v1618_v13, 1  ;;  %v5701_v19 = vmul.f32 %v4456_v34, %v7389_v7  ;;  %v7398_v46 = vld [vmem:[#allocation13_spill] sm:$0xff]  ;;  %v1531_v38 = vmul.f32 %v4815_v9, %v4448_v25 }
 0x1ac   : > { %v2630_v24 = vpack.c.bf16 %v2606_v30, %v2605_v5  ;;  %7392 = vst [vmem:[#allocation33_spill] sm:$0xff] %v5690_v50  ;;  %v1259_v35 = vadd.f32 %v1186_v57, %v982_v27  ;;  %v1431_v42 = vsel %vm1366_vm3, %v7146_v56, %v1430_v32  ;;  %v7394_v27 = vrot.slane %v5135_v48, 1  ;;  %v7396_v5 = vld [vmem:[#allocation8_spill] sm:$0xff] }
 0x1ad   : > { %v7397_v56 = vrot.slane %v7396_v5, 2  ;;  %v7399_v30 = vrot.slane %v7398_v46, 2  ;;  %v5723_v48 = vmul.f32 %v4461_v39, %v7389_v7  ;;  %v1851_v46 = vmul.f32 %v4815_v9, %v4452_v29 }
 0x1ae   : > { %4030 = vmatmul.mubr.msk.bf16.gmra.mrb[16].mxu1 %vm2640_vm4, %v2630_v24  ;;  %v1164_v57 = vsel %vm1121_vm2, %v7394_v27, %v7393_v0  ;;  %v5708_v32 = vadd.f32 %v1431_v42, %v1259_v35  ;;  %v5713_v24 = vsel %vm1121_vm2, %v7149_v6, %v1737_v22  ;;  %v1532_v0 = vmul.f32 %v4448_v25, %v4863_v40 }
 0x1af   : > { %v1250_v13 = vadd.f32 %v1164_v57, %v5152_v36  ;;  %v1409_v31 = vsel %vm1366_vm3, %v7399_v30, %v7397_v56  ;;  %v1607_v35 = vmul.f32 %v4815_v9, %v4450_v26  ;;  %v1608_v42 = vmul.f32 %v4450_v26, %v4863_v40  ;;  %v7400_v56 = vld [vmem:[#allocation22_spill] sm:$0xff] }
 0x1b0   : > { %7395 = vst [vmem:[#allocation12_spill] sm:$0xff] %v5708_v32  ;;  %v1852_v7 = vmul.f32 %v4452_v29, %v4863_v40  ;;  %v1564_v22 = vadd.f32 %v1532_v0, %v7400_v56  ;;  %v2087_v30 = vmul.f32 %v4454_v33, %v7323_v17  ;;  %v2088_v27 = vmul.f32 %v7335_v23, %v4454_v33 }
 0x1b1   : > { %v1495_v36 = vadd.f32 %v1409_v31, %v1250_v13  ;;  %v1719_v5 = vrot.slane %v1607_v35, 1  ;;  %v1720_v31 = vrot.slane %v1608_v42, 1  ;;  %v1963_v13 = vrot.slane %v1851_v46, 2 }
 0x1b2   : > { %v1964_v6 = vrot.slane %v1852_v7, 2  ;;  %v2163_v8 = vmul.f32 %v4456_v34, %v7323_v17  ;;  %v2164_v9 = vmul.f32 %v7335_v23, %v4456_v34  ;;  %v2407_v40 = vmul.f32 %v4461_v39, %v7323_v17 }
 0x1b3   : > { %v1563_v57 = vadd.f32 %v1531_v38, %v1495_v36  ;;  %v2408_v0 = vmul.f32 %v7335_v23, %v4461_v39  ;;  %v1721_v35 = vsel %vm1121_vm2, %v1719_v5, %v1720_v31  ;;  %v7401_v56 = vrot.slane %v5288_v53, 1 }
 0x1b4   : > { %v1965_v36 = vsel %vm1366_vm3, %v1963_v13, %v1964_v6  ;;  %v7402_v42 = vrot.slane %v5292_v3, 2  ;;  %v2275_v21 = vrot.slane %v2163_v8, 1  ;;  %v2276_v63 = vrot.slane %v2164_v9, 1 }
 0x1b5   : > { %v1723_v38 = vsel %vm1121_vm2, %v1720_v31, %v7401_v56  ;;  %v1807_v7 = vadd.f32 %v1721_v35, %v1563_v57  ;;  %v2519_v4 = vrot.slane %v2407_v40, 2  ;;  %v2520_v51 = vrot.slane %v2408_v0, 2 }
 0x1b6   : > { %v1967_v46 = vsel %vm1366_vm3, %v1964_v6, %v7402_v42  ;;  %v1808_v32 = vadd.f32 %v1723_v38, %v1564_v22  ;;  %v5760_v50 = vmul.f32 %v7403_v60, %v4432_v14  ;;  %v5764_v53 = vmul.f32 %v7403_v60, %v4434_v15 }
 0x1b7   : > { %v2051_v5 = vadd.f32 %v1965_v36, %v1807_v7  ;;  %v2277_v3 = vsel %vm1121_vm2, %v2275_v21, %v2276_v63  ;;  %v7404_v6 = vrot.slane %v5456_v58, 1  ;;  %v2521_v13 = vsel %vm1366_vm3, %v2519_v4, %v2520_v51  ;;  %v7413_v36 = vld [vmem:[#allocation16_spill] sm:$0xff]  ;;  %v7429_v21 = vld [vmem:[#allocation34_spill] sm:$0xff] }
 0x1b8   : > { %v2052_v31 = vadd.f32 %v1967_v46, %v1808_v32  ;;  %v7405_v9 = vrot.slane %v5460_v16, 2  ;;  %v5778_v32 = vmul.f32 %v7403_v60, %v4450_v26  ;;  %v5782_v58 = vmul.f32 %v7403_v60, %v4452_v29 }
 0x1b9   : > { %v2279_v22 = vsel %vm1121_vm2, %v2276_v63, %v7404_v6  ;;  %v2119_v0 = vadd.f32 %v2087_v30, %v2051_v5  ;;  %v5788_v4 = vmul.f32 %v7403_v60, %v4456_v34  ;;  %v5792_v16 = vmul.f32 %v7403_v60, %v4461_v39  ;;  %v7412_v63 = vld [vmem:[#allocation5_spill] sm:$0xff] }
 0x1ba   : > { %v2523_v40 = vsel %vm1366_vm3, %v2520_v51, %v7405_v9  ;;  %v2120_v35 = vadd.f32 %v2088_v27, %v2052_v31  ;;  %v7406_v27 = vld [vmem:[#allocation49_spill] sm:$0xff]  ;;  %v7407_v31 = vrot.slane %v5307_v61, 1  ;;  %v7410_v9 = vrot.slane %v5270_v10, 1 }
 0x1bb   : > { %v2363_v51 = vadd.f32 %v2277_v3, %v2119_v0  ;;  %v5796_v56 = vmul.f32 %v4439_v18, %v7406_v27  ;;  %v5800_v38 = vmul.f32 %v4432_v14, %v7406_v27  ;;  %v5807_v60 = vmul.f32 %v4434_v15, %v7406_v27  ;;  %v7408_v3 = vld [vmem:[#allocation15_spill] sm:$0xff] }
 0x1bc   : > { %v2364_v30 = vadd.f32 %v2279_v22, %v2120_v35  ;;  %v7409_v6 = vrot.slane %v7408_v3, 1  ;;  %v7411_v0 = vmov %v7407_v31  ;;  %v2413_v8 = vmul.f32 %v4461_v39, %v7378_v52 }
 0x1bd   : > { %v2607_v7 = vadd.f32 %v2521_v13, %v2363_v51  ;;  %v1171_v35 = vsel %vm1121_vm2, %v7411_v0, %v7410_v9  ;;  %v7414_v13 = vrot.slane %v5347_v2, 2  ;;  %v1533_v9 = vmul.f32 %v4448_v25, %v7323_v17 }
 0x1be   : > { %v2608_v5 = vadd.f32 %v2523_v40, %v2364_v30  ;;  %v1169_v22 = vsel %vm1121_vm2, %v7409_v6, %v7407_v31  ;;  %v1253_v46 = vadd.f32 %v1171_v35, %v7413_v36  ;;  %v7415_v40 = vld [vmem:[#allocation10_spill] sm:$0xff]  ;;  %v7417_v31 = vld [vmem:[#allocation17_spill] sm:$0xff]  ;;  %v1610_v0 = vmul.f32 %v4450_v26, %v7323_v17 }
 0x1bf   : > { %v1252_v42 = vadd.f32 %v1169_v22, %v7412_v63  ;;  %v7416_v51 = vrot.slane %v7415_v40, 2  ;;  %v7418_v6 = vrot.slane %v7417_v31, 2  ;;  %v7419_v10 = vmov %v7414_v13 }
 0x1c0   : > { %v2631_v3 = vpack.c.bf16 %v2608_v5, %v2607_v7  ;;  %v1534_v63 = vmul.f32 %v7335_v23, %v4448_v25  ;;  %v1854_v7 = vmul.f32 %v4452_v29, %v7323_v17  ;;  %v1855_v35 = vmul.f32 %v7335_v23, %v4452_v29 }
 0x1c1   : > { %v1414_v30 = vsel %vm1366_vm3, %v7416_v51, %v7414_v13  ;;  %v1416_v61 = vsel %vm1366_vm3, %v7419_v10, %v7418_v6  ;;  %v2166_v13 = vmul.f32 %v7332_v28, %v4456_v34  ;;  %v1724_v40 = vrot.slane %v1610_v0, 1 }
 0x1c2   : > { %v1497_v36 = vadd.f32 %v1414_v30, %v1252_v42  ;;  %v1498_v22 = vadd.f32 %v1416_v61, %v1253_v46  ;;  %4033 = vmatprep.mubr.msk.bf16.mxu1 %vm2640_vm4, %v2631_v3  ;;  %v1968_v51 = vrot.slane %v1854_v7, 2  ;;  %v1969_v30 = vrot.slane %v1855_v35, 2 }
 0x1c3   : > { %v2089_v17 = vmul.f32 %v7332_v28, %v4454_v33  ;;  %v2167_v3 = vmul.f32 %v4456_v34, %v7361_v1  ;;  %v2410_v31 = vmul.f32 %v7332_v28, %v4461_v39  ;;  %v7420_v6 = vrot.slane %v5438_v45, 1 }
 0x1c4   : > { %v1565_v42 = vadd.f32 %v1533_v9, %v1497_v36  ;;  %v1566_v46 = vadd.f32 %v1534_v63, %v1498_v22  ;;  %v2280_v61 = vrot.slane %v2166_v13, 1  ;;  %v2411_v9 = vmul.f32 %v4461_v39, %v7361_v1 }
 0x1c5   : > { %v1726_v23 = vsel %vm1121_vm2, %v1724_v40, %v7420_v6  ;;  %v1970_v36 = vsel %vm1366_vm3, %v1968_v51, %v1969_v30  ;;  %v7421_v22 = vrot.slane %v5446_v12, 2  ;;  %v2281_v7 = vrot.slane %v2167_v3, 1 }
 0x1c6   : > { %v1810_v10 = vadd.f32 %v5475_v62, %v1566_v46  ;;  %v1809_v63 = vadd.f32 %v1726_v23, %v1565_v42  ;;  %v2090_v45 = vmul.f32 %v4454_v33, %v7361_v1  ;;  %v2524_v5 = vrot.slane %v2410_v31, 2  ;;  %v7423_v46 = vld [vmem:[#allocation3_spill] sm:$0xff] }
 0x1c7   : > { %v1972_v0 = vsel %vm1366_vm3, %v1969_v30, %v7421_v22  ;;  %v2525_v40 = vrot.slane %v2411_v9, 2  ;;  %v2282_v62 = vsel %vm1121_vm2, %v2280_v61, %v2281_v7  ;;  %v7422_v13 = vrot.slane %v5549_v11, 1  ;;  %v7426_v61 = vld [vmem:[#allocation14_spill] sm:$0xff] }
 0x1c8   : > { %v2054_v35 = vadd.f32 %v1972_v0, %v1810_v10  ;;  %v2053_v6 = vadd.f32 %v1970_v36, %v1809_v63  ;;  %v5871_v51 = vmul.f32 %v4439_v18, %v7423_v46  ;;  %v7424_v3 = vrot.slane %v5553_v44, 2  ;;  %v7427_v44 = vld [vmem:[#allocation4_spill] sm:$0xff] }
 0x1c9   : > { %v2284_v42 = vsel %vm1121_vm2, %v2281_v7, %v7422_v13  ;;  %v2526_v30 = vsel %vm1366_vm3, %v2524_v5, %v2525_v40  ;;  %v5879_v31 = vmul.f32 %v4432_v14, %v7423_v46  ;;  %v5883_v11 = vmul.f32 %v4434_v15, %v7423_v46 }
 0x1ca   : > { %v2122_v12 = vadd.f32 %v2090_v45, %v2054_v35  ;;  %v2528_v23 = vsel %vm1366_vm3, %v2525_v40, %v7424_v3  ;;  %v2121_v10 = vadd.f32 %v2089_v17, %v2053_v6  ;;  %v986_v9 = vmul.f32 %v7426_v61, %v4439_v18 }
 0x1cb   : > { %7425 = vst [vmem:[#allocation31_spill] sm:$0xff] %v5883_v11  ;;  %v5889_v63 = vmul.f32 %v7426_v61, %v4432_v14  ;;  %v1069_v36 = vmul.f32 %v4432_v14, %v7427_v44  ;;  %v5895_v22 = vmul.f32 %v7426_v61, %v4434_v15  ;;  %v1314_v17 = vmul.f32 %v4434_v15, %v7427_v44 }
 0x1cc   : > { %v2366_v5 = vadd.f32 %v2284_v42, %v2122_v12  ;;  %v2365_v0 = vadd.f32 %v2282_v62, %v2121_v10  ;;  %v5902_v35 = vmul.f32 %v7426_v61, %v4450_v26  ;;  %v1624_v45 = vmul.f32 %v4450_v26, %v7427_v44 }
 0x1cd   : > { %7428 = vst [vmem:[#allocation48_spill] sm:$0xff] %v5895_v22  ;;  %v7157_v7 = vrot.slane %v5889_v63, 1  ;;  %v1195_v6 = vrot.slane %v1069_v36, 1  ;;  %v7156_v13 = vrot.slane %v5895_v22, 2  ;;  %v1440_v42 = vrot.slane %v1314_v17, 2 }
 0x1ce   : > { %v2610_v40 = vadd.f32 %v2528_v23, %v2366_v5  ;;  %v2609_v12 = vadd.f32 %v2526_v30, %v2365_v0  ;;  %v7158_v3 = vrot.slane %v5902_v35, 1  ;;  %v1747_v2 = vrot.slane %v1624_v45, 1  ;;  %v7438_v45 = vld [vmem:[#allocation37_spill] sm:$0xff] }
 0x1cf   : > { %v5910_v62 = vmul.f32 %v4452_v29, %v7427_v44  ;;  %v1196_v23 = vsel %vm1121_vm2, %v7157_v7, %v1195_v6  ;;  %v1441_v5 = vsel %vm1366_vm3, %v7156_v13, %v1440_v42  ;;  %v5927_v0 = vmul.f32 %v4456_v34, %v7427_v44  ;;  %v7431_v42 = vld [vmem:[#allocation20_spill] sm:$0xff] }
 0x1d0   : > { %v2632_v30 = vpack.c.bf16 %v2610_v40, %v2609_v12  ;;  %v1263_v36 = vadd.f32 %v1196_v23, %v986_v9  ;;  %v5923_v17 = vsel %vm1121_vm2, %v7158_v3, %v1747_v2  ;;  %v5932_v6 = vmul.f32 %v4461_v39, %v7427_v44  ;;  %v7433_v12 = vld [vmem:[#allocation39_spill] sm:$0xff]  ;;  %v7435_v2 = vld [vmem:[#allocation21_spill] sm:$0xff] }
 0x1d1   : > { %v7430_v10 = vrot.slane %v7429_v21, 1  ;;  %v7432_v40 = vrot.slane %v7431_v42, 1  ;;  %v7434_v23 = vrot.slane %v7433_v12, 2  ;;  %v7436_v13 = vrot.slane %v7435_v2, 2  ;;  %v308_v12 = vld [vmem:[%s7061_s2 + $0x1b0] sm:$0xff] }
 0x1d2   : > { %4034 = vmatmul.mubr.msk.bf16.gmra.mrb[20].mxu1 %vm2640_vm4, %v2632_v30  ;;  %v5945_v3 = vadd.f32 %v1441_v5, %v1263_v36  ;;  %v1535_v44 = vmul.f32 %v7332_v28, %v4448_v25  ;;  %v1536_v21 = vmul.f32 %v4448_v25, %v7361_v1  ;;  %v1614_v42 = vmul.f32 %v4450_v26, %v7361_v1  ;;  %v7439_v36 = vld [vmem:[#allocation35_spill] sm:$0xff] }
 0x1d3   : > { %v1174_v9 = vsel %vm1121_vm2, %v7432_v40, %v7430_v10  ;;  %v1419_v7 = vsel %vm1366_vm3, %v7436_v13, %v7434_v23  ;;  %v1613_v10 = vmul.f32 %v7332_v28, %v4450_v26  ;;  %v1857_v13 = vmul.f32 %v7332_v28, %v4452_v29  ;;  %v309_v28 = vld [vmem:[%s7061_s2 + $0x1b8] sm:$0xff]  ;;  %3988 = vmatprep.mubr.msk.f32.mxu0 %vm326_vm0, %v308_v12 }
 0x1d4   : > { %7437 = vst [vmem:[#allocation6_spill] sm:$0xff] %v5945_v3  ;;  %v1254_v57 = vadd.f32 %v1174_v9, %v7438_v45  ;;  %v1858_v5 = vmul.f32 %v4452_v29, %v7361_v1  ;;  %v1568_v45 = vadd.f32 %v1536_v21, %v7439_v36  ;;  %v2091_v40 = vmul.f32 %v4454_v33, %v7378_v52 }
 0x1d5   : > { %v2092_v9 = vmul.f32 %v7387_v20, %v4454_v33  ;;  %v1729_v23 = vrot.slane %v1613_v10, 1  ;;  %v1730_v2 = vrot.slane %v1614_v42, 1  ;;  %v1973_v1 = vrot.slane %v1857_v13, 2  ;;  %3989 = vmatmul.mubr.msk.f32.gmra.mrb[54].mxu0 %vm326_vm0, %v309_v28  ;;  %v310_v28 = vld [vmem:[%s7061_s2 + $0x1c0] sm:$0xff] }
 0x1d6   : > { %v1499_v30 = vadd.f32 %v1419_v7, %v1254_v57  ;;  %v1974_v57 = vrot.slane %v1858_v5, 2  ;;  %v2169_v21 = vmul.f32 %v4456_v34, %v7378_v52  ;;  %v2170_v36 = vmul.f32 %v7387_v20, %v4456_v34  ;;  %3991 = vmatprep.mubr.msk.f32.mxu0 %vm326_vm0, %v310_v28 }
 0x1d7   : > { %v1731_v3 = vsel %vm1121_vm2, %v1729_v23, %v1730_v2  ;;  %v7440_v10 = vrot.slane %v5541_v43, 1  ;;  %v311_v43 = vld [vmem:[%s7061_s2 + $0x1c8] sm:$0xff]  ;;  %v2414_v23 = vmul.f32 %v7387_v20, %v4461_v39 }
 0x1d8   : > { %v1567_v7 = vadd.f32 %v1535_v44, %v1499_v30  ;;  %v1975_v13 = vsel %vm1366_vm3, %v1973_v1, %v1974_v57  ;;  %v7441_v44 = vrot.slane %v5545_v49, 2  ;;  %v2285_v11 = vrot.slane %v2169_v21, 1  ;;  %v7442_v49 = vld [vmem:[#allocation25_spill] sm:$0xff] }
 0x1d9   : > { %v1733_v42 = vsel %vm1121_vm2, %v1730_v2, %v7440_v10  ;;  %v2286_v22 = vrot.slane %v2170_v36, 1  ;;  %v2529_v2 = vrot.slane %v2413_v8, 2  ;;  %v5997_v1 = vmul.f32 %v7442_v49, %v4432_v14  ;;  %3992 = vmatmul.mubr.msk.f32.gmra.mrb[56].mxu0 %vm326_vm0, %v311_v43 }
 0x1da   : > { %v1977_v5 = vsel %vm1366_vm3, %v1974_v57, %v7441_v44  ;;  %v1811_v30 = vadd.f32 %v1731_v3, %v1567_v7  ;;  %v1812_v12 = vadd.f32 %v1733_v42, %v1568_v45  ;;  %v6001_v3 = vmul.f32 %v7442_v49, %v4434_v15 }
 0x1db   : > { %v2287_v7 = vsel %vm1121_vm2, %v2285_v11, %v2286_v22  ;;  %v7443_v21 = vrot.slane %v5701_v19, 1  ;;  %v2530_v42 = vrot.slane %v2414_v23, 2  ;;  %v6013_v44 = vmul.f32 %v7442_v49, %v4450_v26  ;;  %v312_v11 = vld [vmem:[%s7061_s2 + $0x1d0] sm:$0xff] }
 0x1dc   : > { %v2055_v45 = vadd.f32 %v1975_v13, %v1811_v30  ;;  %v2056_v57 = vadd.f32 %v1977_v5, %v1812_v12  ;;  %v6018_v19 = vmul.f32 %v7442_v49, %v4452_v29  ;;  %v7446_v12 = vrot.slane %v5723_v48, 2  ;;  %3994 = vmatprep.mubr.msk.f32.mxu0 %vm326_vm0, %v312_v11 }
 0x1dd   : > { %v2289_v36 = vsel %vm1121_vm2, %v2286_v22, %v7443_v21  ;;  %7444 = vst [vmem:[#allocation45_spill] sm:$0xff] %v6013_v44  ;;  %v313_v22 = vld [vmem:[%s7061_s2 + $0x1d8] sm:$0xff]  ;;  %v2531_v30 = vsel %vm1366_vm3, %v2529_v2, %v2530_v42  ;;  %v6033_v43 = vmul.f32 %v7442_v49, %v4456_v34  ;;  %v6039_v21 = vmul.f32 %v7442_v49, %v4461_v39  ;;  %v7453_v49 = vld [vmem:[#allocation38_spill] sm:$0xff] }
 0x1de   : > { %v2123_v28 = vadd.f32 %v2091_v40, %v2055_v45  ;;  %v2124_v13 = vadd.f32 %v2092_v9, %v2056_v57  ;;  %7445 = vst [vmem:[#allocation7_spill] sm:$0xff] %v6018_v19  ;;  %v2533_v40 = vsel %vm1366_vm3, %v2530_v42, %v7446_v12  ;;  %3995 = vmatmul.mubr.msk.f32.gmra.mrb[58].mxu0 %vm326_vm0, %v313_v22  ;;  %v7447_v2 = vrot.slane %v5558_v47, 1  ;;  %v7448_v42 = vld [vmem:[#allocation41_spill] sm:$0xff]  ;;  %v7455_v9 = vld [vmem:[#allocation2_spill] sm:$0xff]  ;;  %v315_v47 = vld [vmem:[%s7061_s2 + $0x1e8] sm:$0xff] }
 0x1df   : > { %v7449_v12 = vrot.slane %v7448_v42, 1  ;;  %v7450_v11 = vrot.slane %v5523_v55, 1  ;;  %v314_v55 = vld [vmem:[%s7061_s2 + $0x1e0] sm:$0xff] }
 0x1e0   : > { %v2367_v23 = vadd.f32 %v2287_v7, %v2123_v28  ;;  %v2368_v45 = vadd.f32 %v2289_v36, %v2124_v13  ;;  %v7451_v7 = vmov %v7447_v2  ;;  %v7452_v28 = vrot.slane %v5594_v37, 2  ;;  %3997 = vmatprep.mubr.msk.f32.mxu0 %vm326_vm0, %v314_v55 }
 0x1e1   : > { %v1179_v10 = vsel %vm1121_vm2, %v7449_v12, %v7447_v2  ;;  %v1181_v36 = vsel %vm1121_vm2, %v7451_v7, %v7450_v11  ;;  %v7454_v13 = vrot.slane %v7453_v49, 2  ;;  %v7456_v2 = vld [vmem:[#allocation27_spill] sm:$0xff]  ;;  %v2093_v49 = vmul.f32 %v7384_v54, %v4454_v33 }
 0x1e2   : > { %v2611_v57 = vadd.f32 %v2531_v30, %v2367_v23  ;;  %v2612_v48 = vadd.f32 %v2533_v40, %v2368_v45  ;;  %v1256_v5 = vadd.f32 %v1179_v10, %v7455_v9  ;;  %v1257_v42 = vadd.f32 %v1181_v36, %v5565_v59  ;;  %3998 = vmatmul.mubr.msk.f32.gmra.mrb[60].mxu0 %vm326_vm0, %v315_v47 }
 0x1e3   : > { %v1424_v22 = vsel %vm1366_vm3, %v7454_v13, %v7452_v28  ;;  %v7457_v12 = vrot.slane %v7456_v2, 2  ;;  %v7458_v11 = vmov %v7452_v28  ;;  %v1537_v30 = vmul.f32 %v4448_v25, %v7378_v52 }
 0x1e4   : > { %v1538_v59 = vmul.f32 %v7387_v20, %v4448_v25  ;;  %v1616_v10 = vmul.f32 %v4450_v26, %v7378_v52  ;;  %v2633_v40 = vpack.c.bf16 %v2612_v48, %v2611_v57  ;;  %v1501_v9 = vadd.f32 %v1424_v22, %v1256_v5  ;;  %v317_v22 = vld [vmem:[%s7061_s2 + $0x1f8] sm:$0xff] }
 0x1e5   : > { %v1426_v7 = vsel %vm1366_vm3, %v7458_v11, %v7457_v12  ;;  %v1860_v45 = vmul.f32 %v4452_v29, %v7378_v52  ;;  %v1861_v28 = vmul.f32 %v7387_v20, %v4452_v29  ;;  %v2172_v48 = vmul.f32 %v7384_v54, %v4456_v34  ;;  %v316_v52 = vld [vmem:[%s7061_s2 + $0x1f0] sm:$0xff] }
 0x1e6   : > { %v1502_v23 = vadd.f32 %v1426_v7, %v1257_v42  ;;  %v1734_v36 = vrot.slane %v1616_v10, 1  ;;  %4037 = vmatprep.mubr.msk.bf16.mxu1 %vm2640_vm4, %v2633_v40  ;;  %v1569_v13 = vadd.f32 %v1537_v30, %v1501_v9  ;;  %v7459_v20 = vrot.slane %v5680_v41, 1  ;;  %4000 = vmatprep.mubr.msk.f32.mxu0 %vm326_vm0, %v316_v52 }
 0x1e7   : > { %v1978_v5 = vrot.slane %v1860_v45, 2  ;;  %v1979_v55 = vrot.slane %v1861_v28, 2  ;;  %v2173_v47 = vmul.f32 %v4456_v34, %v7406_v27  ;;  %v2416_v2 = vmul.f32 %v7384_v54, %v4461_v39  ;;  %4001 = vmatmul.mubr.msk.f32.gmra.mrb[62].mxu0 %vm326_vm0, %v317_v22 }
 0x1e8   : > { %v1570_v57 = vadd.f32 %v1538_v59, %v1502_v23  ;;  %v1736_v42 = vsel %vm1121_vm2, %v1734_v36, %v7459_v20  ;;  %v2094_v7 = vmul.f32 %v4454_v33, %v7406_v27  ;;  %v2417_v41 = vmul.f32 %v4461_v39, %v7406_v27  ;;  %v7460_v59 = vld [vmem:[#allocation33_spill] sm:$0xff] }
 0x1e9   : > { %v1813_v12 = vadd.f32 %v1736_v42, %v1569_v13  ;;  %v1980_v30 = vsel %vm1366_vm3, %v1978_v5, %v1979_v55  ;;  %v7461_v10 = vrot.slane %v7460_v59, 2  ;;  %v2290_v9 = vrot.slane %v2172_v48, 1  ;;  %v318_v13 = vld [vmem:[%s7061_s2 + $0x200] sm:$0xff]  ;;  %v7463_v48 = vld [vmem:[#allocation23_spill] sm:$0xff] }
 0x1ea   : > { %v1814_v11 = vadd.f32 %v5713_v24, %v1570_v57  ;;  %v2291_v23 = vrot.slane %v2173_v47, 1  ;;  %v2534_v28 = vrot.slane %v2416_v2, 2  ;;  %v2535_v24 = vrot.slane %v2417_v41, 2  ;;  %v319_v57 = vld [vmem:[%s7061_s2 + $0x208] sm:$0xff]  ;;  %4003 = vmatprep.mubr.msk.f32.mxu0 %vm326_vm0, %v318_v13 }
 0x1eb   : > { %v1982_v40 = vsel %vm1366_vm3, %v1979_v55, %v7461_v10  ;;  %v2057_v45 = vadd.f32 %v1980_v30, %v1813_v12  ;;  %v7462_v52 = vrot.slane %v5788_v4, 1  ;;  %v6125_v20 = vmul.f32 %v7463_v48, %v4450_v26  ;;  %4004 = vmatmul.mubr.msk.f32.gmra.mrb[64].mxu0 %vm326_vm0, %v319_v57 }
 0x1ec   : > { %v2058_v36 = vadd.f32 %v1982_v40, %v1814_v11  ;;  %v2292_v5 = vsel %vm1121_vm2, %v2290_v9, %v2291_v23  ;;  %v6129_v42 = vmul.f32 %v7463_v48, %v4452_v29  ;;  %v2536_v2 = vsel %vm1366_vm3, %v2534_v28, %v2535_v24  ;;  %v320_v40 = vld [vmem:[%s7061_s2 + $0x210] sm:$0xff]  ;;  %v321_v9 = vld [vmem:[%s7061_s2 + $0x218] sm:$0xff] }
 0x1ed   : > { %v2294_v22 = vsel %vm1121_vm2, %v2291_v23, %v7462_v52  ;;  %v2125_v55 = vadd.f32 %v2093_v49, %v2057_v45  ;;  %v7464_v12 = vrot.slane %v5792_v16, 2  ;;  %v6140_v41 = vmul.f32 %v7463_v48, %v4448_v25  ;;  %v7467_v45 = vld [vmem:[#allocation18_spill] sm:$0xff]  ;;  %4006 = vmatprep.mubr.msk.f32.mxu0 %vm326_vm0, %v320_v40 }
 0x1ee   : > { %v2126_v47 = vadd.f32 %v2094_v7, %v2058_v36  ;;  %v7162_v30 = vrot.slane %v6125_v20, 1  ;;  %v6145_v49 = vmul.f32 %v7463_v48, %v4456_v34  ;;  %v7161_v16 = vrot.slane %v6129_v42, 2 }
 0x1ef   : > { %v2538_v4 = vsel %vm1366_vm3, %v2535_v24, %v7464_v12  ;;  %v2369_v7 = vadd.f32 %v2292_v5, %v2125_v55  ;;  %v6150_v10 = vmul.f32 %v7463_v48, %v4461_v39  ;;  %v1545_v36 = vmul.f32 %v4448_v25, %v7467_v45  ;;  %4007 = vmatmul.mubr.msk.f32.gmra.mrb[66].mxu0 %vm326_vm0, %v321_v9  ;;  %v7470_v12 = vld [vmem:[#allocation9_spill] sm:$0xff]  ;;  %v7472_v9 = vld [vmem:[#allocation26_spill] sm:$0xff] }
 0x1f0   : > { %7465 = vst [vmem:[#allocation46_spill] sm:$0xff] %v6145_v49  ;;  %v2370_v59 = vadd.f32 %v2294_v22, %v2126_v47  ;;  %v1628_v28 = vmul.f32 %v4450_v26, %v7467_v45  ;;  %v1872_v24 = vmul.f32 %v4452_v29, %v7467_v45  ;;  %v6169_v52 = vmul.f32 %v4456_v34, %v7467_v45 }
 0x1f1   : > { %7466 = vst [vmem:[#allocation8_spill] sm:$0xff] %v6150_v10  ;;  %v2613_v13 = vadd.f32 %v2536_v2, %v2369_v7  ;;  %v6174_v47 = vmul.f32 %v4461_v39, %v7467_v45  ;;  %v987_v11 = vmul.f32 %v7470_v12, %v4439_v18  ;;  %v7471_v7 = vld [vmem:[#allocation24_spill] sm:$0xff]  ;;  %v2101_v2 = vmul.f32 %v7472_v9, %v4454_v33 }
 0x1f2   : > { %v2614_v57 = vadd.f32 %v2538_v4, %v2370_v59  ;;  %7468 = vst [vmem:[#allocation13_spill] sm:$0xff] %v6169_v52  ;;  %v1754_v22 = vrot.slane %v1628_v28, 1  ;;  %v1998_v55 = vrot.slane %v1872_v24, 2  ;;  %v1070_v4 = vmul.f32 %v7470_v12, %v4432_v14  ;;  %v7481_v52 = vld [vmem:[#allocation36_spill] sm:$0xff] }
 0x1f3   : > { %7469 = vst [vmem:[#allocation22_spill] sm:$0xff] %v6174_v47  ;;  %v6183_v59 = vmul.f32 %v4432_v14, %v7471_v7  ;;  %v1315_v28 = vmul.f32 %v7470_v12, %v4434_v15  ;;  %v6190_v24 = vmul.f32 %v4434_v15, %v7471_v7  ;;  %v6205_v8 = vmul.f32 %v7472_v9, %v4456_v34  ;;  %v7475_v47 = vld [vmem:[#allocation44_spill] sm:$0xff] }
 0x1f4   : > { %v2634_v40 = vpack.c.bf16 %v2614_v57, %v2613_v13  ;;  %v1756_v13 = vsel %vm1121_vm2, %v1754_v22, %v7162_v30  ;;  %v1197_v57 = vrot.slane %v1070_v4, 1  ;;  %v2000_v14 = vsel %vm1366_vm3, %v1998_v55, %v7161_v16  ;;  %v7473_v4 = vld [vmem:[#allocation19_spill] sm:$0xff] }
 0x1f5   : > { %v7163_v5 = vrot.slane %v6183_v59, 1  ;;  %v1442_v37 = vrot.slane %v1315_v28, 2  ;;  %v7171_v15 = vrot.slane %v6190_v24, 2  ;;  %v6209_v22 = vmul.f32 %v7472_v9, %v4461_v39 }
 0x1f6   : > { %4038 = vmatmul.mubr.msk.bf16.gmra.mrb[24].mxu1 %vm2640_vm4, %v2634_v40  ;;  %v6216_v55 = vmul.f32 %v4450_v26, %v7473_v4  ;;  %v6220_v28 = vmul.f32 %v4452_v29, %v7473_v4  ;;  %v2183_v16 = vmul.f32 %v4456_v34, %v7473_v4  ;;  %v6233_v48 = vmul.f32 %v4461_v39, %v7473_v4 }
 0x1f7   : > { %v1199_v40 = vsel %vm1121_vm2, %v1197_v57, %v7163_v5  ;;  %v1444_v9 = vsel %vm1366_vm3, %v1442_v37, %v7171_v15  ;;  %v7479_v15 = vld [vmem:[#allocation11_spill] sm:$0xff]  ;;  %v7482_v57 = vrot.slane %v7481_v52, 2  ;;  %v1619_v52 = vmul.f32 %v7384_v54, %v4450_v26 }
 0x1f8   : > { %v1264_v30 = vadd.f32 %v1199_v40, %v987_v11  ;;  %v1757_v5 = vrot.slane %v6216_v55, 1  ;;  %v2001_v45 = vrot.slane %v6220_v28, 2  ;;  %v2308_v19 = vrot.slane %v2183_v16, 1  ;;  %7474 = vst [vmem:[#allocation47_spill] sm:$0xff] %v6233_v48  ;;  %v7477_v40 = vld [vmem:[#allocation30_spill] sm:$0xff] }
 0x1f9   : > { %v7476_v11 = vrot.slane %v7475_v47, 1  ;;  %v7478_v10 = vrot.slane %v7477_v40, 1  ;;  %v7480_v23 = vrot.slane %v7479_v15, 2  ;;  %v1539_v16 = vmul.f32 %v7384_v54, %v4448_v25  ;;  %v7485_v47 = vld [vmem:[#allocation28_spill] sm:$0xff] }
 0x1fa   : > { %v1509_v44 = vadd.f32 %v1444_v9, %v1264_v30  ;;  %v7483_v28 = vrot.slane %v6145_v49, 1  ;;  %v2096_v49 = vmul.f32 %v7426_v61, %v4454_v33 }
 0x1fb   : > { %v1184_v37 = vsel %vm1121_vm2, %v7478_v10, %v7476_v11  ;;  %v1429_v55 = vsel %vm1366_vm3, %v7482_v57, %v7480_v23  ;;  %v1540_v10 = vmul.f32 %v4448_v25, %v7406_v27  ;;  %v1620_v23 = vmul.f32 %v4450_v26, %v7406_v27 }
 0x1fc   : > { %v6250_v4 = vsel %vm1121_vm2, %v7483_v28, %v2308_v19  ;;  %v1258_v9 = vadd.f32 %v1184_v37, %v7485_v47  ;;  %v1577_v15 = vadd.f32 %v1545_v36, %v1509_v44  ;;  %v1863_v57 = vmul.f32 %v7384_v54, %v4452_v29  ;;  %v7486_v19 = vld [vmem:[#allocation12_spill] sm:$0xff] }
 0x1fd   : > { %7484 = vst [vmem:[#allocation49_spill] sm:$0xff] %v6250_v4  ;;  %v1572_v40 = vadd.f32 %v1540_v10, %v7486_v19  ;;  %v1864_v28 = vmul.f32 %v4452_v29, %v7406_v27  ;;  %v2095_v37 = vmul.f32 %v4454_v33, %v7423_v46  ;;  %v1739_v44 = vrot.slane %v1619_v52, 1 }
 0x1fe   : > { %v1503_v11 = vadd.f32 %v1429_v55, %v1258_v9  ;;  %v1821_v47 = vadd.f32 %v1756_v13, %v1577_v15  ;;  %v1740_v36 = vrot.slane %v1620_v23, 1  ;;  %v1983_v30 = vrot.slane %v1863_v57, 2 }
 0x1ff   : > { %v1984_v48 = vrot.slane %v1864_v28, 2  ;;  %v2175_v54 = vmul.f32 %v4456_v34, %v7423_v46  ;;  %v7487_v27 = vrot.slane %v5778_v32, 1  ;;  %v2176_v13 = vmul.f32 %v7426_v61, %v4456_v34 }
 0x200   : > { %v1571_v4 = vadd.f32 %v1539_v16, %v1503_v11  ;;  %v2065_v55 = vadd.f32 %v2000_v14, %v1821_v47  ;;  %v1741_v9 = vsel %vm1121_vm2, %v1739_v44, %v1740_v36  ;;  %v7488_v23 = vrot.slane %v5782_v58, 2 }
 0x201   : > { %v1743_v10 = vsel %vm1121_vm2, %v1740_v36, %v7487_v27  ;;  %v1985_v16 = vsel %vm1366_vm3, %v1983_v30, %v1984_v48  ;;  %v2295_v19 = vrot.slane %v2175_v54, 1  ;;  %v2296_v14 = vrot.slane %v2176_v13, 1 }
 0x202   : > { %v1815_v15 = vadd.f32 %v1741_v9, %v1571_v4  ;;  %v1816_v52 = vadd.f32 %v1743_v10, %v1572_v40  ;;  %v1987_v57 = vsel %vm1366_vm3, %v1984_v48, %v7488_v23  ;;  %v2133_v11 = vadd.f32 %v2101_v2, %v2065_v55  ;;  %v7489_v4 = vld [vmem:[#allocation32_spill] sm:$0xff] }
 0x203   : > { %v2419_v28 = vmul.f32 %v4461_v39, %v7423_v46  ;;  %v2420_v44 = vmul.f32 %v7426_v61, %v4461_v39  ;;  %v2186_v40 = vmul.f32 %v7489_v4, %v4456_v34  ;;  %v2297_v30 = vsel %vm1121_vm2, %v2295_v19, %v2296_v14 }
 0x204   : > { %v2059_v32 = vadd.f32 %v1985_v16, %v1815_v15  ;;  %v2060_v47 = vadd.f32 %v1987_v57, %v1816_v52  ;;  %v7490_v58 = vrot.slane %v5927_v0, 1  ;;  %v2430_v36 = vmul.f32 %v7489_v4, %v4461_v39 }
 0x205   : > { %v2539_v2 = vrot.slane %v2419_v28, 2  ;;  %v2540_v9 = vrot.slane %v2420_v44, 2  ;;  %v2313_v27 = vrot.slane %v2186_v40, 1  ;;  %v988_v13 = vmul.f32 %v4439_v18, %v7471_v7 }
 0x206   : > { %v2299_v48 = vsel %vm1121_vm2, %v2296_v14, %v7490_v58  ;;  %v2127_v54 = vadd.f32 %v2095_v37, %v2059_v32  ;;  %v2128_v55 = vadd.f32 %v2096_v49, %v2060_v47  ;;  %v2557_v10 = vrot.slane %v2430_v36, 2  ;;  %v7500_v58 = vld [vmem:[#allocation42_spill] sm:$0xff] }
 0x207   : > { %v7491_v15 = vrot.slane %v5997_v1, 1  ;;  %v7492_v52 = vrot.slane %v6183_v59, 1  ;;  %v7493_v16 = vrot.slane %v6001_v3, 2  ;;  %v7494_v23 = vrot.slane %v6190_v24, 2  ;;  %v7498_v24 = vld [vmem:[#allocation40_spill] sm:$0xff] }
 0x208   : > { %v2371_v37 = vadd.f32 %v2297_v30, %v2127_v54  ;;  %v2372_v49 = vadd.f32 %v2299_v48, %v2128_v55  ;;  %v2541_v19 = vsel %vm1366_vm3, %v2539_v2, %v2540_v9  ;;  %v7495_v14 = vrot.slane %v5932_v6, 2  ;;  %v7505_v54 = vld [vmem:[#allocation29_spill] sm:$0xff] }
 0x209   : > { %v1201_v0 = vsel %vm1121_vm2, %v7492_v52, %v7491_v15  ;;  %v1446_v57 = vsel %vm1366_vm3, %v7494_v23, %v7493_v16  ;;  %v7496_v1 = vrot.slane %v6125_v20, 1  ;;  %v7497_v32 = vrot.slane %v6129_v42, 2 }
 0x20a   : > { %v2543_v18 = vsel %vm1366_vm3, %v2540_v9, %v7495_v14  ;;  %v1265_v28 = vadd.f32 %v1201_v0, %v988_v13  ;;  %v2102_v47 = vmul.f32 %v4454_v33, %v7498_v24  ;;  %v2615_v44 = vadd.f32 %v2541_v19, %v2371_v37  ;;  %v7507_v0 = vld [vmem:[#allocation43_spill] sm:$0xff] }
 0x20b   : > { %v1758_v59 = vsel %vm1121_vm2, %v7496_v1, %v1757_v5  ;;  %v2002_v3 = vsel %vm1366_vm3, %v7497_v32, %v2001_v45  ;;  %v2616_v4 = vadd.f32 %v2543_v18, %v2372_v49  ;;  %v2185_v40 = vmul.f32 %v4456_v34, %v7498_v24 }
 0x20c   : > { %v2429_v6 = vmul.f32 %v4461_v39, %v7498_v24  ;;  %v1510_v30 = vadd.f32 %v1446_v57, %v1265_v28  ;;  %v7499_v20 = vrot.slane %v5800_v38, 1  ;;  %v7501_v5 = vrot.slane %v7500_v58, 1 }
 0x20d   : > { %v7502_v45 = vrot.slane %v5760_v50, 1  ;;  %v7504_v36 = vrot.slane %v5807_v60, 2  ;;  %v7506_v55 = vrot.slane %v7505_v54, 2  ;;  %v2635_v13 = vpack.c.bf16 %v2616_v4, %v2615_v44 }
 0x20e   : > { %v1189_v42 = vsel %vm1121_vm2, %v7501_v5, %v7499_v20  ;;  %v7503_v48 = vmov %v7499_v20  ;;  %v2311_v15 = vrot.slane %v2185_v40, 1  ;;  %v2555_v52 = vrot.slane %v2429_v6, 2 }
 0x20f   : > { %v1191_v2 = vsel %vm1121_vm2, %v7503_v48, %v7502_v45  ;;  %v1434_v9 = vsel %vm1366_vm3, %v7506_v55, %v7504_v36  ;;  %v1260_v16 = vadd.f32 %v1189_v42, %v7507_v0  ;;  %v1578_v23 = vadd.f32 %v6140_v41, %v1510_v30  ;;  %4041 = vmatprep.mubr.msk.bf16.mxu1 %vm2640_vm4, %v2635_v13 }
 0x210   : > { %v1261_v57 = vadd.f32 %v1191_v2, %v5796_v56  ;;  %v7508_v50 = vrot.slane %v5764_v53, 2  ;;  %v7509_v38 = vmov %v7504_v36  ;;  %v1541_v49 = vmul.f32 %v4448_v25, %v7423_v46 }
 0x211   : > { %v7510_v19 = vrot.slane %v6205_v8, 1  ;;  %v2314_v18 = vsel %vm1121_vm2, %v2311_v15, %v2313_v27  ;;  %v7511_v41 = vrot.slane %v6209_v22, 2  ;;  %v6357_v53 = vsel %vm1366_vm3, %v2555_v52, %v2557_v10 }
 0x212   : > { %v1436_v37 = vsel %vm1366_vm3, %v7509_v38, %v7508_v50  ;;  %v1822_v60 = vadd.f32 %v1758_v59, %v1578_v23  ;;  %v1505_v1 = vadd.f32 %v1434_v9, %v1260_v16  ;;  %v1542_v8 = vmul.f32 %v7426_v61, %v4448_v25  ;;  %v7517_v38 = vld [vmem:[#allocation48_spill] sm:$0xff] }
 0x213   : > { %v2312_v14 = vsel %vm1121_vm2, %v7510_v19, %v2311_v15  ;;  %v6354_v56 = vsel %vm1366_vm3, %v7511_v41, %v2555_v52  ;;  %v1506_v32 = vadd.f32 %v1436_v37, %v1261_v57  ;;  %v1622_v24 = vmul.f32 %v4450_v26, %v7423_v46  ;;  %v6399_v57 = vpop.f32.mrb[4].mxu1 }
 0x214   : > { %v6359_v28 = vadd.f32 %v2312_v14, %v2133_v11  ;;  %v1866_v22 = vmul.f32 %v4452_v29, %v7423_v46  ;;  %v1867_v27 = vmul.f32 %v7426_v61, %v4452_v29  ;;  %v2066_v44 = vadd.f32 %v2002_v3, %v1822_v60  ;;  %v6408_v14 = vpop.f32.mrb[5].mxu1 }
 0x215   : > { %v1573_v10 = vadd.f32 %v1541_v49, %v1505_v1  ;;  %v2097_v11 = vmul.f32 %v7470_v12, %v4454_v33  ;;  %v2098_v59 = vmul.f32 %v4454_v33, %v7471_v7  ;;  %v1574_v4 = vadd.f32 %v1542_v8, %v1506_v32  ;;  %v6414_v60 = vpop.f32.mrb[6].mxu1 }
 0x216   : > { %v1744_v40 = vrot.slane %v1622_v24, 1  ;;  %v1988_v6 = vrot.slane %v1866_v22, 2  ;;  %v1989_v30 = vrot.slane %v1867_v27, 2  ;;  %v2134_v20 = vadd.f32 %v2102_v47, %v2066_v44  ;;  %v6422_v27 = vpop.f32.mrb[7].mxu1 }
 0x217   : > { %v2178_v58 = vmul.f32 %v7470_v12, %v4456_v34  ;;  %v2179_v46 = vmul.f32 %v4456_v34, %v7471_v7  ;;  %v2422_v61 = vmul.f32 %v7470_v12, %v4461_v39  ;;  %v7512_v3 = vrot.slane %v5902_v35, 1 }
 0x218   : > { %v1818_v42 = vadd.f32 %v5923_v17, %v1574_v4  ;;  %v1990_v45 = vsel %vm1366_vm3, %v1988_v6, %v1989_v30  ;;  %v7513_v48 = vrot.slane %v5910_v62, 2  ;;  %v2378_v2 = vadd.f32 %v2314_v18, %v2134_v20  ;;  %v7523_v20 = vld [vmem:[#allocation46_spill] sm:$0xff] }
 0x219   : > { %v1746_v5 = vsel %vm1121_vm2, %v1744_v40, %v7512_v3  ;;  %v2300_v54 = vrot.slane %v2178_v58, 1  ;;  %v2301_v55 = vrot.slane %v2179_v46, 1  ;;  %v2423_v9 = vmul.f32 %v4461_v39, %v7471_v7  ;;  %v7525_v46 = vld [vmem:[#allocation13_spill] sm:$0xff]  ;;  %v7527_v3 = vld [vmem:[#allocation8_spill] sm:$0xff] }
 0x21a   : > { %v1992_v47 = vsel %vm1366_vm3, %v1989_v30, %v7513_v48  ;;  %v1817_v36 = vadd.f32 %v1746_v5, %v1573_v10  ;;  %v2544_v13 = vrot.slane %v2422_v61, 2  ;;  %v7514_v35 = vrot.slane %v5889_v63, 1  ;;  %v7519_v63 = vld [vmem:[#allocation31_spill] sm:$0xff] }
 0x21b   : > { %v2062_v34 = vadd.f32 %v1992_v47, %v1818_v42  ;;  %v7515_v15 = vrot.slane %v5879_v31, 1  ;;  %v2302_v62 = vsel %vm1121_vm2, %v2300_v54, %v2301_v55  ;;  %v7516_v0 = vrot.slane %v6033_v43, 1  ;;  %v7529_v42 = vld [vmem:[#allocation22_spill] sm:$0xff]  ;;  %v7531_v47 = vld [vmem:[#allocation47_spill] sm:$0xff] }
 0x21c   : > { %v2061_v52 = vadd.f32 %v1990_v45, %v1817_v36  ;;  %v2545_v39 = vrot.slane %v2423_v9, 2  ;;  %v7518_v37 = vrot.slane %v7517_v38, 2  ;;  %v7520_v49 = vrot.slane %v7519_v63, 2 }
 0x21d   : > { %v1194_v17 = vsel %vm1121_vm2, %v7515_v15, %v7514_v35  ;;  %v2304_v16 = vsel %vm1121_vm2, %v2301_v55, %v7516_v0  ;;  %v2130_v50 = vadd.f32 %v2098_v59, %v2062_v34  ;;  %v1543_v19 = vmul.f32 %v7470_v12, %v4448_v25 }
 0x21e   : > { %v1262_v23 = vadd.f32 %v1194_v17, %v5871_v51  ;;  %v1439_v31 = vsel %vm1366_vm3, %v7520_v49, %v7518_v37  ;;  %v2129_v43 = vadd.f32 %v2097_v11, %v2061_v52  ;;  %v1544_v51 = vmul.f32 %v4448_v25, %v7471_v7  ;;  %v7522_v25 = vld [vmem:[#allocation6_spill] sm:$0xff] }
 0x21f   : > { %v1625_v41 = vmul.f32 %v7470_v12, %v4450_v26  ;;  %v2374_v1 = vadd.f32 %v2304_v16, %v2130_v50  ;;  %v2546_v32 = vsel %vm1366_vm3, %v2544_v13, %v2545_v39  ;;  %v7521_v8 = vrot.slane %v6039_v21, 2  ;;  %v7539_v37 = vld [vmem:[#allocation18_spill] sm:$0xff] }
 0x220   : > { %v1507_v18 = vadd.f32 %v1439_v31, %v1262_v23  ;;  %v1626_v22 = vmul.f32 %v4450_v26, %v7471_v7  ;;  %v2373_v44 = vadd.f32 %v2302_v62, %v2129_v43  ;;  %v1576_v11 = vadd.f32 %v1544_v51, %v7522_v25  ;;  %v7536_v62 = vld [vmem:[#allocation23_spill] sm:$0xff] }
 0x221   : > { %v2548_v24 = vsel %vm1366_vm3, %v2545_v39, %v7521_v8  ;;  %v1749_v59 = vrot.slane %v1625_v41, 1  ;;  %v1869_v6 = vmul.f32 %v7470_v12, %v4452_v29  ;;  %v1870_v21 = vmul.f32 %v4452_v29, %v7471_v7  ;;  %v7534_v7 = vld [vmem:[#allocation45_spill] sm:$0xff]  ;;  %v7537_v23 = vld [vmem:[#allocation7_spill] sm:$0xff] }
 0x222   : > { %v1575_v10 = vadd.f32 %v1543_v19, %v1507_v18  ;;  %v2618_v4 = vadd.f32 %v2548_v24, %v2374_v1  ;;  %v1750_v40 = vrot.slane %v1626_v22, 1  ;;  %v2617_v30 = vadd.f32 %v2546_v32, %v2373_v44  ;;  %v7540_v41 = vld [vmem:[#allocation49_spill] sm:$0xff] }
 0x223   : > { %v7524_v58 = vrot.slane %v7523_v20, 1  ;;  %v7526_v26 = vrot.slane %v7525_v46, 1  ;;  %v7528_v5 = vrot.slane %v7527_v3, 2  ;;  %v7530_v45 = vrot.slane %v7529_v42, 2  ;;  %v3135_v20 = vld [vmem:[%s6483_s16] sm:$0xff]  ;;  %v3138_v3 = vld [vmem:[%s6483_s16 + $0x18] sm:$0xff] }
 0x224   : > { %v7532_v36 = vrot.slane %v7531_v47, 2  ;;  %v1751_v29 = vsel %vm1121_vm2, %v1749_v59, %v1750_v40  ;;  %v7535_v55 = vrot.slane %v7534_v7, 1  ;;  %v1993_v9 = vrot.slane %v1869_v6, 2  ;;  %v3140_v42 = vld [vmem:[%s6483_s16 + $0x28] sm:$0xff] }
 0x225   : > { %v2307_v61 = vsel %vm1121_vm2, %v7526_v26, %v7524_v58  ;;  %v2551_v48 = vsel %vm1366_vm3, %v7530_v45, %v7528_v5  ;;  %v7533_v12 = vmov %v7528_v5  ;;  %v1994_v13 = vrot.slane %v1870_v21, 2  ;;  %v3136_v26 = vld [vmem:[%s6483_s16 + $0x8] sm:$0xff]  ;;  %v3139_v5 = vld [vmem:[%s6483_s16 + $0x20] sm:$0xff]  ;;  %v3141_v45 = vld [vmem:[%s6483_s16 + $0x30] sm:$0xff] }
 0x226   : > { %v2553_v54 = vsel %vm1366_vm3, %v7533_v12, %v7532_v36  ;;  %v1753_v34 = vsel %vm1121_vm2, %v1750_v40, %v7535_v55  ;;  %v2636_v35 = vpack.c.bf16 %v2618_v4, %v2617_v30  ;;  %v1819_v15 = vadd.f32 %v1751_v29, %v1575_v10  ;;  %v3143_v36 = vld [vmem:[%s6483_s16 + $0x40] sm:$0xff] }
 0x227   : > { %v1820_v17 = vadd.f32 %v1753_v34, %v1576_v11  ;;  %v2621_v52 = vadd.f32 %v6354_v56, %v6359_v28  ;;  %v2100_v0 = vmul.f32 %v7536_v62, %v4454_v33  ;;  %v1995_v16 = vsel %vm1366_vm3, %v1993_v9, %v1994_v13  ;;  %v3144_v9 = vld [vmem:[%s6483_s16 + $0x48] sm:$0xff] }
 0x228   : > { %v7538_v50 = vrot.slane %v7537_v23, 2  ;;  %v2622_v38 = vadd.f32 %v6357_v53, %v2378_v2  ;;  %v2099_v63 = vmul.f32 %v4454_v33, %v7539_v37  ;;  %4042 = vmatmul.mubr.msk.bf16.gmra.mrb[28].mxu1 %vm2640_vm4, %v2636_v35  ;;  %v2063_v49 = vadd.f32 %v1995_v16, %v1819_v15  ;;  %v3146_v37 = vld [vmem:[%s6483_s16 + $0x58] sm:$0xff] }
 0x229   : > { %v2924_v28 = vmul.f32 %v6408_v14, %v6408_v14  ;;  %v2926_v18 = vmul.f32 %v6399_v57, %v6399_v57  ;;  %v2855_v53 = vsel %vm2854_vm7, %v6408_v14, 0.0  ;;  %v2856_v33 = vsel %vm2854_vm7, %v6422_v27, 0.0 }
 0x22a   : > { %v1997_v39 = vsel %vm1366_vm3, %v1994_v13, %v7538_v50  ;;  %v2638_v56 = vpack.c.bf16 %v2622_v38, %v2621_v52  ;;  %v2131_v19 = vadd.f32 %v2099_v63, %v2063_v49  ;;  %v2925_v2 = vmul.f32 %v6422_v27, %v6422_v27  ;;  %v3145_v52 = vld [vmem:[%s6483_s16 + $0x50] sm:$0xff] }
 0x22b   : > { %v2064_v31 = vadd.f32 %v1997_v39, %v1820_v17  ;;  %v2857_v32 = vadd.f32 %v2856_v33, %v2855_v53  ;;  %v2858_v8 = vsel %vm2854_vm7, %v6399_v57, 0.0  ;;  %v2956_v24 = vsel %vm2854_vm7, %v2924_v28, 0.0  ;;  %v3149_v53 = vld [vmem:[%s6483_s16 + $0x70] sm:$0xff]  ;;  %v3150_v33 = vld [vmem:[%s6483_s16 + $0x78] sm:$0xff] }
 0x22c   : > { %v2375_v51 = vadd.f32 %v2307_v61, %v2131_v19  ;;  %v2927_v22 = vmul.f32 %v6414_v60, %v6414_v60  ;;  %v2957_v44 = vsel %vm2854_vm7, %v2925_v2, 0.0  ;;  %v2959_v4 = vsel %vm2854_vm7, %v2926_v18, 0.0  ;;  %v3137_v61 = vld [vmem:[%s6483_s16 + $0x10] sm:$0xff]  ;;  %v3148_v18 = vld [vmem:[%s6483_s16 + $0x68] sm:$0xff]  ;;  %v3151_v2 = vld [vmem:[%s6483_s16 + $0x80] sm:$0xff] }
 0x22d   : > { %v2132_v43 = vadd.f32 %v2100_v0, %v2064_v31  ;;  %v2859_v11 = vadd.f32 %v2858_v8, %v2857_v32  ;;  %v2958_v59 = vadd.f32 %v2957_v44, %v2956_v24  ;;  %v2860_v40 = vsel %vm2854_vm7, %v6414_v60, 0.0  ;;  %v3147_v31 = vld [vmem:[%s6483_s16 + $0x60] sm:$0xff]  ;;  %v3156_v8 = vld [vmem:[%s6483_s16 + $0xa8] sm:$0xff]  ;;  %v3157_v24 = vld [vmem:[%s6483_s16 + $0xb0] sm:$0xff] }
 0x22e   : > { %v2619_v10 = vadd.f32 %v2551_v48, %v2375_v51  ;;  %v2961_v58 = vsel %vm2854_vm7, %v2927_v22, 0.0  ;;  %v3142_v48 = vld [vmem:[%s6483_s16 + $0x38] sm:$0xff]  ;;  %v3152_v51 = vld [vmem:[%s6483_s16 + $0x88] sm:$0xff]  ;;  %v3155_v32 = vld [vmem:[%s6483_s16 + $0xa0] sm:$0xff] }
 0x22f   : > { %v2376_v1 = vadd.f32 %v7540_v41, %v2132_v43  ;;  %v2960_v21 = vadd.f32 %v2959_v4, %v2958_v59  ;;  %v2861_v30 = vadd.f32 %v2860_v40, %v2859_v11  ;;  %v3153_v41 = vld [vmem:[%s6483_s16 + $0x90] sm:$0xff]  ;;  %v3158_v22 = vld [vmem:[%s6483_s16 + $0xb8] sm:$0xff]  ;;  %v3159_v44 = vld [vmem:[%s6483_s16 + $0xc0] sm:$0xff] }
 0x230   : > { %v3161_v59 = vld [vmem:[%s6483_s16 + $0xd0] sm:$0xff] }
 0x231   : > { %v2620_v25 = vadd.f32 %v2553_v54, %v2376_v1  ;;  %v2962_v46 = vadd.f32 %v2961_v58, %v2960_v21  ;;  %v3154_v1 = vld [vmem:[%s6483_s16 + $0x98] sm:$0xff] }
 0x233   : > { %v2637_v6 = vpack.c.bf16 %v2620_v25, %v2619_v10  ;;  %v3160_v25 = vld [vmem:[%s6483_s16 + $0xc8] sm:$0xff] }
 0x234   : > { %v6506_v47 = vpop.f32.mrb[8].mxu1 }
 0x235   : > { %4045 = vmatprep.mubr.msk.bf16.mxu1 %vm2640_vm4, %v2637_v6  ;;  %v6509_v12 = vpop.f32.mrb[9].mxu1  ;;  %v2930_v13 = vmul.f32 %v6506_v47, %v6506_v47  ;;  %v2866_v16 = vsel %vm2854_vm7, %v6506_v47, 0.0 }
 0x236   : > { %4046 = vmatmul.mubr.msk.bf16.gmra.mrb[32].mxu1 %vm2640_vm4, %v2638_v56  ;;  %v2862_v54 = vsel %vm2854_vm7, %v6509_v12, 0.0  ;;  %v2928_v29 = vmul.f32 %v6509_v12, %v6509_v12  ;;  %v6515_v7 = vpop.f32.mrb[10].mxu1 }
 0x237   : > { %4051 = vmatprep.mubr.msk.f32.mxu1 %vm2640_vm4, %v3135_v20  ;;  %v2863_v55 = vadd.f32 %v2862_v54, %v2861_v30  ;;  %v6518_v34 = vpop.f32.mrb[11].mxu1  ;;  %v2931_v23 = vmul.f32 %v6515_v7, %v6515_v7  ;;  %v2967_v63 = vsel %vm2854_vm7, %v2930_v13, 0.0  ;;  %v2868_v49 = vsel %vm2854_vm7, %v6515_v7, 0.0  ;;  %v3164_v13 = vld [vmem:[%s6483_s16 + $0xe8] sm:$0xff] }
 0x238   : > { %v2963_v35 = vsel %vm2854_vm7, %v2928_v29, 0.0  ;;  %v2864_v15 = vsel %vm2854_vm7, %v6518_v34, 0.0  ;;  %v2929_v17 = vmul.f32 %v6518_v34, %v6518_v34 }
 0x239   : > { %v2964_v62 = vadd.f32 %v2963_v35, %v2962_v46  ;;  %v2865_v0 = vadd.f32 %v2864_v15, %v2863_v55  ;;  %v2969_v19 = vsel %vm2854_vm7, %v2931_v23, 0.0 }
 0x23a   : > { %v2965_v50 = vsel %vm2854_vm7, %v2929_v17, 0.0  ;;  %v3165_v17 = vld [vmem:[%s6483_s16 + $0xf0] sm:$0xff] }
 0x23b   : > { %v2867_v39 = vadd.f32 %v2866_v16, %v2865_v0  ;;  %v2966_v38 = vadd.f32 %v2965_v50, %v2964_v62  ;;  %v3166_v0 = vld [vmem:[%s6483_s16 + $0xf8] sm:$0xff] }
 0x23d   : > { %v2968_v56 = vadd.f32 %v2967_v63, %v2966_v38  ;;  %v2869_v28 = vadd.f32 %v2868_v49, %v2867_v39 }
 0x23e   : > { %4052 = vmatmul.mubr.msk.f32.vlgmr.msra.gmra.mrb[36].mxu1 %vm2640_vm4, %v3136_v26 }
 0x23f   : > { %4054 = vmatprep.mubr.msk.f32.mxu1 %vm2640_vm4, %v3137_v61  ;;  %v2970_v43 = vadd.f32 %v2969_v19, %v2968_v56  ;;  %v3162_v61 = vld [vmem:[%s6483_s16 + $0xd8] sm:$0xff] }
 0x242   : > { %4055 = vmatmul.mubr.msk.f32.gmra.mrb[38].mxu1 %vm2640_vm4, %v3138_v3 }
 0x243   : > { %4057 = vmatprep.mubr.msk.f32.mxu1 %vm2640_vm4, %v3139_v5 }
 0x246   : > { %4058 = vmatmul.mubr.msk.f32.gmra.mrb[40].mxu1 %vm2640_vm4, %v3140_v42  ;;  %v3163_v42 = vld [vmem:[%s6483_s16 + $0xe0] sm:$0xff] }
 0x247   : > { %4060 = vmatprep.mubr.msk.f32.mxu1 %vm2640_vm4, %v3141_v45 }
 0x24a   : > { %4061 = vmatmul.mubr.msk.f32.gmra.mrb[42].mxu1 %vm2640_vm4, %v3142_v48 }
 0x24b   : > { %4063 = vmatprep.mubr.msk.f32.mxu1 %vm2640_vm4, %v3143_v36 }
 0x24e   : > { %4064 = vmatmul.mubr.msk.f32.gmra.mrb[44].mxu1 %vm2640_vm4, %v3144_v9 }
 0x24f   : > { %4066 = vmatprep.mubr.msk.f32.mxu1 %vm2640_vm4, %v3145_v52 }
 0x252   : > { %4067 = vmatmul.mubr.msk.f32.gmra.mrb[46].mxu1 %vm2640_vm4, %v3146_v37 }
 0x253   : > { %4069 = vmatprep.mubr.msk.f32.mxu1 %vm2640_vm4, %v3147_v31 }
 0x256   : > { %4070 = vmatmul.mubr.msk.f32.gmra.mrb[48].mxu1 %vm2640_vm4, %v3148_v18 }
 0x257   : > { %4072 = vmatprep.mubr.msk.f32.mxu1 %vm2640_vm4, %v3149_v53 }
 0x259   : > { %v6568_v10 = vpop.f32.mrb[12].mxu1 }
 0x25a   : > { %4073 = vmatmul.mubr.msk.f32.gmra.mrb[50].mxu1 %vm2640_vm4, %v3150_v33  ;;  %v6572_v11 = vpop.f32.mrb[13].mxu1  ;;  %v2934_v20 = vmul.f32 %v6568_v10, %v6568_v10  ;;  %v2874_v45 = vsel %vm2854_vm7, %v6568_v10, 0.0 }
 0x25b   : > { %4075 = vmatprep.mubr.msk.f32.mxu1 %vm2640_vm4, %v3151_v2  ;;  %v2870_v4 = vsel %vm2854_vm7, %v6572_v11, 0.0  ;;  %v2932_v40 = vmul.f32 %v6572_v11, %v6572_v11  ;;  %v6579_v6 = vpop.f32.mrb[14].mxu1 }
 0x25c   : > { %v2871_v21 = vadd.f32 %v2870_v4, %v2869_v28  ;;  %v6581_v30 = vpop.f32.mrb[15].mxu1  ;;  %v2935_v48 = vmul.f32 %v6579_v6, %v6579_v6  ;;  %v2975_v55 = vsel %vm2854_vm7, %v2934_v20, 0.0  ;;  %v2876_v9 = vsel %vm2854_vm7, %v6579_v6, 0.0 }
 0x25d   : > { %v2971_v58 = vsel %vm2854_vm7, %v2932_v40, 0.0  ;;  %v2872_v46 = vsel %vm2854_vm7, %v6581_v30, 0.0  ;;  %v2933_v26 = vmul.f32 %v6581_v30, %v6581_v30 }
 0x25e   : > { %4076 = vmatmul.mubr.msk.f32.gmra.mrb[52].mxu1 %vm2640_vm4, %v3152_v51  ;;  %v2972_v3 = vadd.f32 %v2971_v58, %v2970_v43  ;;  %v2873_v5 = vadd.f32 %v2872_v46, %v2871_v21  ;;  %v2977_v52 = vsel %vm2854_vm7, %v2935_v48, 0.0 }
 0x25f   : > { %4078 = vmatprep.mubr.msk.f32.mxu1 %vm2640_vm4, %v3153_v41  ;;  %v2973_v36 = vsel %vm2854_vm7, %v2933_v26, 0.0 }
 0x260   : > { %v2875_v54 = vadd.f32 %v2874_v45, %v2873_v5  ;;  %v2974_v29 = vadd.f32 %v2973_v36, %v2972_v3 }
 0x262   : > { %4079 = vmatmul.mubr.msk.f32.gmra.mrb[54].mxu1 %vm2640_vm4, %v3154_v1  ;;  %v2976_v35 = vadd.f32 %v2975_v55, %v2974_v29  ;;  %v2877_v15 = vadd.f32 %v2876_v9, %v2875_v54 }
 0x263   : > { %4081 = vmatprep.mubr.msk.f32.mxu1 %vm2640_vm4, %v3155_v32 }
 0x264   : > { %v2978_v62 = vadd.f32 %v2977_v52, %v2976_v35 }
 0x266   : > { %4082 = vmatmul.mubr.msk.f32.gmra.mrb[56].mxu1 %vm2640_vm4, %v3156_v8 }
 0x267   : > { %4084 = vmatprep.mubr.msk.f32.mxu1 %vm2640_vm4, %v3157_v24 }
 0x26a   : > { %4085 = vmatmul.mubr.msk.f32.gmra.mrb[58].mxu1 %vm2640_vm4, %v3158_v22 }
 0x26b   : > { %4087 = vmatprep.mubr.msk.f32.mxu1 %vm2640_vm4, %v3159_v44 }
 0x26e   : > { %4088 = vmatmul.mubr.msk.f32.gmra.mrb[60].mxu1 %vm2640_vm4, %v3160_v25 }
 0x26f   : > { %4090 = vmatprep.mubr.msk.f32.mxu1 %vm2640_vm4, %v3161_v59 }
 0x272   : > { %4091 = vmatmul.mubr.msk.f32.gmra.mrb[62].mxu1 %vm2640_vm4, %v3162_v61 }
 0x273   : > { %4093 = vmatprep.mubr.msk.f32.mxu1 %vm2640_vm4, %v3163_v42 }
 0x276   : > { %4094 = vmatmul.mubr.msk.f32.gmra.mrb[64].mxu1 %vm2640_vm4, %v3164_v13 }
 0x277   : > { %4096 = vmatprep.mubr.msk.f32.mxu1 %vm2640_vm4, %v3165_v17 }
 0x27a   : > { %4097 = vmatmul.mubr.msk.f32.gmra.mrb[66].mxu1 %vm2640_vm4, %v3166_v0 }
 0x281   : > { %v6611_v16 = vpop.f32.mrb[16].mxu1 }
 0x282   : > { %v6613_v23 = vpop.f32.mrb[17].mxu1  ;;  %v2938_v49 = vmul.f32 %v6611_v16, %v6611_v16  ;;  %v2882_v18 = vsel %vm2854_vm7, %v6611_v16, 0.0 }
 0x283   : > { %v2878_v50 = vsel %vm2854_vm7, %v6613_v23, 0.0  ;;  %v2936_v39 = vmul.f32 %v6613_v23, %v6613_v23  ;;  %v6619_v38 = vpop.f32.mrb[18].mxu1 }
 0x284   : > { %v2879_v37 = vadd.f32 %v2878_v50, %v2877_v15  ;;  %v6621_v63 = vpop.f32.mrb[19].mxu1  ;;  %v2939_v53 = vmul.f32 %v6619_v38, %v6619_v38  ;;  %v2983_v41 = vsel %vm2854_vm7, %v2938_v49, 0.0  ;;  %v2884_v1 = vsel %vm2854_vm7, %v6619_v38, 0.0 }
 0x285   : > { %v2979_v31 = vsel %vm2854_vm7, %v2936_v39, 0.0  ;;  %v2880_v56 = vsel %vm2854_vm7, %v6621_v63, 0.0  ;;  %v2937_v28 = vmul.f32 %v6621_v63, %v6621_v63 }
 0x286   : > { %v2980_v19 = vadd.f32 %v2979_v31, %v2978_v62  ;;  %v2881_v43 = vadd.f32 %v2880_v56, %v2879_v37  ;;  %v2985_v24 = vsel %vm2854_vm7, %v2939_v53, 0.0 }
 0x287   : > { %v2981_v33 = vsel %vm2854_vm7, %v2937_v28, 0.0 }
 0x288   : > { %v2883_v2 = vadd.f32 %v2882_v18, %v2881_v43  ;;  %v2982_v51 = vadd.f32 %v2981_v33, %v2980_v19 }
 0x28a   : > { %v2984_v32 = vadd.f32 %v2983_v41, %v2982_v51  ;;  %v2885_v8 = vadd.f32 %v2884_v1, %v2883_v2 }
 0x28c   : > { %v2986_v22 = vadd.f32 %v2985_v24, %v2984_v32 }
 0x2a5   : > { %v6639_v44 = vpop.f32.mrb[20].mxu1 }
 0x2a6   : > { %v6641_v25 = vpop.f32.mrb[21].mxu1  ;;  %v2942_v58 = vmul.f32 %v6639_v44, %v6639_v44  ;;  %v2890_v48 = vsel %vm2854_vm7, %v6639_v44, 0.0 }
 0x2a7   : > { %v2886_v59 = vsel %vm2854_vm7, %v6641_v25, 0.0  ;;  %v2940_v4 = vmul.f32 %v6641_v25, %v6641_v25  ;;  %v6647_v40 = vpop.f32.mrb[22].mxu1 }
 0x2a8   : > { %v2887_v21 = vadd.f32 %v2886_v59, %v2885_v8  ;;  %v6649_v20 = vpop.f32.mrb[23].mxu1  ;;  %v3990_v3 = vpop.f32.mrb[54].mxu0  ;;  %v2943_v36 = vmul.f32 %v6647_v40, %v6647_v40  ;;  %v2991_v9 = vsel %vm2854_vm7, %v2942_v58, 0.0  ;;  %v2892_v13 = vsel %vm2854_vm7, %v6647_v40, 0.0 }
 0x2a9   : > { %v2987_v46 = vsel %vm2854_vm7, %v2940_v4, 0.0  ;;  %v2888_v26 = vsel %vm2854_vm7, %v6649_v20, 0.0  ;;  %v2941_v61 = vmul.f32 %v6649_v20, %v6649_v20  ;;  %v879_v45 = vpop.f32.mrb[55].mxu0 }
 0x2aa   : > { %v2988_v5 = vadd.f32 %v2987_v46, %v2986_v22  ;;  %v2889_v42 = vadd.f32 %v2888_v26, %v2887_v21  ;;  %v2993_v62 = vsel %vm2854_vm7, %v2943_v36, 0.0 }
 0x2ab   : > { %v2989_v54 = vsel %vm2854_vm7, %v2941_v61, 0.0 }
 0x2ac   : > { %v2891_v29 = vadd.f32 %v2890_v48, %v2889_v42  ;;  %v2990_v55 = vadd.f32 %v2989_v54, %v2988_v5  ;;  %v3993_v35 = vpop.f32.mrb[56].mxu0 }
 0x2ad   : > { %v887_v52 = vpop.f32.mrb[57].mxu0 }
 0x2ae   : > { %v2992_v15 = vadd.f32 %v2991_v9, %v2990_v55  ;;  %v2893_v17 = vadd.f32 %v2892_v13, %v2891_v29 }
 0x2b0   : > { %v2994_v0 = vadd.f32 %v2993_v62, %v2992_v15 }
 0x2b1   : > { %v3996_v50 = vpop.f32.mrb[58].mxu0 }
 0x2b2   : > { %v895_v39 = vpop.f32.mrb[59].mxu0 }
 0x2b5   : > { %v3999_v37 = vpop.f32.mrb[60].mxu0 }
 0x2b6   : > { %v903_v49 = vpop.f32.mrb[61].mxu0 }
 0x2ba   : > { %v4002_v31 = vpop.f32.mrb[62].mxu0 }
 0x2bb   : > { %v911_v56 = vpop.f32.mrb[63].mxu0 }
 0x2be   : > { %v4005_v28 = vpop.f32.mrb[64].mxu0 }
 0x2bf   : > { %v919_v19 = vpop.f32.mrb[65].mxu0 }
 0x2c2   : > { %v4008_v43 = vpop.f32.mrb[66].mxu0 }
 0x2c3   : > { %v927_v18 = vpop.f32.mrb[67].mxu0 }
 0x2c9   : > { %v6667_v53 = vpop.f32.mrb[24].mxu1 }
 0x2ca   : > { %v6669_v33 = vpop.f32.mrb[25].mxu1  ;;  %v2946_v8 = vmul.f32 %v6667_v53, %v6667_v53  ;;  %v2898_v58 = vsel %vm2854_vm7, %v6667_v53, 0.0 }
 0x2cb   : > { %v2894_v2 = vsel %vm2854_vm7, %v6669_v33, 0.0  ;;  %v2944_v51 = vmul.f32 %v6669_v33, %v6669_v33  ;;  %v6675_v41 = vpop.f32.mrb[26].mxu1 }
 0x2cc   : > { %v2895_v1 = vadd.f32 %v2894_v2, %v2893_v17  ;;  %v6677_v32 = vpop.f32.mrb[27].mxu1  ;;  %v2947_v46 = vmul.f32 %v6675_v41, %v6675_v41  ;;  %v2999_v5 = vsel %vm2854_vm7, %v2946_v8, 0.0  ;;  %v2900_v42 = vsel %vm2854_vm7, %v6675_v41, 0.0 }
 0x2cd   : > { %v2995_v24 = vsel %vm2854_vm7, %v2944_v51, 0.0  ;;  %v2896_v22 = vsel %vm2854_vm7, %v6677_v32, 0.0  ;;  %v2945_v59 = vmul.f32 %v6677_v32, %v6677_v32 }
 0x2ce   : > { %v2996_v4 = vadd.f32 %v2995_v24, %v2994_v0  ;;  %v2897_v21 = vadd.f32 %v2896_v22, %v2895_v1  ;;  %v3001_v36 = vsel %vm2854_vm7, %v2947_v46, 0.0 }
 0x2cf   : > { %v2997_v26 = vsel %vm2854_vm7, %v2945_v59, 0.0 }
 0x2d0   : > { %v2899_v61 = vadd.f32 %v2898_v58, %v2897_v21  ;;  %v2998_v3 = vadd.f32 %v2997_v26, %v2996_v4 }
 0x2d2   : > { %v3000_v45 = vadd.f32 %v2999_v5, %v2998_v3  ;;  %v2901_v48 = vadd.f32 %v2900_v42, %v2899_v61 }
 0x2d4   : > { %v3002_v54 = vadd.f32 %v3001_v36, %v3000_v45 }
 0x2fb   : > { %v6695_v29 = vpop.f32.mrb[28].mxu1 }
 0x2fc   : > { %v6697_v55 = vpop.f32.mrb[29].mxu1  ;;  %v2950_v52 = vmul.f32 %v6695_v29, %v6695_v29  ;;  %v2906_v49 = vsel %vm2854_vm7, %v6695_v29, 0.0 }
 0x2fd   : > { %v2902_v9 = vsel %vm2854_vm7, %v6697_v55, 0.0  ;;  %v2948_v13 = vmul.f32 %v6697_v55, %v6697_v55  ;;  %v6703_v35 = vpop.f32.mrb[30].mxu1 }
 0x2fe   : > { %v2903_v15 = vadd.f32 %v2902_v9, %v2901_v48  ;;  %v6705_v17 = vpop.f32.mrb[31].mxu1  ;;  %v2951_v31 = vmul.f32 %v6703_v35, %v6703_v35  ;;  %v3007_v43 = vsel %vm2854_vm7, %v2950_v52, 0.0  ;;  %v2908_v18 = vsel %vm2854_vm7, %v6703_v35, 0.0 }
 0x2ff   : > { %v3003_v62 = vsel %vm2854_vm7, %v2948_v13, 0.0  ;;  %v2904_v0 = vsel %vm2854_vm7, %v6705_v17, 0.0  ;;  %v2949_v50 = vmul.f32 %v6705_v17, %v6705_v17 }
 0x300   : > { %v3004_v39 = vadd.f32 %v3003_v62, %v3002_v54  ;;  %v2905_v37 = vadd.f32 %v2904_v0, %v2903_v15  ;;  %v3009_v1 = vsel %vm2854_vm7, %v2951_v31, 0.0 }
 0x301   : > { %v3005_v56 = vsel %vm2854_vm7, %v2949_v50, 0.0 }
 0x302   : > { %v2907_v28 = vadd.f32 %v2906_v49, %v2905_v37  ;;  %v3006_v19 = vadd.f32 %v3005_v56, %v3004_v39 }
 0x304   : > { %v3008_v2 = vadd.f32 %v3007_v43, %v3006_v19  ;;  %v2909_v51 = vadd.f32 %v2908_v18, %v2907_v28 }
 0x306   : > { %v3010_v24 = vadd.f32 %v3009_v1, %v3008_v2 }
 0x309   : > { %v6723_v8 = vpop.f32.mrb[32].mxu1 }
 0x30a   : > { %7541 = vst [vmem:[#allocation15_spill] sm:$0xff] %v6723_v8  ;;  %v6725_v22 = vpop.f32.mrb[33].mxu1  ;;  %v2954_v26 = vmul.f32 %v6723_v8, %v6723_v8  ;;  %v2914_v48 = vsel %vm2854_vm7, %v6723_v8, 0.0 }
 0x30b   : > { %v2910_v59 = vsel %vm2854_vm7, %v6725_v22, 0.0  ;;  %v2952_v4 = vmul.f32 %v6725_v22, %v6725_v22  ;;  %v6731_v21 = vpop.f32.mrb[34].mxu1 }
 0x30c   : > { %v2911_v58 = vadd.f32 %v2910_v59, %v2909_v51  ;;  %v6733_v46 = vpop.f32.mrb[35].mxu1  ;;  %v2955_v36 = vmul.f32 %v6731_v21, %v6731_v21  ;;  %v3015_v15 = vsel %vm2854_vm7, %v2954_v26, 0.0  ;;  %v2916_v52 = vsel %vm2854_vm7, %v6731_v21, 0.0 }
 0x30d   : > { %v3011_v61 = vsel %vm2854_vm7, %v2952_v4, 0.0  ;;  %v2912_v3 = vsel %vm2854_vm7, %v6733_v46, 0.0  ;;  %v2953_v5 = vmul.f32 %v6733_v46, %v6733_v46 }
 0x30e   : > { %v3012_v42 = vadd.f32 %v3011_v61, %v3010_v24  ;;  %v2913_v45 = vadd.f32 %v2912_v3, %v2911_v58  ;;  %v3017_v37 = vsel %vm2854_vm7, %v2955_v36, 0.0 }
 0x30f   : > { %v3013_v54 = vsel %vm2854_vm7, %v2953_v5, 0.0 }
 0x310   : > { %v2915_v9 = vadd.f32 %v2914_v48, %v2913_v45  ;;  %v3014_v13 = vadd.f32 %v3013_v54, %v3012_v42 }
 0x311   : > { %v6750_v62 = vpop.f32.mrb[36].mxu1 }
 0x312   : > { %v2917_v0 = vadd.f32 %v2916_v52, %v2915_v9  ;;  %v3016_v50 = vadd.f32 %v3015_v15, %v3014_v13  ;;  %v6752_v39 = vpop.f32.mrb[37].mxu1 }
 0x314   : > { %v2918_v49 = vrot.slane %v2917_v0, 4  ;;  %v3018_v31 = vadd.f32 %v3017_v37, %v3016_v50 }
 0x315   : > { %v6755_v56 = vpop.f32.mrb[38].mxu1 }
 0x316   : > { %v2919_v28 = vadd.f32 %v2918_v49, %v2917_v0  ;;  %v3019_v19 = vrot.slane %v3018_v31, 4  ;;  %v6757_v43 = vpop.f32.mrb[39].mxu1 }
 0x318   : > { %v2920_v18 = vrot.slane %v2919_v28, 2  ;;  %v3020_v2 = vadd.f32 %v3019_v19, %v3018_v31 }
 0x319   : > { %v6759_v51 = vpop.f32.mrb[40].mxu1 }
 0x31a   : > { %v2921_v1 = vadd.f32 %v2920_v18, %v2919_v28  ;;  %v3021_v24 = vrot.slane %v3020_v2, 2  ;;  %v6761_v59 = vpop.f32.mrb[41].mxu1 }
 0x31c   : > { %v2922_v4 = vrot.slane %v2921_v1, 1  ;;  %v3022_v58 = vadd.f32 %v3021_v24, %v3020_v2 }
 0x31d   : > { %v6763_v26 = vpop.f32.mrb[42].mxu1 }
 0x31e   : > { %v2923_v61 = vadd.f32 %v2922_v4, %v2921_v1  ;;  %v3023_v3 = vrot.slane %v3022_v58, 1  ;;  %v6765_v5 = vpop.f32.mrb[43].mxu1 }
 0x320   : > { %v3024_v42 = vadd.f32 %v3023_v3, %v3022_v58  ;;  %v6767_v45 = vmul.f32 0.00390625, %v2923_v61 }
 0x321   : > { %v6769_v48 = vpop.f32.mrb[44].mxu1 }
 0x322   : > { %v3026_v36 = vmul.f32 0.00390625, %v3024_v42  ;;  %v3027_v54 = vmul.f32 %v6767_v45, %v6767_v45  ;;  %v3030_v13 = vsub.f32 %v6422_v27, %v6767_v45  ;;  %v6777_v15 = vpop.f32.mrb[45].mxu1  ;;  %v3029_v52 = vsub.f32 %v6408_v14, %v6767_v45 }
 0x323   : > { %v3032_v0 = vsub.f32 %v6414_v60, %v6767_v45  ;;  %v3031_v50 = vsub.f32 %v6399_v57, %v6767_v45  ;;  %v3034_v37 = vsub.f32 %v6518_v34, %v6767_v45  ;;  %v3033_v31 = vsub.f32 %v6509_v12, %v6767_v45 }
 0x324   : > { %v3028_v49 = vsub.f32 %v3026_v36, %v3027_v54  ;;  %v3036_v27 = vsub.f32 %v6515_v7, %v6767_v45  ;;  %v3035_v28 = vsub.f32 %v6506_v47, %v6767_v45 }
 0x325   : > { %v6799_v34 = vpop.f32.mrb[46].mxu1 }
 0x326   : > { %v3061_v19 = vadd.f32 1e-05, %v3028_v49  ;;  %v6803_v18 = vpop.f32.mrb[47].mxu1 }
 0x328   : > { %4133 = vrsqrt.f32 %v3061_v19 }
 0x329   : > { %v6825_v36 = vpop.f32.mrb[48].mxu1 }
 0x32a   : > { %v6835_v61 = vpop.f32.mrb[49].mxu1 }
 0x32d   : > { %v6847_v58 = vpop.f32.mrb[50].mxu1 }
 0x32e   : > { %v6849_v9 = vpop.f32.mrb[51].mxu1 }
 0x331   : > { %v6851_v4 = vpop.f32.mrb[52].mxu1 }
 0x332   : > { %v6853_v3 = vpop.eup %4133  ;;  %v6855_v24 = vpop.f32.mrb[53].mxu1 }
 0x333   : > { %v3064_v42 = vmul.f32 %v6853_v3, %v3030_v13  ;;  %v3063_v54 = vmul.f32 %v6853_v3, %v3029_v52  ;;  %v3066_v49 = vmul.f32 %v6853_v3, %v3032_v0  ;;  %v3065_v1 = vmul.f32 %v6853_v3, %v3031_v50 }
 0x334   : > { %v3068_v19 = vmul.f32 %v6853_v3, %v3034_v37  ;;  %v3067_v2 = vmul.f32 %v6853_v3, %v3033_v31  ;;  %v3070_v7 = vmul.f32 %v6853_v3, %v3036_v27  ;;  %v3069_v47 = vmul.f32 %v6853_v3, %v3035_v28 }
 0x335   : > { %v3096_v12 = vmax.f32 %v3064_v42, 0.0  ;;  %v3095_v57 = vmax.f32 %v3063_v54, 0.0  ;;  %v3098_v60 = vmax.f32 %v3066_v49, 0.0  ;;  %v3097_v14 = vmax.f32 %v3065_v1, 0.0  ;;  %v6865_v8 = vpop.f32.mrb[54].mxu1 }
 0x336   : > { %v3100_v13 = vmax.f32 %v3068_v19, 0.0  ;;  %v3099_v52 = vmax.f32 %v3067_v2, 0.0  ;;  %v3102_v0 = vmax.f32 %v3070_v7, 0.0  ;;  %v3101_v50 = vmax.f32 %v3069_v47, 0.0  ;;  %v6874_v37 = vpop.f32.mrb[55].mxu1 }
 0x337   : > { %v3493_v31 = vadd.f32 %v6750_v62, %v3096_v12  ;;  %v3492_v27 = vadd.f32 %v6752_v39, %v3095_v57  ;;  %v3495_v28 = vadd.f32 %v6755_v56, %v3098_v60  ;;  %v3494_v1 = vadd.f32 %v6757_v43, %v3097_v14 }
 0x338   : > { %v3497_v42 = vadd.f32 %v6759_v51, %v3100_v13  ;;  %v3496_v2 = vadd.f32 %v6761_v59, %v3099_v52  ;;  %v3499_v47 = vadd.f32 %v6763_v26, %v3102_v0  ;;  %v3498_v7 = vadd.f32 %v6765_v5, %v3101_v50 }
 0x339   : > { %3525 = vst.msk [vmem:[%s6872_s21 + $0x8] sm:$0xff] %vm2854_vm7, %v3493_v31  ;;  %3524 = vst.msk [vmem:[%s6872_s21] sm:$0xff] %vm2854_vm7, %v3492_v27  ;;  %v7542_v62 = vsub.f32 %v6581_v30, %v6767_v45  ;;  %v7543_v56 = vsub.f32 %v6572_v11, %v6767_v45  ;;  %v7544_v51 = vsub.f32 %v6579_v6, %v6767_v45  ;;  %v4083_v14 = vpop.f32.mrb[56].mxu1 }
 0x33a   : > { %3527 = vst.msk [vmem:[%s6872_s21 + $0x18] sm:$0xff] %vm2854_vm7, %v3495_v28  ;;  %3526 = vst.msk [vmem:[%s6872_s21 + $0x10] sm:$0xff] %vm2854_vm7, %v3494_v1  ;;  %v7545_v26 = vsub.f32 %v6568_v10, %v6767_v45  ;;  %v7546_v11 = vsub.f32 %v6621_v63, %v6767_v45  ;;  %v7547_v30 = vsub.f32 %v6613_v23, %v6767_v45  ;;  %v3433_v49 = vpop.f32.mrb[57].mxu1 }
 0x33b   : > { %v3072_v39 = vmul.f32 %v6853_v3, %v7542_v62  ;;  %v3071_v43 = vmul.f32 %v6853_v3, %v7543_v56  ;;  %v3074_v59 = vmul.f32 %v6853_v3, %v7544_v51  ;;  %3529 = vst.msk [vmem:[%s6872_s21 + $0x28] sm:$0xff] %vm2854_vm7, %v3497_v42  ;;  %3528 = vst.msk [vmem:[%s6872_s21 + $0x20] sm:$0xff] %vm2854_vm7, %v3496_v2 }
 0x33c   : > { %v3073_v5 = vmul.f32 %v6853_v3, %v7545_v26  ;;  %3531 = vst.msk [vmem:[%s6872_s21 + $0x38] sm:$0xff] %vm2854_vm7, %v3499_v47  ;;  %3530 = vst.msk [vmem:[%s6872_s21 + $0x30] sm:$0xff] %vm2854_vm7, %v3498_v7  ;;  %v3076_v6 = vmul.f32 %v6853_v3, %v7546_v11  ;;  %v3075_v10 = vmul.f32 %v6853_v3, %v7547_v30 }
 0x33d   : > { %v7548_v60 = vsub.f32 %v6619_v38, %v6767_v45  ;;  %v7549_v12 = vsub.f32 %v6611_v16, %v6767_v45  ;;  %v3104_v19 = vmax.f32 %v3072_v39, 0.0  ;;  %v3103_v63 = vmax.f32 %v3071_v43, 0.0  ;;  %v4086_v1 = vpop.f32.mrb[58].mxu1 }
 0x33e   : > { %v3106_v13 = vmax.f32 %v3074_v59, 0.0  ;;  %v3105_v52 = vmax.f32 %v3073_v5, 0.0  ;;  %v3108_v23 = vmax.f32 %v3076_v6, 0.0  ;;  %v3107_v0 = vmax.f32 %v3075_v10, 0.0 }
 0x33f   : > { %v3078_v57 = vmul.f32 %v6853_v3, %v7548_v60  ;;  %v3077_v54 = vmul.f32 %v6853_v3, %v7549_v12  ;;  %v3501_v31 = vadd.f32 %v6769_v48, %v3104_v19  ;;  %v3500_v27 = vadd.f32 %v6777_v15, %v3103_v63  ;;  %v3443_v48 = vpop.f32.mrb[59].mxu1 }
 0x340   : > { %v3503_v16 = vadd.f32 %v6799_v34, %v3106_v13  ;;  %v3502_v28 = vadd.f32 %v6803_v18, %v3105_v52  ;;  %v3505_v42 = vadd.f32 %v6825_v36, %v3108_v23  ;;  %v3504_v2 = vadd.f32 %v6835_v61, %v3107_v0 }
 0x341   : > { %v3110_v50 = vmax.f32 %v3078_v57, 0.0  ;;  %v3109_v38 = vmax.f32 %v3077_v54, 0.0  ;;  %3533 = vst.msk [vmem:[%s6872_s21 + $0x48] sm:$0xff] %vm2854_vm7, %v3501_v31  ;;  %3532 = vst.msk [vmem:[%s6872_s21 + $0x40] sm:$0xff] %vm2854_vm7, %v3500_v27  ;;  %v7550_v15 = vsub.f32 %v6649_v20, %v6767_v45  ;;  %v7551_v18 = vsub.f32 %v6641_v25, %v6767_v45  ;;  %v4089_v11 = vpop.f32.mrb[60].mxu1  ;;  %v7565_v27 = vld [vmem:[#allocation15_spill] sm:$0xff] }
 0x342   : > { %3535 = vst.msk [vmem:[%s6872_s21 + $0x58] sm:$0xff] %vm2854_vm7, %v3503_v16  ;;  %3534 = vst.msk [vmem:[%s6872_s21 + $0x50] sm:$0xff] %vm2854_vm7, %v3502_v28  ;;  %v7553_v36 = vsub.f32 %v6639_v44, %v6767_v45  ;;  %v7554_v25 = vsub.f32 %v6677_v32, %v6767_v45  ;;  %v7555_v20 = vsub.f32 %v6669_v33, %v6767_v45  ;;  %v3453_v10 = vpop.f32.mrb[61].mxu1 }
 0x343   : > { %v3507_v47 = vadd.f32 %v6847_v58, %v3110_v50  ;;  %v3506_v7 = vadd.f32 %v6849_v9, %v3109_v38  ;;  %v3080_v34 = vmul.f32 %v6853_v3, %v7550_v15  ;;  %v3079_v58 = vmul.f32 %v6853_v3, %v7551_v18  ;;  %3537 = vst.msk [vmem:[%s6872_s21 + $0x68] sm:$0xff] %vm2854_vm7, %v3505_v42 }
 0x344   : > { %v7552_v9 = vsub.f32 %v6647_v40, %v6767_v45  ;;  %v3081_v62 = vmul.f32 %v6853_v3, %v7553_v36  ;;  %3536 = vst.msk [vmem:[%s6872_s21 + $0x60] sm:$0xff] %vm2854_vm7, %v3504_v2  ;;  %v3084_v40 = vmul.f32 %v6853_v3, %v7554_v25  ;;  %v3083_v44 = vmul.f32 %v6853_v3, %v7555_v20 }
 0x345   : > { %3539 = vst.msk [vmem:[%s6872_s21 + $0x78] sm:$0xff] %vm2854_vm7, %v3507_v47  ;;  %3538 = vst.msk [vmem:[%s6872_s21 + $0x70] sm:$0xff] %vm2854_vm7, %v3506_v7  ;;  %v7556_v39 = vsub.f32 %v6675_v41, %v6767_v45  ;;  %v7557_v43 = vsub.f32 %v6667_v53, %v6767_v45  ;;  %v3112_v59 = vmax.f32 %v3080_v34, 0.0  ;;  %v3111_v26 = vmax.f32 %v3079_v58, 0.0  ;;  %v4092_v52 = vpop.f32.mrb[62].mxu1 }
 0x346   : > { %v3082_v61 = vmul.f32 %v6853_v3, %v7552_v9  ;;  %v3113_v5 = vmax.f32 %v3081_v62, 0.0  ;;  %v3116_v33 = vmax.f32 %v3084_v40, 0.0  ;;  %v3115_v6 = vmax.f32 %v3083_v44, 0.0 }
 0x347   : > { %v3086_v56 = vmul.f32 %v6853_v3, %v7556_v39  ;;  %v3085_v51 = vmul.f32 %v6853_v3, %v7557_v43  ;;  %v3509_v60 = vadd.f32 %v6851_v4, %v3112_v59  ;;  %v3508_v53 = vadd.f32 %v6855_v24, %v3111_v26 }
 0x348   : > { %v3114_v32 = vmax.f32 %v3082_v61, 0.0  ;;  %v3510_v12 = vadd.f32 %v6874_v37, %v3113_v5  ;;  %v3513_v54 = vadd.f32 %v4083_v14, %v3116_v33  ;;  %v3512_v19 = vadd.f32 %v3433_v49, %v3115_v6 }
 0x349   : > { %v3118_v30 = vmax.f32 %v3086_v56, 0.0  ;;  %v3117_v41 = vmax.f32 %v3085_v51, 0.0  ;;  %3541 = vst.msk [vmem:[%s6872_s21 + $0x88] sm:$0xff] %vm2854_vm7, %v3509_v60  ;;  %3540 = vst.msk [vmem:[%s6872_s21 + $0x80] sm:$0xff] %vm2854_vm7, %v3508_v53  ;;  %v7559_v4 = vsub.f32 %v6697_v55, %v6767_v45  ;;  %v7560_v14 = vsub.f32 %v6703_v35, %v6767_v45  ;;  %v3463_v55 = vpop.f32.mrb[63].mxu1 }
 0x34a   : > { %v3511_v57 = vadd.f32 %v6865_v8, %v3114_v32  ;;  %3542 = vst.msk [vmem:[%s6872_s21 + $0x90] sm:$0xff] %vm2854_vm7, %v3510_v12  ;;  %v7558_v8 = vsub.f32 %v6705_v17, %v6767_v45  ;;  %v7561_v23 = vsub.f32 %v6695_v29, %v6767_v45  ;;  %3545 = vst.msk [vmem:[%s6872_s21 + $0xa8] sm:$0xff] %vm2854_vm7, %v3513_v54  ;;  %v4095_v34 = vpop.f32.mrb[64].mxu1 }
 0x34b   : > { %v3515_v63 = vadd.f32 %v4086_v1, %v3118_v30  ;;  %v3514_v13 = vadd.f32 %v3443_v48, %v3117_v41  ;;  %v3087_v37 = vmul.f32 %v6853_v3, %v7559_v4  ;;  %v3090_v49 = vmul.f32 %v6853_v3, %v7560_v14  ;;  %3544 = vst.msk [vmem:[%s6872_s21 + $0xa0] sm:$0xff] %vm2854_vm7, %v3512_v19  ;;  %v3473_v18 = vpop.f32.mrb[65].mxu1 }
 0x34c   : > { %3543 = vst.msk [vmem:[%s6872_s21 + $0x98] sm:$0xff] %vm2854_vm7, %v3511_v57  ;;  %v3088_v24 = vmul.f32 %v6853_v3, %v7558_v8  ;;  %v3089_v0 = vmul.f32 %v6853_v3, %v7561_v23  ;;  %v7562_v35 = vsub.f32 %v6733_v46, %v6767_v45  ;;  %v7563_v50 = vsub.f32 %v6725_v22, %v6767_v45 }
 0x34d   : > { %3547 = vst.msk [vmem:[%s6872_s21 + $0xb8] sm:$0xff] %vm2854_vm7, %v3515_v63  ;;  %3546 = vst.msk [vmem:[%s6872_s21 + $0xb0] sm:$0xff] %vm2854_vm7, %v3514_v13  ;;  %v7564_v38 = vsub.f32 %v6731_v21, %v6767_v45  ;;  %v7566_v16 = vsub.f32 %v7565_v27, %v6767_v45  ;;  %v3119_v1 = vmax.f32 %v3087_v37, 0.0  ;;  %v3122_v42 = vmax.f32 %v3090_v49, 0.0  ;;  %v4098_v9 = vpop.f32.mrb[66].mxu1 }
 0x34e   : > { %v3092_v17 = vmul.f32 %v6853_v3, %v7562_v35  ;;  %v3091_v29 = vmul.f32 %v6853_v3, %v7563_v50  ;;  %v3120_v46 = vmax.f32 %v3088_v24, 0.0  ;;  %v3121_v22 = vmax.f32 %v3089_v0, 0.0  ;;  %v3483_v62 = vpop.f32.mrb[67].mxu1 }
 0x34f   : > { %v3094_v31 = vmul.f32 %v6853_v3, %v7564_v38  ;;  %v3093_v28 = vmul.f32 %v6853_v3, %v7566_v16  ;;  %v3516_v7 = vadd.f32 %v3453_v10, %v3119_v1  ;;  %v3519_v48 = vadd.f32 %v4092_v52, %v3122_v42 }
 0x350   : > { %v3124_v2 = vmax.f32 %v3092_v17, 0.0  ;;  %v3123_v47 = vmax.f32 %v3091_v29, 0.0  ;;  %v3517_v21 = vadd.f32 %v4089_v11, %v3120_v46  ;;  %v3518_v15 = vadd.f32 %v3463_v55, %v3121_v22 }
 0x351   : > { %3548 = vst.msk [vmem:[%s6872_s21 + $0xc0] sm:$0xff] %vm2854_vm7, %v3516_v7  ;;  %3551 = vst.msk [vmem:[%s6872_s21 + $0xd8] sm:$0xff] %vm2854_vm7, %v3519_v48  ;;  %v3126_v58 = vmax.f32 %v3094_v31, 0.0  ;;  %v3125_v61 = vmax.f32 %v3093_v28, 0.0 }
 0x352   : > { %v3521_v45 = vadd.f32 %v4095_v34, %v3124_v2  ;;  %3549 = vst.msk [vmem:[%s6872_s21 + $0xc8] sm:$0xff] %vm2854_vm7, %v3517_v21  ;;  %3550 = vst.msk [vmem:[%s6872_s21 + $0xd0] sm:$0xff] %vm2854_vm7, %v3518_v15  ;;  %v3520_v3 = vadd.f32 %v3473_v18, %v3123_v47 }
 0x353   : > { %v3523_v36 = vadd.f32 %v4098_v9, %v3126_v58  ;;  %v3522_v25 = vadd.f32 %v3483_v62, %v3125_v61 }
 0x354   : > { %3553 = vst.msk [vmem:[%s6872_s21 + $0xe8] sm:$0xff] %vm2854_vm7, %v3521_v45  ;;  %3552 = vst.msk [vmem:[%s6872_s21 + $0xe0] sm:$0xff] %vm2854_vm7, %v3520_v3 }
 0x355   : > { %3555 = vst.msk [vmem:[%s6872_s21 + $0xf8] sm:$0xff] %vm2854_vm7, %v3523_v36  ;;  %3554 = vst.msk [vmem:[%s6872_s21 + $0xf0] sm:$0xff] %vm2854_vm7, %v3522_v25 }
 0x356 PF: > { %s15_s18 = sadd.s32 1, %s4141_s18  }
 0x357   : > { %p12_p4 = scmp.ge.s32.totalorder %s15_s18, 4  }
 0x359   :  { %14 = sbr.rel (!%p12_p4) target bundleno = 1 (0x1), region = 73 }

</bundles_post_ra>
